<compile_context>
chip_gen: v7x
topology: tpu7x:2x2x1
jax: 0.10.0
libtpu: 0.0.40
codegen_flags: <defaults>
</compile_context>

<pallas_src>
import jax
import jax.numpy as jnp
import numpy as np
from jax.experimental import pallas as pl
from jax.experimental.pallas import tpu as pltpu

BN_EPS = 1e-3  # matches BatchNorm2d(eps=0.001)


def conv_bn_relu_kernel(x_ref, w_ref, gamma_ref, beta_ref, o_ref):
    # x_ref:     (N, Cin, HW)   NCHW with spatial flattened
    # w_ref:     (Cout, Cin)    native PyTorch conv weight layout
    # gamma/beta:(Cout, 1)
    # o_ref:     (N, Cout, HW)  f32, channels-first, lane-dense (HW % 128 == 0)
    n_batch = x_ref.shape[0]
    hw = x_ref.shape[2]
    cout = w_ref.shape[0]
    total = n_batch * hw
    inv_total = 1.0 / float(total)

    w = w_ref[...]  # (Cout, Cin)

    # Pass 1: weight-stationary matmuls, conv result stored directly into o_ref,
    # per-channel sums accumulated for the mean.
    s = jnp.zeros((cout, 1), jnp.float32)
    for n in range(n_batch):
        y = jnp.dot(w, x_ref[n],
                    preferred_element_type=jnp.float32,
                    precision=jax.lax.Precision.HIGHEST)        # (Cout, HW)
        o_ref[n] = y
        s = s + jnp.sum(y, axis=1, keepdims=True)
    mean = s * inv_total                                        # (Cout, 1)

    # Pass 2: centered (two-pass) variance over the VMEM-resident conv result.
    ssd = jnp.zeros((cout, 1), jnp.float32)
    for n in range(n_batch):
        d = o_ref[n] - mean
        ssd = ssd + jnp.sum(d * d, axis=1, keepdims=True)
    var = ssd * inv_total                                       # biased variance

    scale = gamma_ref[...] * jax.lax.rsqrt(var + BN_EPS)        # (Cout, 1), EUP rsqrt
    shift = beta_ref[...] - mean * scale                        # (Cout, 1)

    # Hoist the (Cout,1) -> (Cout,HW) broadcasts out of the loop.
    scale_b = jnp.broadcast_to(scale, (cout, hw))
    shift_b = jnp.broadcast_to(shift, (cout, hw))

    # Pass 3: in-place normalize + affine + ReLU, lane-dense stores.
    for n in range(n_batch):
        o_ref[n] = jnp.maximum(o_ref[n] * scale_b + shift_b, 0.0).astype(o_ref.dtype)


def conv2d_bn_relu(x_nchw, weight_oi, gamma, beta):
    """x_nchw: (N, Cin, H, W) f32; weight_oi: (Cout, Cin) from a (Cout, Cin, 1, 1) conv."""
    assert x_nchw.dtype == jnp.float32, "kernel stores raw conv result in the f32 output"
    N, Cin, H, W = x_nchw.shape
    Cout = weight_oi.shape[0]
    HW = H * W

    # Zero-cost layout plumbing only (contiguous reshapes, no transposes).
    x3 = x_nchw.reshape(N, Cin, HW)
    g2 = gamma.reshape(Cout, 1)
    b2 = beta.reshape(Cout, 1)

    flops = 2 * N * HW * Cin * Cout + 8 * N * HW * Cout
    bytes_accessed = 4 * (N * Cin * HW + Cout * Cin + 2 * Cout + N * Cout * HW)

    out3 = pl.pallas_call(
        conv_bn_relu_kernel,
        out_shape=jax.ShapeDtypeStruct((N, Cout, HW), jnp.float32),
        in_specs=[
            pl.BlockSpec(memory_space=pltpu.MemorySpace.VMEM),  # x
            pl.BlockSpec(memory_space=pltpu.MemorySpace.VMEM),  # W
            pl.BlockSpec(memory_space=pltpu.MemorySpace.VMEM),  # gamma
            pl.BlockSpec(memory_space=pltpu.MemorySpace.VMEM),  # beta
        ],
        out_specs=pl.BlockSpec(memory_space=pltpu.MemorySpace.VMEM),
        cost_estimate=pl.CostEstimate(
            flops=flops, transcendentals=Cout, bytes_accessed=bytes_accessed),
    )(x3, weight_oi, g2, b2)

    # Zero-cost reshape back to NCHW.
    return out3.reshape(N, Cout, H, W)


def reference(x_nchw, weight_oi, gamma, beta):
    y = jnp.einsum('oi,nihw->nohw', weight_oi, x_nchw,
                   precision=jax.lax.Precision.HIGHEST)
    mean = jnp.mean(y, axis=(0, 2, 3), keepdims=True)
    var = jnp.mean((y - mean) ** 2, axis=(0, 2, 3), keepdims=True)
    y = (y - mean) * jax.lax.rsqrt(var + BN_EPS)
    y = y * gamma[None, :, None, None] + beta[None, :, None, None]
    return jnp.maximum(y, 0.0)


if __name__ == "__main__":
    key = jax.random.PRNGKey(0)
    k_x, k_w, k_g, k_b = jax.random.split(key, 4)

    # Channel dims fixed by the module (Cin=256, Cout=64); small batch/spatial
    # chosen so HW = 256 is lane-dense (multiple of 128).
    N, Cin, H, W = 2, 256, 16, 16
    Cout = 64

    x = jax.random.normal(k_x, (N, Cin, H, W), dtype=jnp.float32)
    # Conv2d(256, 64, 1, bias=False) weight: (Cout, Cin, 1, 1) -> (Cout, Cin)
    bound = 1.0 / np.sqrt(Cin)
    w = jax.random.uniform(k_w, (Cout, Cin), dtype=jnp.float32,
                           minval=-bound, maxval=bound)
    gamma = 1.0 + 0.1 * jax.random.normal(k_g, (Cout,), dtype=jnp.float32)
    beta = 0.1 * jax.random.normal(k_b, (Cout,), dtype=jnp.float32)

    out = jax.block_until_ready(conv2d_bn_relu(x, w, gamma, beta))
    ref = jax.block_until_ready(reference(x, w, gamma, beta))

    assert out.shape == (N, Cout, H, W)
    np.testing.assert_allclose(np.asarray(out), np.asarray(ref),
                               rtol=1e-4, atol=1e-4)

    print("KERNEL_OK")
</pallas_src>

<mosaic_0001>
module attributes {stable_mosaic.version = 11 : i64} {
  func.func @conv_bn_relu_kernel(%arg0: memref<2x256x256xf32, #tpu.memory_space<vmem>>, %arg1: memref<64x256xf32, #tpu.memory_space<vmem>>, %arg2: memref<64x1xf32, #tpu.memory_space<vmem>>, %arg3: memref<64x1xf32, #tpu.memory_space<vmem>>, %arg4: memref<2x64x256xf32, #tpu.memory_space<vmem>>) attributes {dimension_semantics = [], scalar_prefetch = 0 : i64, scratch_operands = 0 : i64, tpu.core_type = #tpu.core_type<tc>} {
    %c0 = arith.constant 0 : index
    %c0_0 = arith.constant 0 : index
    %0 = vector.load %arg1[%c0, %c0_0] : memref<64x256xf32, #tpu.memory_space<vmem>>, vector<64x256xf32>
    %cst = arith.constant 0.000000e+00 : f32
    %1 = vector.broadcast %cst : f32 to vector<64x1xf32>
    %c0_1 = arith.constant 0 : index
    %c0_2 = arith.constant 0 : index
    %c0_3 = arith.constant 0 : index
    %2 = vector.load %arg0[%c0_1, %c0_2, %c0_3] : memref<2x256x256xf32, #tpu.memory_space<vmem>>, vector<1x256x256xf32>
    %3 = vector.shape_cast %2 : vector<1x256x256xf32> to vector<256x256xf32>
    %cst_4 = arith.constant dense<0.000000e+00> : vector<64x256xf32>
    %4 = tpu.matmul %0, %3, %cst_4 {dimension_numbers = #tpu.dot_dimension_numbers<[1], [0], [0], [1], [0, 0, 1, 1], [], []>, precision = #tpu.contract_precision<fp32>} : vector<64x256xf32>, vector<256x256xf32>, vector<64x256xf32> -> vector<64x256xf32>
    %c0_5 = arith.constant 0 : index
    %c0_6 = arith.constant 0 : index
    %c0_7 = arith.constant 0 : index
    %5 = vector.load %arg4[%c0_5, %c0_6, %c0_7] : memref<2x64x256xf32, #tpu.memory_space<vmem>>, vector<1x64x256xf32>
    %6 = vector.shape_cast %5 : vector<1x64x256xf32> to vector<64x256xf32>
    %7 = vector.shape_cast %4 : vector<64x256xf32> to vector<1x64x256xf32>
    tpu.vector_store %arg4[%c0_5, %c0_6, %c0_7], %7 {strides = array<i32>} : memref<2x64x256xf32, #tpu.memory_space<vmem>>, vector<1x64x256xf32>,
    %cst_8 = arith.constant dense<0.000000e+00> : vector<64xf32>
    %8 = vector.multi_reduction <add>, %4, %cst_8 [1] : vector<64x256xf32> to vector<64xf32>
    %9 = vector.shape_cast %8 : vector<64xf32> to vector<64x1xf32>
    %10 = arith.addf %1, %9 : vector<64x1xf32>
    %c1 = arith.constant 1 : index
    %c0_9 = arith.constant 0 : index
    %c0_10 = arith.constant 0 : index
    %11 = vector.load %arg0[%c1, %c0_9, %c0_10] : memref<2x256x256xf32, #tpu.memory_space<vmem>>, vector<1x256x256xf32>
    %12 = vector.shape_cast %11 : vector<1x256x256xf32> to vector<256x256xf32>
    %cst_11 = arith.constant dense<0.000000e+00> : vector<64x256xf32>
    %13 = tpu.matmul %0, %12, %cst_11 {dimension_numbers = #tpu.dot_dimension_numbers<[1], [0], [0], [1], [0, 0, 1, 1], [], []>, precision = #tpu.contract_precision<fp32>} : vector<64x256xf32>, vector<256x256xf32>, vector<64x256xf32> -> vector<64x256xf32>
    %c1_12 = arith.constant 1 : index
    %c0_13 = arith.constant 0 : index
    %c0_14 = arith.constant 0 : index
    %14 = vector.load %arg4[%c1_12, %c0_13, %c0_14] : memref<2x64x256xf32, #tpu.memory_space<vmem>>, vector<1x64x256xf32>
    %15 = vector.shape_cast %14 : vector<1x64x256xf32> to vector<64x256xf32>
    %16 = vector.shape_cast %13 : vector<64x256xf32> to vector<1x64x256xf32>
    tpu.vector_store %arg4[%c1_12, %c0_13, %c0_14], %16 {strides = array<i32>} : memref<2x64x256xf32, #tpu.memory_space<vmem>>, vector<1x64x256xf32>,
    %cst_15 = arith.constant dense<0.000000e+00> : vector<64xf32>
    %17 = vector.multi_reduction <add>, %13, %cst_15 [1] : vector<64x256xf32> to vector<64xf32>
    %18 = vector.shape_cast %17 : vector<64xf32> to vector<64x1xf32>
    %19 = arith.addf %10, %18 : vector<64x1xf32>
    %cst_16 = arith.constant 0.001953125 : f32
    %20 = vector.broadcast %cst_16 : f32 to vector<64x1xf32>
    %21 = arith.mulf %19, %20 : vector<64x1xf32>
    %cst_17 = arith.constant 0.000000e+00 : f32
    %22 = vector.broadcast %cst_17 : f32 to vector<64x1xf32>
    %c0_18 = arith.constant 0 : index
    %c0_19 = arith.constant 0 : index
    %c0_20 = arith.constant 0 : index
    %23 = vector.load %arg4[%c0_18, %c0_19, %c0_20] : memref<2x64x256xf32, #tpu.memory_space<vmem>>, vector<1x64x256xf32>
    %24 = vector.shape_cast %23 : vector<1x64x256xf32> to vector<64x256xf32>
    %25 = vector.broadcast %21 : vector<64x1xf32> to vector<64x256xf32>
    %26 = arith.subf %24, %25 : vector<64x256xf32>
    %27 = arith.mulf %26, %26 : vector<64x256xf32>
    %cst_21 = arith.constant dense<0.000000e+00> : vector<64xf32>
    %28 = vector.multi_reduction <add>, %27, %cst_21 [1] : vector<64x256xf32> to vector<64xf32>
    %29 = vector.shape_cast %28 : vector<64xf32> to vector<64x1xf32>
    %30 = arith.addf %22, %29 : vector<64x1xf32>
    %c1_22 = arith.constant 1 : index
    %c0_23 = arith.constant 0 : index
    %c0_24 = arith.constant 0 : index
    %31 = vector.load %arg4[%c1_22, %c0_23, %c0_24] : memref<2x64x256xf32, #tpu.memory_space<vmem>>, vector<1x64x256xf32>
    %32 = vector.shape_cast %31 : vector<1x64x256xf32> to vector<64x256xf32>
    %33 = vector.broadcast %21 : vector<64x1xf32> to vector<64x256xf32>
    %34 = arith.subf %32, %33 : vector<64x256xf32>
    %35 = arith.mulf %34, %34 : vector<64x256xf32>
    %cst_25 = arith.constant dense<0.000000e+00> : vector<64xf32>
    %36 = vector.multi_reduction <add>, %35, %cst_25 [1] : vector<64x256xf32> to vector<64xf32>
    %37 = vector.shape_cast %36 : vector<64xf32> to vector<64x1xf32>
    %38 = arith.addf %30, %37 : vector<64x1xf32>
    %cst_26 = arith.constant 0.001953125 : f32
    %39 = vector.broadcast %cst_26 : f32 to vector<64x1xf32>
    %40 = arith.mulf %38, %39 : vector<64x1xf32>
    %c0_27 = arith.constant 0 : index
    %c0_28 = arith.constant 0 : index
    %41 = vector.load %arg2[%c0_27, %c0_28] : memref<64x1xf32, #tpu.memory_space<vmem>>, vector<64x1xf32>
    %cst_29 = arith.constant 1.000000e-03 : f32
    %42 = vector.broadcast %cst_29 : f32 to vector<64x1xf32>
    %43 = arith.addf %40, %42 : vector<64x1xf32>
    %44 = math.rsqrt %43 : vector<64x1xf32>
    %45 = arith.mulf %41, %44 : vector<64x1xf32>
    %c0_30 = arith.constant 0 : index
    %c0_31 = arith.constant 0 : index
    %46 = vector.load %arg3[%c0_30, %c0_31] : memref<64x1xf32, #tpu.memory_space<vmem>>, vector<64x1xf32>
    %47 = arith.mulf %21, %45 : vector<64x1xf32>
    %48 = arith.subf %46, %47 : vector<64x1xf32>
    %49 = vector.shape_cast %45 : vector<64x1xf32> to vector<64x1xf32>
    %50 = vector.broadcast %49 : vector<64x1xf32> to vector<64x256xf32>
    %51 = vector.shape_cast %48 : vector<64x1xf32> to vector<64x1xf32>
    %52 = vector.broadcast %51 : vector<64x1xf32> to vector<64x256xf32>
    %c0_32 = arith.constant 0 : index
    %c0_33 = arith.constant 0 : index
    %c0_34 = arith.constant 0 : index
    %53 = vector.load %arg4[%c0_32, %c0_33, %c0_34] : memref<2x64x256xf32, #tpu.memory_space<vmem>>, vector<1x64x256xf32>
    %54 = vector.shape_cast %53 : vector<1x64x256xf32> to vector<64x256xf32>
    %55 = arith.mulf %54, %50 : vector<64x256xf32>
    %56 = arith.addf %55, %52 : vector<64x256xf32>
    %cst_35 = arith.constant 0.000000e+00 : f32
    %57 = vector.broadcast %cst_35 : f32 to vector<64x256xf32>
    %58 = arith.maximumf %56, %57 : vector<64x256xf32>
    %c0_36 = arith.constant 0 : index
    %c0_37 = arith.constant 0 : index
    %c0_38 = arith.constant 0 : index
    %59 = vector.load %arg4[%c0_36, %c0_37, %c0_38] : memref<2x64x256xf32, #tpu.memory_space<vmem>>, vector<1x64x256xf32>
    %60 = vector.shape_cast %59 : vector<1x64x256xf32> to vector<64x256xf32>
    %61 = vector.shape_cast %58 : vector<64x256xf32> to vector<1x64x256xf32>
    tpu.vector_store %arg4[%c0_36, %c0_37, %c0_38], %61 {strides = array<i32>} : memref<2x64x256xf32, #tpu.memory_space<vmem>>, vector<1x64x256xf32>,
    %c1_39 = arith.constant 1 : index
    %c0_40 = arith.constant 0 : index
    %c0_41 = arith.constant 0 : index
    %62 = vector.load %arg4[%c1_39, %c0_40, %c0_41] : memref<2x64x256xf32, #tpu.memory_space<vmem>>, vector<1x64x256xf32>
    %63 = vector.shape_cast %62 : vector<1x64x256xf32> to vector<64x256xf32>
    %64 = arith.mulf %63, %50 : vector<64x256xf32>
    %65 = arith.addf %64, %52 : vector<64x256xf32>
    %cst_42 = arith.constant 0.000000e+00 : f32
    %66 = vector.broadcast %cst_42 : f32 to vector<64x256xf32>
    %67 = arith.maximumf %65, %66 : vector<64x256xf32>
    %c1_43 = arith.constant 1 : index
    %c0_44 = arith.constant 0 : index
    %c0_45 = arith.constant 0 : index
    %68 = vector.load %arg4[%c1_43, %c0_44, %c0_45] : memref<2x64x256xf32, #tpu.memory_space<vmem>>, vector<1x64x256xf32>
    %69 = vector.shape_cast %68 : vector<1x64x256xf32> to vector<64x256xf32>
    %70 = vector.shape_cast %67 : vector<64x256xf32> to vector<1x64x256xf32>
    tpu.vector_store %arg4[%c1_43, %c0_44, %c0_45], %70 {strides = array<i32>} : memref<2x64x256xf32, #tpu.memory_space<vmem>>, vector<1x64x256xf32>,
    return
  }
}

</mosaic_0001>

<bundles_post_ra>
// kernel: tpu_custom_call.1
= control target key start
LH: loop header
LB: loop body
LE: loop exit
PB: predicated region body
PF: predicated region fallthrough
CT: control target
= control target key end

     0   :  { %9 = vsyncpa [#allocation3], 0  ;;  %s7406_s0 = inlined_call_operand.hbm [shape: f32[2,256,256], index: 0, kind: input, shape index: {}]   ;;  %s7407_s1 = inlined_call_operand.vmem [shape: f32[64,256], index: 1, kind: input, shape index: {}]   ;;  %s7408_s2 = inlined_call_operand.vmem [shape: f32[64,1], index: 2, kind: input, shape index: {}]   ;;  %s7409_s3 = inlined_call_operand.vmem [shape: f32[64,1], index: 3, kind: input, shape index: {}]   ;;  %s7410_s4 = inlined_call_operand.hbm [shape: f32[2,64,256], index: 4, kind: output, shape index: {}]  }
   0x1   :  { %10 = vsyncpa [#allocation4], 0  ;;  %s5182_s15 = smov [#allocation2]   ;;  %s5134_s19 = scalar_lea.hbm %s7406_s0, 16384 }
   0x2   :  { %s16_s16 = sshll.u32 %s5182_s15, 4  ;;  %p5135_p0 = scmp.ne.s32.totalorder %s7406_s0, %s5134_s19  ;;  %s17_s16 = int_to_ptr.vmem [resolvable:$true] %s16_s16 }
   0x3   :  { %p5138_p1 = scmp.lt.u32.totalorder %s5134_s19, %s7406_s0 }
   0x5   :  { %p5140_p2 = pnand %p5138_p1, %p5135_p0 }
   0x7   :  { %5143 = shalt.err (!%p5140_p2)
}
   0x8   :  { %s5144_s24 = scalar_lea.vmem %s17_s16, 16384  ;;  %p5149_p4 = scmp.lt.s32.totalorder %s17_s16, %s17_s16 }
   0x9   :  { %p5145_p3 = scmp.ne.s32.totalorder %s17_s16, %s5144_s24  ;;  %p5150_p5 = scmp.lt.s32.totalorder %s5144_s24, %s5144_s24 }
   0xb   :  { %p5151_p6 = por %p5150_p5, %p5149_p4 }
   0xd   :  { %p5152_p7 = pnand %p5151_p6, %p5145_p3 }
   0xf   :  { %5155 = shalt.err (!%p5152_p7)
}
  0x10   :  { %s5183_s25 = smov 256   ;;  %s5184_s26 = smov 16  }
  0x11   :  { %22 = dma.hbm_to_vmem [thread:$0]  %s7406_s0, 16384, %s17_s16, [#allocation3], %s5183_s25, %s5183_s25, %s5184_s26  }
  0x12   :  { %5178 = dma.done.wait [#allocation3], 16384  }
  0x13   :  { %5179 = vsyncadd [#allocation3], 4294950912  ;;  %v49_v0 = vld [vmem:[#allocation2 + $0x8] sm:$0xff]  ;;  %v51_v1 = vld [vmem:[#allocation2 + $0x18] sm:$0xff] }
  0x14   :  { %v1880_v2 = vld [vmem:[#allocation2 + $0x208] sm:$0xff]  ;;  %v112_v3 = vand.u32 4294901760, %v49_v0  ;;  %v116_v4 = vand.u32 4294901760, %v51_v1  ;;  %v1882_v5 = vld [vmem:[#allocation2 + $0x218] sm:$0xff]  ;;  %v48_v7 = vld [vmem:[#allocation2] sm:$0xff] }
  0x15   :  { %v1943_v6 = vand.u32 4294901760, %v1880_v2  ;;  %v50_v8 = vld [vmem:[#allocation2 + $0x10] sm:$0xff]  ;;  %v1947_v9 = vand.u32 4294901760, %v1882_v5  ;;  %v114_v10 = vand.u32 4294901760, %v48_v7  ;;  %v1879_v12 = vld [vmem:[#allocation2 + $0x200] sm:$0xff]  ;;  %v53_v14 = vld [vmem:[#allocation2 + $0x28] sm:$0xff] }
  0x16   :  { %v118_v11 = vand.u32 4294901760, %v50_v8  ;;  %v1881_v13 = vld [vmem:[#allocation2 + $0x210] sm:$0xff]  ;;  %v5227_v15 = vpack.c.bf16 %v116_v4, %v112_v3  ;;  %v5229_v16 = vsub.f32 %v49_v0, %v112_v3  ;;  %v5231_v17 = vsub.f32 %v51_v1, %v116_v4  ;;  %v55_v19 = vld [vmem:[#allocation2 + $0x38] sm:$0xff]  ;;  %v1884_v20 = vld [vmem:[#allocation2 + $0x228] sm:$0xff] }
  0x17   :  { %v5233_v18 = vsub.f32 %v1880_v2, %v1943_v6  ;;  %v1886_v21 = vld [vmem:[#allocation2 + $0x238] sm:$0xff]  ;;  %v5235_v22 = vpack.c.bf16 %v1947_v9, %v1943_v6  ;;  %v5237_v23 = vsub.f32 %v1882_v5, %v1947_v9  ;;  %v5241_v25 = vsub.f32 %v48_v7, %v114_v10  ;;  %v52_v26 = vld [vmem:[#allocation2 + $0x20] sm:$0xff]  ;;  %v54_v31 = vld [vmem:[#allocation2 + $0x30] sm:$0xff] }
  0x18   :  { %7988 = vst [vmem:[#allocation8_spill] sm:$0xff] %v5227_v15  ;;  %7989 = vst [vmem:[#allocation9_spill] sm:$0xff] %v5231_v17  ;;  %v5239_v24 = vpack.c.bf16 %v118_v11, %v114_v10  ;;  %4184 = vmatprep.subr.bf16.mxu0 %v5227_v15  ;;  %v5244_v27 = vsub.f32 %v50_v8, %v118_v11  ;;  %v1945_v28 = vand.u32 4294901760, %v1879_v12  ;;  %v1949_v29 = vand.u32 4294901760, %v1881_v13  ;;  %v1883_v36 = vld [vmem:[#allocation2 + $0x220] sm:$0xff]  ;;  %v1885_v37 = vld [vmem:[#allocation2 + $0x230] sm:$0xff] }
  0x19   :  { %7990 = vst [vmem:[#allocation10_spill] sm:$0xff] %v5233_v18  ;;  %7991 = vst [vmem:[#allocation11_spill] sm:$0xff] %v5235_v22  ;;  %v120_v30 = vand.u32 4294901760, %v53_v14  ;;  %4568 = vmatprep.subr.bf16.mxu1 %v5235_v22  ;;  %v124_v32 = vand.u32 4294901760, %v55_v19  ;;  %v1951_v33 = vand.u32 4294901760, %v1884_v20  ;;  %v1955_v34 = vand.u32 4294901760, %v1886_v21 }
  0x1a   :  { %7992 = vst [vmem:[#allocation12_spill] sm:$0xff] %v5237_v23  ;;  %7993 = vst [vmem:[#allocation13_spill] sm:$0xff] %v5239_v24  ;;  %4186 = vmatpush1.bf16.msra.mxu0 %v5239_v24  ;;  %v122_v35 = vand.u32 4294901760, %v52_v26  ;;  %v5248_v38 = vpack.c.bf16 %v1949_v29, %v1945_v28  ;;  %v5250_v39 = vsub.f32 %v1879_v12, %v1945_v28  ;;  %v57_v42 = vld [vmem:[#allocation2 + $0x48] sm:$0xff]  ;;  %v59_v43 = vld [vmem:[#allocation2 + $0x58] sm:$0xff]  ;;  %v126_v51 = vand.u32 4294901760, %v54_v31 }
  0x1b   :  { %7994 = vst [vmem:[#allocation14_spill] sm:$0xff] %v5241_v25  ;;  %7995 = vst [vmem:[#allocation15_spill] sm:$0xff] %v5244_v27  ;;  %v5252_v40 = vsub.f32 %v1881_v13, %v1949_v29  ;;  %v5254_v41 = vsub.f32 %v53_v14, %v120_v30  ;;  %v1888_v44 = vld [vmem:[#allocation2 + $0x248] sm:$0xff]  ;;  %v5256_v45 = vpack.c.bf16 %v124_v32, %v120_v30  ;;  %v1890_v49 = vld [vmem:[#allocation2 + $0x258] sm:$0xff]  ;;  %v1953_v53 = vand.u32 4294901760, %v1883_v36 }
  0x1c   :  { %7996 = vst [vmem:[#allocation16_spill] sm:$0xff] %v5248_v38  ;;  %7997 = vst [vmem:[#allocation17_spill] sm:$0xff] %v5250_v39  ;;  %v5258_v46 = vsub.f32 %v55_v19, %v124_v32  ;;  %v5260_v47 = vpack.c.bf16 %v1955_v34, %v1951_v33  ;;  %v5262_v48 = vsub.f32 %v1884_v20, %v1951_v33  ;;  %4570 = vmatpush1.bf16.msra.mxu1 %v5248_v38  ;;  %v56_v58 = vld [vmem:[#allocation2 + $0x40] sm:$0xff]  ;;  %v58_v59 = vld [vmem:[#allocation2 + $0x50] sm:$0xff] }
  0x1d   :  { %7998 = vst [vmem:[#allocation18_spill] sm:$0xff] %v5252_v40  ;;  %7999 = vst [vmem:[#allocation19_spill] sm:$0xff] %v5254_v41  ;;  %v5265_v50 = vsub.f32 %v1886_v21, %v1955_v34  ;;  %v5267_v52 = vsub.f32 %v52_v26, %v122_v35  ;;  %4188 = vmatprep.subr.bf16.mxu0 %v5256_v45  ;;  %v1957_v54 = vand.u32 4294901760, %v1885_v37  ;;  %v128_v55 = vand.u32 4294901760, %v57_v42  ;;  %v1887_v0 = vld [vmem:[#allocation2 + $0x240] sm:$0xff]  ;;  %v1889_v1 = vld [vmem:[#allocation2 + $0x250] sm:$0xff] }
  0x1e   :  { %8000 = vst [vmem:[#allocation20_spill] sm:$0xff] %v5256_v45  ;;  %8001 = vst [vmem:[#allocation21_spill] sm:$0xff] %v5258_v46  ;;  %4572 = vmatprep.subr.bf16.mxu1 %v5260_v47  ;;  %v132_v56 = vand.u32 4294901760, %v59_v43  ;;  %v1959_v57 = vand.u32 4294901760, %v1888_v44  ;;  %v5271_v60 = vpack.c.bf16 %v126_v51, %v122_v35  ;;  %v5273_v61 = vsub.f32 %v54_v31, %v126_v51  ;;  %v61_v2 = vld [vmem:[#allocation2 + $0x68] sm:$0xff]  ;;  %v63_v7 = vld [vmem:[#allocation2 + $0x78] sm:$0xff] }
  0x1f   :  { %8002 = vst [vmem:[#allocation22_spill] sm:$0xff] %v5260_v47  ;;  %8003 = vst [vmem:[#allocation23_spill] sm:$0xff] %v5262_v48  ;;  %v5275_v62 = vsub.f32 %v1883_v36, %v1953_v53  ;;  %v1963_v63 = vand.u32 4294901760, %v1890_v49  ;;  %v5277_v3 = vpack.c.bf16 %v1957_v54, %v1953_v53  ;;  %v5279_v4 = vsub.f32 %v1885_v37, %v1957_v54  ;;  %v1892_v8 = vld [vmem:[#allocation2 + $0x268] sm:$0xff]  ;;  %v1894_v9 = vld [vmem:[#allocation2 + $0x278] sm:$0xff] }
  0x20   :  { %8004 = vst [vmem:[#allocation24_spill] sm:$0xff] %v5265_v50  ;;  %8005 = vst [vmem:[#allocation25_spill] sm:$0xff] %v5267_v52  ;;  %v5281_v5 = vpack.c.bf16 %v132_v56, %v128_v55  ;;  %v5283_v6 = vsub.f32 %v57_v42, %v128_v55  ;;  %4190 = vmatpush1.bf16.msra.mxu0 %v5271_v60  ;;  %v5286_v10 = vsub.f32 %v59_v43, %v132_v56  ;;  %v60_v31 = vld [vmem:[#allocation2 + $0x60] sm:$0xff]  ;;  %v62_v36 = vld [vmem:[#allocation2 + $0x70] sm:$0xff] }
  0x21   :  { %8006 = vst [vmem:[#allocation26_spill] sm:$0xff] %v5271_v60  ;;  %8007 = vst [vmem:[#allocation27_spill] sm:$0xff] %v5273_v61  ;;  %v5288_v11 = vpack.c.bf16 %v1963_v63, %v1959_v57  ;;  %v5290_v12 = vsub.f32 %v1888_v44, %v1959_v57  ;;  %v5292_v13 = vsub.f32 %v1890_v49, %v1963_v63  ;;  %4574 = vmatpush1.bf16.msra.mxu1 %v5277_v3  ;;  %v1891_v37 = vld [vmem:[#allocation2 + $0x260] sm:$0xff]  ;;  %v1893_v42 = vld [vmem:[#allocation2 + $0x270] sm:$0xff] }
  0x22   :  { %8008 = vst [vmem:[#allocation28_spill] sm:$0xff] %v5275_v62  ;;  %8009 = vst [vmem:[#allocation29_spill] sm:$0xff] %v5277_v3  ;;  %4192 = vmatprep.subr.bf16.mxu0 %v5281_v5  ;;  %v130_v14 = vand.u32 4294901760, %v56_v58  ;;  %v134_v19 = vand.u32 4294901760, %v58_v59  ;;  %v1961_v20 = vand.u32 4294901760, %v1887_v0  ;;  %v1965_v21 = vand.u32 4294901760, %v1889_v1 }
  0x23   :  { %8010 = vst [vmem:[#allocation30_spill] sm:$0xff] %v5279_v4  ;;  %8011 = vst [vmem:[#allocation31_spill] sm:$0xff] %v5281_v5  ;;  %4576 = vmatprep.subr.bf16.mxu1 %v5288_v11  ;;  %v136_v26 = vand.u32 4294901760, %v61_v2  ;;  %v140_v28 = vand.u32 4294901760, %v63_v7  ;;  %v1967_v29 = vand.u32 4294901760, %v1892_v8  ;;  %v1971_v30 = vand.u32 4294901760, %v1894_v9 }
  0x24   :  { %8012 = vst [vmem:[#allocation32_spill] sm:$0xff] %v5283_v6  ;;  %8013 = vst [vmem:[#allocation33_spill] sm:$0xff] %v5286_v10  ;;  %v5297_v32 = vpack.c.bf16 %v134_v19, %v130_v14  ;;  %v5299_v33 = vsub.f32 %v56_v58, %v130_v14  ;;  %v5301_v34 = vsub.f32 %v58_v59, %v134_v19  ;;  %v65_v53 = vld [vmem:[#allocation2 + $0x88] sm:$0xff]  ;;  %v67_v54 = vld [vmem:[#allocation2 + $0x98] sm:$0xff]  ;;  %v138_v59 = vand.u32 4294901760, %v60_v31 }
  0x25   :  { %8014 = vst [vmem:[#allocation34_spill] sm:$0xff] %v5288_v11  ;;  %8015 = vst [vmem:[#allocation35_spill] sm:$0xff] %v5290_v12  ;;  %v5303_v35 = vpack.c.bf16 %v1965_v21, %v1961_v20  ;;  %v5305_v43 = vsub.f32 %v1887_v0, %v1961_v20  ;;  %v5307_v44 = vsub.f32 %v1889_v1, %v1965_v21  ;;  %v1896_v55 = vld [vmem:[#allocation2 + $0x288] sm:$0xff]  ;;  %v142_v0 = vand.u32 4294901760, %v62_v36  ;;  %v1898_v14 = vld [vmem:[#allocation2 + $0x298] sm:$0xff] }
  0x26   :  { %8016 = vst [vmem:[#allocation36_spill] sm:$0xff] %v5292_v13  ;;  %8017 = vst [vmem:[#allocation37_spill] sm:$0xff] %v5297_v32  ;;  %v5309_v49 = vpack.c.bf16 %v140_v28, %v136_v26  ;;  %v5311_v51 = vsub.f32 %v61_v2, %v136_v26  ;;  %4194 = vmatpush1.bf16.msra.mxu0 %v5297_v32  ;;  %v5315_v56 = vsub.f32 %v63_v7, %v140_v28  ;;  %v64_v26 = vld [vmem:[#allocation2 + $0x80] sm:$0xff]  ;;  %v66_v28 = vld [vmem:[#allocation2 + $0x90] sm:$0xff] }
  0x27   :  { %8018 = vst [vmem:[#allocation38_spill] sm:$0xff] %v5299_v33  ;;  %8019 = vst [vmem:[#allocation39_spill] sm:$0xff] %v5301_v34  ;;  %4578 = vmatpush1.bf16.msra.mxu1 %v5303_v35  ;;  %v5317_v57 = vpack.c.bf16 %v1971_v30, %v1967_v29  ;;  %v5319_v58 = vsub.f32 %v1892_v8, %v1967_v29  ;;  %v5322_v63 = vsub.f32 %v1894_v9, %v1971_v30  ;;  %v1895_v8 = vld [vmem:[#allocation2 + $0x280] sm:$0xff]  ;;  %v69_v32 = vld [vmem:[#allocation2 + $0xa8] sm:$0xff] }
  0x28   :  { %8020 = vst [vmem:[#allocation40_spill] sm:$0xff] %v5303_v35  ;;  %8021 = vst [vmem:[#allocation41_spill] sm:$0xff] %v5305_v43  ;;  %4196 = vmatprep.subr.bf16.mxu0 %v5309_v49  ;;  %v1969_v1 = vand.u32 4294901760, %v1891_v37  ;;  %v1973_v2 = vand.u32 4294901760, %v1893_v42  ;;  %v5325_v19 = vsub.f32 %v60_v31, %v138_v59  ;;  %v144_v20 = vand.u32 4294901760, %v65_v53  ;;  %v71_v11 = vld [vmem:[#allocation2 + $0xb8] sm:$0xff] }
  0x29   :  { %8022 = vst [vmem:[#allocation42_spill] sm:$0xff] %v5307_v44  ;;  %8023 = vst [vmem:[#allocation43_spill] sm:$0xff] %v5309_v49  ;;  %4580 = vmatprep.subr.bf16.mxu1 %v5317_v57  ;;  %v148_v7 = vand.u32 4294901760, %v67_v54  ;;  %v1975_v21 = vand.u32 4294901760, %v1896_v55  ;;  %v5327_v29 = vpack.c.bf16 %v142_v0, %v138_v59  ;;  %v5329_v35 = vsub.f32 %v62_v36, %v142_v0  ;;  %v1897_v49 = vld [vmem:[#allocation2 + $0x290] sm:$0xff]  ;;  %v1900_v47 = vld [vmem:[#allocation2 + $0x2a8] sm:$0xff] }
  0x2a   :  { %8024 = vst [vmem:[#allocation44_spill] sm:$0xff] %v5311_v51  ;;  %8025 = vst [vmem:[#allocation45_spill] sm:$0xff] %v5315_v56  ;;  %v5331_v9 = vpack.c.bf16 %v1973_v2, %v1969_v1  ;;  %v5333_v30 = vsub.f32 %v1891_v37, %v1969_v1  ;;  %v5339_v5 = vsub.f32 %v65_v53, %v144_v20  ;;  %v1979_v36 = vand.u32 4294901760, %v1898_v14  ;;  %v1902_v53 = vld [vmem:[#allocation2 + $0x2b8] sm:$0xff]  ;;  %v1899_v45 = vld [vmem:[#allocation2 + $0x2a0] sm:$0xff] }
  0x2b   :  { %8026 = vst [vmem:[#allocation46_spill] sm:$0xff] %v5317_v57  ;;  %8027 = vst [vmem:[#allocation47_spill] sm:$0xff] %v5319_v58  ;;  %v5335_v57 = vsub.f32 %v1893_v42, %v1973_v2  ;;  %v5337_v31 = vpack.c.bf16 %v148_v7, %v144_v20  ;;  %v5341_v3 = vsub.f32 %v67_v54, %v148_v7  ;;  %4198 = vmatpush1.bf16.msra.mxu0 %v5327_v29  ;;  %v1901_v15 = vld [vmem:[#allocation2 + $0x2b0] sm:$0xff] }
  0x2c   :  { %8028 = vst [vmem:[#allocation48_spill] sm:$0xff] %v5322_v63  ;;  %8029 = vst [vmem:[#allocation49_spill] sm:$0xff] %v5325_v19  ;;  %4582 = vmatpush1.bf16.msra.mxu1 %v5331_v9  ;;  %v5345_v59 = vsub.f32 %v1896_v55, %v1975_v21  ;;  %v146_v37 = vand.u32 4294901760, %v64_v26  ;;  %v150_v0 = vand.u32 4294901760, %v66_v28  ;;  %v1977_v1 = vand.u32 4294901760, %v1895_v8  ;;  %v68_v55 = vld [vmem:[#allocation2 + $0xa0] sm:$0xff] }
  0x2d   :  { %8030 = vst [vmem:[#allocation50_spill] sm:$0xff] %v5327_v29  ;;  %8031 = vst [vmem:[#allocation51_spill] sm:$0xff] %v5329_v35  ;;  %4200 = vmatprep.subr.bf16.mxu0 %v5337_v31  ;;  %v1981_v42 = vand.u32 4294901760, %v1897_v49  ;;  %v152_v2 = vand.u32 4294901760, %v69_v32  ;;  %v156_v60 = vand.u32 4294901760, %v71_v11  ;;  %v5348_v20 = vpack.c.bf16 %v1979_v36, %v1975_v21  ;;  %v70_v29 = vld [vmem:[#allocation2 + $0xb0] sm:$0xff] }
  0x2e   :  { %8032 = vst [vmem:[#allocation52_spill] sm:$0xff] %v5331_v9  ;;  %8033 = vst [vmem:[#allocation53_spill] sm:$0xff] %v5333_v30  ;;  %v5350_v54 = vsub.f32 %v1898_v14, %v1979_v36  ;;  %v5352_v7 = vpack.c.bf16 %v150_v0, %v146_v37  ;;  %v5354_v9 = vsub.f32 %v64_v26, %v146_v37  ;;  %v73_v21 = vld [vmem:[#allocation2 + $0xc8] sm:$0xff]  ;;  %v154_v37 = vand.u32 4294901760, %v68_v55 }
  0x2f   :  { %8034 = vst [vmem:[#allocation54_spill] sm:$0xff] %v5335_v57  ;;  %8035 = vst [vmem:[#allocation55_spill] sm:$0xff] %v5337_v31  ;;  %v5356_v38 = vsub.f32 %v66_v28, %v150_v0  ;;  %v5358_v31 = vpack.c.bf16 %v1981_v42, %v1977_v1  ;;  %v5360_v24 = vsub.f32 %v1895_v8, %v1977_v1  ;;  %4584 = vmatprep.subr.bf16.mxu1 %v5348_v20 }
  0x30   :  { %8036 = vst [vmem:[#allocation56_spill] sm:$0xff] %v5339_v5  ;;  %8037 = vst [vmem:[#allocation57_spill] sm:$0xff] %v5341_v3  ;;  %v5362_v22 = vsub.f32 %v1897_v49, %v1981_v42  ;;  %4202 = vmatpush1.bf16.msra.mxu0 %v5352_v7  ;;  %v5366_v14 = vpack.c.bf16 %v156_v60, %v152_v2  ;;  %v5368_v26 = vsub.f32 %v69_v32, %v152_v2 }
  0x31   :  { %8038 = vst [vmem:[#allocation58_spill] sm:$0xff] %v5345_v59  ;;  %8039 = vst [vmem:[#allocation59_spill] sm:$0xff] %v5348_v20  ;;  %v75_v59 = vld [vmem:[#allocation2 + $0xd8] sm:$0xff]  ;;  %v5370_v36 = vsub.f32 %v71_v11, %v156_v60  ;;  %v1983_v28 = vand.u32 4294901760, %v1900_v47  ;;  %4586 = vmatpush1.bf16.msra.mxu1 %v5358_v31  ;;  %v1987_v8 = vand.u32 4294901760, %v1902_v53  ;;  %v158_v49 = vand.u32 4294901760, %v70_v29 }
  0x32   :  { %8040 = vst [vmem:[#allocation60_spill] sm:$0xff] %v5350_v54  ;;  %8041 = vst [vmem:[#allocation61_spill] sm:$0xff] %v5352_v7  ;;  %v1985_v0 = vand.u32 4294901760, %v1899_v45  ;;  %4204 = vmatprep.subr.bf16.mxu0 %v5366_v14  ;;  %v1989_v42 = vand.u32 4294901760, %v1901_v15  ;;  %v160_v20 = vand.u32 4294901760, %v73_v21  ;;  %v164_v7 = vand.u32 4294901760, %v75_v59 }
  0x33   :  { %8042 = vst [vmem:[#allocation62_spill] sm:$0xff] %v5354_v9  ;;  %8043 = vst [vmem:[#allocation63_spill] sm:$0xff] %v5356_v38  ;;  %v5374_v1 = vsub.f32 %v1900_v47, %v1983_v28  ;;  %v5376_v32 = vpack.c.bf16 %v1987_v8, %v1983_v28  ;;  %v5378_v60 = vsub.f32 %v1902_v53, %v1987_v8  ;;  %v1905_v9 = vld [vmem:[#allocation2 + $0x2d0] sm:$0xff]  ;;  %v77_v28 = vld [vmem:[#allocation2 + $0xe8] sm:$0xff] }
  0x34   :  { %8044 = vst [vmem:[#allocation64_spill] sm:$0xff] %v5358_v31  ;;  %8045 = vst [vmem:[#allocation65_spill] sm:$0xff] %v5360_v24  ;;  %v1906_v24 = vld [vmem:[#allocation2 + $0x2d8] sm:$0xff]  ;;  %v5380_v11 = vpack.c.bf16 %v158_v49, %v154_v37  ;;  %v5382_v2 = vsub.f32 %v68_v55, %v154_v37  ;;  %v72_v31 = vld [vmem:[#allocation2 + $0xc0] sm:$0xff]  ;;  %v5384_v38 = vsub.f32 %v70_v29, %v158_v49 }
  0x35   :  { %8046 = vst [vmem:[#allocation66_spill] sm:$0xff] %v5362_v22  ;;  %8047 = vst [vmem:[#allocation67_spill] sm:$0xff] %v5366_v14  ;;  %v1904_v22 = vld [vmem:[#allocation2 + $0x2c8] sm:$0xff]  ;;  %v5386_v47 = vpack.c.bf16 %v1989_v42, %v1985_v0  ;;  %v5388_v14 = vsub.f32 %v1899_v45, %v1985_v0  ;;  %v79_v54 = vld [vmem:[#allocation2 + $0xf8] sm:$0xff]  ;;  %4588 = vmatprep.subr.bf16.mxu1 %v5376_v32  ;;  %v5394_v53 = vpack.c.bf16 %v164_v7, %v160_v20 }
  0x36   :  { %8048 = vst [vmem:[#allocation68_spill] sm:$0xff] %v5368_v26  ;;  %8049 = vst [vmem:[#allocation69_spill] sm:$0xff] %v5370_v36  ;;  %v74_v36 = vld [vmem:[#allocation2 + $0xd0] sm:$0xff]  ;;  %v1903_v26 = vld [vmem:[#allocation2 + $0x2c0] sm:$0xff]  ;;  %4206 = vmatpush1.bf16.msra.mxu0 %v5380_v11  ;;  %v5396_v55 = vsub.f32 %v73_v21, %v160_v20  ;;  %v5398_v8 = vsub.f32 %v75_v59, %v164_v7  ;;  %v1991_v29 = vand.u32 4294901760, %v1904_v22  ;;  %v1995_v45 = vand.u32 4294901760, %v1906_v24 }
  0x37   :  { %8050 = vst [vmem:[#allocation70_spill] sm:$0xff] %v5374_v1  ;;  %8051 = vst [vmem:[#allocation71_spill] sm:$0xff] %v5376_v32  ;;  %v5390_v1 = vsub.f32 %v1901_v15, %v1989_v42  ;;  %4590 = vmatpush1.bf16.msra.mxu1 %v5386_v47  ;;  %v162_v37 = vand.u32 4294901760, %v72_v31  ;;  %v166_v15 = vand.u32 4294901760, %v74_v36  ;;  %v1993_v49 = vand.u32 4294901760, %v1903_v26  ;;  %4208 = vmatprep.subr.bf16.mxu0 %v5394_v53 }
  0x38   :  { %8052 = vst [vmem:[#allocation72_spill] sm:$0xff] %v5378_v60  ;;  %8053 = vst [vmem:[#allocation73_spill] sm:$0xff] %v5380_v11  ;;  %v5402_v0 = vsub.f32 %v1904_v22, %v1991_v29  ;;  %v1997_v42 = vand.u32 4294901760, %v1905_v9  ;;  %v168_v32 = vand.u32 4294901760, %v77_v28  ;;  %v172_v11 = vand.u32 4294901760, %v79_v54  ;;  %v83_v60 = vld [vmem:[#allocation2 + $0x118] sm:$0xff] }
  0x39   :  { %8054 = vst [vmem:[#allocation74_spill] sm:$0xff] %v5382_v2  ;;  %8055 = vst [vmem:[#allocation75_spill] sm:$0xff] %v5384_v38  ;;  %v5404_v20 = vpack.c.bf16 %v1995_v45, %v1991_v29  ;;  %v5406_v59 = vsub.f32 %v1906_v24, %v1995_v45  ;;  %v5408_v7 = vpack.c.bf16 %v166_v15, %v162_v37  ;;  %v1909_v2 = vld [vmem:[#allocation2 + $0x2f0] sm:$0xff]  ;;  %v81_v29 = vld [vmem:[#allocation2 + $0x108] sm:$0xff] }
  0x3a   :  { %8056 = vst [vmem:[#allocation76_spill] sm:$0xff] %v5386_v47  ;;  %8057 = vst [vmem:[#allocation77_spill] sm:$0xff] %v5388_v14  ;;  %v1910_v14 = vld [vmem:[#allocation2 + $0x2f8] sm:$0xff]  ;;  %v5410_v21 = vsub.f32 %v72_v31, %v162_v37  ;;  %v76_v47 = vld [vmem:[#allocation2 + $0xe0] sm:$0xff]  ;;  %v5412_v38 = vsub.f32 %v74_v36, %v166_v15  ;;  %v5414_v22 = vpack.c.bf16 %v1997_v42, %v1993_v49 }
  0x3b   :  { %8058 = vst [vmem:[#allocation78_spill] sm:$0xff] %v5390_v1  ;;  %8059 = vst [vmem:[#allocation79_spill] sm:$0xff] %v5394_v53  ;;  %v1908_v1 = vld [vmem:[#allocation2 + $0x2e8] sm:$0xff]  ;;  %v5416_v53 = vsub.f32 %v1903_v26, %v1993_v49  ;;  %4592 = vmatprep.subr.bf16.mxu1 %v5404_v20  ;;  %4210 = vmatpush1.bf16.msra.mxu0 %v5408_v7  ;;  %v5422_v24 = vpack.c.bf16 %v172_v11, %v168_v32  ;;  %v2003_v26 = vand.u32 4294901760, %v1910_v14 }
  0x3c   :  { %8060 = vst [vmem:[#allocation80_spill] sm:$0xff] %v5396_v55  ;;  %8061 = vst [vmem:[#allocation81_spill] sm:$0xff] %v5398_v8  ;;  %v78_v8 = vld [vmem:[#allocation2 + $0xf0] sm:$0xff]  ;;  %v1907_v55 = vld [vmem:[#allocation2 + $0x2e0] sm:$0xff]  ;;  %v5424_v31 = vsub.f32 %v77_v28, %v168_v32  ;;  %v5426_v45 = vsub.f32 %v79_v54, %v172_v11  ;;  %v1999_v36 = vand.u32 4294901760, %v1908_v1  ;;  %4594 = vmatpush1.bf16.msra.mxu1 %v5414_v22  ;;  %v170_v37 = vand.u32 4294901760, %v76_v47 }
  0x3d   :  { %8062 = vst [vmem:[#allocation82_spill] sm:$0xff] %v5402_v0  ;;  %8063 = vst [vmem:[#allocation83_spill] sm:$0xff] %v5404_v20  ;;  %v5418_v0 = vsub.f32 %v1905_v9, %v1997_v42  ;;  %v174_v9 = vand.u32 4294901760, %v78_v8  ;;  %v2001_v15 = vand.u32 4294901760, %v1907_v55  ;;  %4212 = vmatprep.subr.bf16.mxu0 %v5422_v24  ;;  %v2005_v42 = vand.u32 4294901760, %v1909_v2 }
  0x3e   :  { %8064 = vst [vmem:[#allocation84_spill] sm:$0xff] %v5406_v59  ;;  %8065 = vst [vmem:[#allocation85_spill] sm:$0xff] %v5408_v7  ;;  %v5430_v49 = vsub.f32 %v1908_v1, %v1999_v36  ;;  %v176_v20 = vand.u32 4294901760, %v81_v29  ;;  %v180_v7 = vand.u32 4294901760, %v83_v60  ;;  %v5432_v32 = vpack.c.bf16 %v2003_v26, %v1999_v36  ;;  %v85_v36 = vld [vmem:[#allocation2 + $0x128] sm:$0xff]  ;;  %v87_v59 = vld [vmem:[#allocation2 + $0x138] sm:$0xff] }
  0x3f   :  { %8066 = vst [vmem:[#allocation86_spill] sm:$0xff] %v5410_v21  ;;  %8067 = vst [vmem:[#allocation87_spill] sm:$0xff] %v5412_v38  ;;  %v5434_v54 = vsub.f32 %v1910_v14, %v2003_v26  ;;  %v5436_v11 = vpack.c.bf16 %v174_v9, %v170_v37  ;;  %v5438_v28 = vsub.f32 %v76_v47, %v170_v37  ;;  %v1913_v21 = vld [vmem:[#allocation2 + $0x310] sm:$0xff] }
  0x40   :  { %8068 = vst [vmem:[#allocation88_spill] sm:$0xff] %v5414_v22  ;;  %8069 = vst [vmem:[#allocation89_spill] sm:$0xff] %v5416_v53  ;;  %v1914_v53 = vld [vmem:[#allocation2 + $0x318] sm:$0xff]  ;;  %v80_v22 = vld [vmem:[#allocation2 + $0x100] sm:$0xff]  ;;  %v5440_v38 = vsub.f32 %v78_v8, %v174_v9  ;;  %v5442_v1 = vpack.c.bf16 %v2005_v42, %v2001_v15  ;;  %4596 = vmatprep.subr.bf16.mxu1 %v5432_v32  ;;  %v5450_v14 = vpack.c.bf16 %v180_v7, %v176_v20 }
  0x41   :  { %8070 = vst [vmem:[#allocation90_spill] sm:$0xff] %v5418_v0  ;;  %8071 = vst [vmem:[#allocation91_spill] sm:$0xff] %v5422_v24  ;;  %v1912_v0 = vld [vmem:[#allocation2 + $0x308] sm:$0xff]  ;;  %v5444_v24 = vsub.f32 %v1907_v55, %v2001_v15  ;;  %4214 = vmatpush1.bf16.msra.mxu0 %v5436_v11  ;;  %v5452_v47 = vsub.f32 %v81_v29, %v176_v20  ;;  %v5454_v26 = vsub.f32 %v83_v60, %v180_v7 }
  0x42   :  { %8072 = vst [vmem:[#allocation92_spill] sm:$0xff] %v5424_v31  ;;  %8073 = vst [vmem:[#allocation93_spill] sm:$0xff] %v5426_v45  ;;  %v82_v45 = vld [vmem:[#allocation2 + $0x110] sm:$0xff]  ;;  %v1911_v31 = vld [vmem:[#allocation2 + $0x300] sm:$0xff]  ;;  %v2007_v8 = vand.u32 4294901760, %v1912_v0  ;;  %4598 = vmatpush1.bf16.msra.mxu1 %v5442_v1  ;;  %v2011_v55 = vand.u32 4294901760, %v1914_v53  ;;  %4216 = vmatprep.subr.bf16.mxu0 %v5450_v14 }
  0x43   :  { %8074 = vst [vmem:[#allocation94_spill] sm:$0xff] %v5430_v49  ;;  %8075 = vst [vmem:[#allocation95_spill] sm:$0xff] %v5432_v32  ;;  %v5446_v49 = vsub.f32 %v1909_v2, %v2005_v42  ;;  %v178_v37 = vand.u32 4294901760, %v80_v22  ;;  %v182_v2 = vand.u32 4294901760, %v82_v45  ;;  %v2009_v9 = vand.u32 4294901760, %v1911_v31 }
  0x44   :  { %8076 = vst [vmem:[#allocation96_spill] sm:$0xff] %v5434_v54  ;;  %8077 = vst [vmem:[#allocation97_spill] sm:$0xff] %v5436_v11  ;;  %v5458_v15 = vsub.f32 %v1912_v0, %v2007_v8  ;;  %v2013_v42 = vand.u32 4294901760, %v1913_v21  ;;  %v184_v32 = vand.u32 4294901760, %v85_v36  ;;  %v188_v11 = vand.u32 4294901760, %v87_v59  ;;  %v91_v54 = vld [vmem:[#allocation2 + $0x158] sm:$0xff] }
  0x45   :  { %8078 = vst [vmem:[#allocation98_spill] sm:$0xff] %v5438_v28  ;;  %8079 = vst [vmem:[#allocation99_spill] sm:$0xff] %v5440_v38  ;;  %v5460_v20 = vpack.c.bf16 %v2011_v55, %v2007_v8  ;;  %v5462_v60 = vsub.f32 %v1914_v53, %v2011_v55  ;;  %v5464_v7 = vpack.c.bf16 %v182_v2, %v178_v37  ;;  %v1917_v28 = vld [vmem:[#allocation2 + $0x330] sm:$0xff]  ;;  %v89_v8 = vld [vmem:[#allocation2 + $0x148] sm:$0xff] }
  0x46   :  { %8080 = vst [vmem:[#allocation100_spill] sm:$0xff] %v5442_v1  ;;  %8081 = vst [vmem:[#allocation101_spill] sm:$0xff] %v5444_v24  ;;  %v1918_v24 = vld [vmem:[#allocation2 + $0x338] sm:$0xff]  ;;  %v5466_v29 = vsub.f32 %v80_v22, %v178_v37  ;;  %v84_v1 = vld [vmem:[#allocation2 + $0x120] sm:$0xff]  ;;  %v5468_v38 = vsub.f32 %v82_v45, %v182_v2  ;;  %v5470_v0 = vpack.c.bf16 %v2013_v42, %v2009_v9 }
  0x47   :  { %8082 = vst [vmem:[#allocation102_spill] sm:$0xff] %v5446_v49  ;;  %8083 = vst [vmem:[#allocation103_spill] sm:$0xff] %v5450_v14  ;;  %v1916_v49 = vld [vmem:[#allocation2 + $0x328] sm:$0xff]  ;;  %v5472_v14 = vsub.f32 %v1911_v31, %v2009_v9  ;;  %4600 = vmatprep.subr.bf16.mxu1 %v5460_v20  ;;  %4218 = vmatpush1.bf16.msra.mxu0 %v5464_v7  ;;  %v5478_v53 = vpack.c.bf16 %v188_v11, %v184_v32  ;;  %v2019_v31 = vand.u32 4294901760, %v1918_v24 }
  0x48   :  { %8084 = vst [vmem:[#allocation104_spill] sm:$0xff] %v5452_v47  ;;  %8085 = vst [vmem:[#allocation105_spill] sm:$0xff] %v5454_v26  ;;  %v86_v26 = vld [vmem:[#allocation2 + $0x130] sm:$0xff]  ;;  %v1915_v47 = vld [vmem:[#allocation2 + $0x320] sm:$0xff]  ;;  %v5480_v22 = vsub.f32 %v85_v36, %v184_v32  ;;  %v5482_v55 = vsub.f32 %v87_v59, %v188_v11  ;;  %v2015_v45 = vand.u32 4294901760, %v1916_v49  ;;  %4602 = vmatpush1.bf16.msra.mxu1 %v5470_v0  ;;  %v186_v37 = vand.u32 4294901760, %v84_v1 }
  0x49   :  { %8086 = vst [vmem:[#allocation106_spill] sm:$0xff] %v5458_v15  ;;  %8087 = vst [vmem:[#allocation107_spill] sm:$0xff] %v5460_v20  ;;  %v5474_v15 = vsub.f32 %v1913_v21, %v2013_v42  ;;  %v190_v21 = vand.u32 4294901760, %v86_v26  ;;  %v2017_v2 = vand.u32 4294901760, %v1915_v47  ;;  %4220 = vmatprep.subr.bf16.mxu0 %v5478_v53  ;;  %v2021_v42 = vand.u32 4294901760, %v1917_v28 }
  0x4a   :  { %8088 = vst [vmem:[#allocation108_spill] sm:$0xff] %v5462_v60  ;;  %8089 = vst [vmem:[#allocation109_spill] sm:$0xff] %v5464_v7  ;;  %v5486_v9 = vsub.f32 %v1916_v49, %v2015_v45  ;;  %v192_v20 = vand.u32 4294901760, %v89_v8  ;;  %v196_v7 = vand.u32 4294901760, %v91_v54  ;;  %v5488_v32 = vpack.c.bf16 %v2019_v31, %v2015_v45  ;;  %v93_v45 = vld [vmem:[#allocation2 + $0x168] sm:$0xff]  ;;  %v95_v60 = vld [vmem:[#allocation2 + $0x178] sm:$0xff] }
  0x4b   :  { %8090 = vst [vmem:[#allocation110_spill] sm:$0xff] %v5466_v29  ;;  %8091 = vst [vmem:[#allocation111_spill] sm:$0xff] %v5468_v38  ;;  %v5490_v59 = vsub.f32 %v1918_v24, %v2019_v31  ;;  %v5492_v11 = vpack.c.bf16 %v190_v21, %v186_v37  ;;  %v5494_v36 = vsub.f32 %v84_v1, %v186_v37  ;;  %v1921_v29 = vld [vmem:[#allocation2 + $0x350] sm:$0xff] }
  0x4c   :  { %8092 = vst [vmem:[#allocation112_spill] sm:$0xff] %v5470_v0  ;;  %8093 = vst [vmem:[#allocation113_spill] sm:$0xff] %v5472_v14  ;;  %v1922_v14 = vld [vmem:[#allocation2 + $0x358] sm:$0xff]  ;;  %v88_v0 = vld [vmem:[#allocation2 + $0x140] sm:$0xff]  ;;  %v5496_v38 = vsub.f32 %v86_v26, %v190_v21  ;;  %v5498_v49 = vpack.c.bf16 %v2021_v42, %v2017_v2  ;;  %4604 = vmatprep.subr.bf16.mxu1 %v5488_v32  ;;  %v5506_v24 = vpack.c.bf16 %v196_v7, %v192_v20 }
  0x4d   :  { %8094 = vst [vmem:[#allocation114_spill] sm:$0xff] %v5474_v15  ;;  %8095 = vst [vmem:[#allocation115_spill] sm:$0xff] %v5478_v53  ;;  %v1920_v15 = vld [vmem:[#allocation2 + $0x348] sm:$0xff]  ;;  %v5500_v53 = vsub.f32 %v1915_v47, %v2017_v2  ;;  %4222 = vmatpush1.bf16.msra.mxu0 %v5492_v11  ;;  %v5508_v1 = vsub.f32 %v89_v8, %v192_v20  ;;  %v5510_v31 = vsub.f32 %v91_v54, %v196_v7 }
  0x4e   :  { %8096 = vst [vmem:[#allocation116_spill] sm:$0xff] %v5480_v22  ;;  %8097 = vst [vmem:[#allocation117_spill] sm:$0xff] %v5482_v55  ;;  %v90_v55 = vld [vmem:[#allocation2 + $0x150] sm:$0xff]  ;;  %v1919_v22 = vld [vmem:[#allocation2 + $0x340] sm:$0xff]  ;;  %v2023_v26 = vand.u32 4294901760, %v1920_v15  ;;  %4606 = vmatpush1.bf16.msra.mxu1 %v5498_v49  ;;  %v2027_v47 = vand.u32 4294901760, %v1922_v14  ;;  %4224 = vmatprep.subr.bf16.mxu0 %v5506_v24 }
  0x4f   :  { %8098 = vst [vmem:[#allocation118_spill] sm:$0xff] %v5486_v9  ;;  %8099 = vst [vmem:[#allocation119_spill] sm:$0xff] %v5488_v32  ;;  %v5502_v9 = vsub.f32 %v1917_v28, %v2021_v42  ;;  %v194_v37 = vand.u32 4294901760, %v88_v0  ;;  %v198_v28 = vand.u32 4294901760, %v90_v55  ;;  %v2025_v21 = vand.u32 4294901760, %v1919_v22 }
  0x50   :  { %8100 = vst [vmem:[#allocation120_spill] sm:$0xff] %v5490_v59  ;;  %8101 = vst [vmem:[#allocation121_spill] sm:$0xff] %v5492_v11  ;;  %v5514_v2 = vsub.f32 %v1920_v15, %v2023_v26  ;;  %v2029_v42 = vand.u32 4294901760, %v1921_v29  ;;  %v200_v32 = vand.u32 4294901760, %v93_v45  ;;  %v204_v11 = vand.u32 4294901760, %v95_v60  ;;  %v99_v59 = vld [vmem:[#allocation2 + $0x198] sm:$0xff] }
  0x51   :  { %8102 = vst [vmem:[#allocation122_spill] sm:$0xff] %v5494_v36  ;;  %8103 = vst [vmem:[#allocation123_spill] sm:$0xff] %v5496_v38  ;;  %v5516_v20 = vpack.c.bf16 %v2027_v47, %v2023_v26  ;;  %v5518_v54 = vsub.f32 %v1922_v14, %v2027_v47  ;;  %v5520_v7 = vpack.c.bf16 %v198_v28, %v194_v37  ;;  %v1925_v36 = vld [vmem:[#allocation2 + $0x370] sm:$0xff]  ;;  %v97_v26 = vld [vmem:[#allocation2 + $0x188] sm:$0xff] }
  0x52   :  { %8104 = vst [vmem:[#allocation124_spill] sm:$0xff] %v5498_v49  ;;  %8105 = vst [vmem:[#allocation125_spill] sm:$0xff] %v5500_v53  ;;  %v1926_v53 = vld [vmem:[#allocation2 + $0x378] sm:$0xff]  ;;  %v5522_v8 = vsub.f32 %v88_v0, %v194_v37  ;;  %v92_v49 = vld [vmem:[#allocation2 + $0x160] sm:$0xff]  ;;  %v5524_v38 = vsub.f32 %v90_v55, %v198_v28  ;;  %v5526_v15 = vpack.c.bf16 %v2029_v42, %v2025_v21 }
  0x53   :  { %8106 = vst [vmem:[#allocation126_spill] sm:$0xff] %v5502_v9  ;;  %8107 = vst [vmem:[#allocation127_spill] sm:$0xff] %v5506_v24  ;;  %v1924_v9 = vld [vmem:[#allocation2 + $0x368] sm:$0xff]  ;;  %v5528_v24 = vsub.f32 %v1919_v22, %v2025_v21  ;;  %4608 = vmatprep.subr.bf16.mxu1 %v5516_v20  ;;  %4226 = vmatpush1.bf16.msra.mxu0 %v5520_v7  ;;  %v5534_v14 = vpack.c.bf16 %v204_v11, %v200_v32  ;;  %v2035_v22 = vand.u32 4294901760, %v1926_v53 }
  0x54   :  { %8108 = vst [vmem:[#allocation128_spill] sm:$0xff] %v5508_v1  ;;  %8109 = vst [vmem:[#allocation129_spill] sm:$0xff] %v5510_v31  ;;  %v94_v31 = vld [vmem:[#allocation2 + $0x170] sm:$0xff]  ;;  %v1923_v1 = vld [vmem:[#allocation2 + $0x360] sm:$0xff]  ;;  %v5536_v0 = vsub.f32 %v93_v45, %v200_v32  ;;  %v5538_v47 = vsub.f32 %v95_v60, %v204_v11  ;;  %v2031_v55 = vand.u32 4294901760, %v1924_v9  ;;  %4610 = vmatpush1.bf16.msra.mxu1 %v5526_v15  ;;  %v202_v37 = vand.u32 4294901760, %v92_v49 }
  0x55   :  { %8110 = vst [vmem:[#allocation130_spill] sm:$0xff] %v5514_v2  ;;  %8111 = vst [vmem:[#allocation131_spill] sm:$0xff] %v5516_v20  ;;  %v5530_v2 = vsub.f32 %v1921_v29, %v2029_v42  ;;  %v206_v29 = vand.u32 4294901760, %v94_v31  ;;  %v2033_v28 = vand.u32 4294901760, %v1923_v1  ;;  %4228 = vmatprep.subr.bf16.mxu0 %v5534_v14  ;;  %v2037_v42 = vand.u32 4294901760, %v1925_v36 }
  0x56   :  { %8112 = vst [vmem:[#allocation132_spill] sm:$0xff] %v5518_v54  ;;  %8113 = vst [vmem:[#allocation133_spill] sm:$0xff] %v5520_v7  ;;  %v5542_v21 = vsub.f32 %v1924_v9, %v2031_v55  ;;  %v208_v20 = vand.u32 4294901760, %v97_v26  ;;  %v212_v7 = vand.u32 4294901760, %v99_v59  ;;  %v5544_v32 = vpack.c.bf16 %v2035_v22, %v2031_v55  ;;  %v101_v55 = vld [vmem:[#allocation2 + $0x1a8] sm:$0xff]  ;;  %v103_v54 = vld [vmem:[#allocation2 + $0x1b8] sm:$0xff] }
  0x57   :  { %8114 = vst [vmem:[#allocation134_spill] sm:$0xff] %v5522_v8  ;;  %8115 = vst [vmem:[#allocation135_spill] sm:$0xff] %v5524_v38  ;;  %v5546_v60 = vsub.f32 %v1926_v53, %v2035_v22  ;;  %v5548_v11 = vpack.c.bf16 %v206_v29, %v202_v37  ;;  %v5550_v45 = vsub.f32 %v92_v49, %v202_v37  ;;  %v1929_v8 = vld [vmem:[#allocation2 + $0x390] sm:$0xff] }
  0x58   :  { %8116 = vst [vmem:[#allocation136_spill] sm:$0xff] %v5526_v15  ;;  %8117 = vst [vmem:[#allocation137_spill] sm:$0xff] %v5528_v24  ;;  %v1930_v24 = vld [vmem:[#allocation2 + $0x398] sm:$0xff]  ;;  %v96_v15 = vld [vmem:[#allocation2 + $0x180] sm:$0xff]  ;;  %v5552_v38 = vsub.f32 %v94_v31, %v206_v29  ;;  %v5554_v9 = vpack.c.bf16 %v2037_v42, %v2033_v28  ;;  %4612 = vmatprep.subr.bf16.mxu1 %v5544_v32  ;;  %v5562_v53 = vpack.c.bf16 %v212_v7, %v208_v20 }
  0x59   :  { %8118 = vst [vmem:[#allocation138_spill] sm:$0xff] %v5530_v2  ;;  %8119 = vst [vmem:[#allocation139_spill] sm:$0xff] %v5534_v14  ;;  %v1928_v2 = vld [vmem:[#allocation2 + $0x388] sm:$0xff]  ;;  %v5556_v14 = vsub.f32 %v1923_v1, %v2033_v28  ;;  %4230 = vmatpush1.bf16.msra.mxu0 %v5548_v11  ;;  %v5564_v49 = vsub.f32 %v97_v26, %v208_v20  ;;  %v5566_v22 = vsub.f32 %v99_v59, %v212_v7 }
  0x5a   :  { %8120 = vst [vmem:[#allocation140_spill] sm:$0xff] %v5536_v0  ;;  %8121 = vst [vmem:[#allocation141_spill] sm:$0xff] %v5538_v47  ;;  %v98_v47 = vld [vmem:[#allocation2 + $0x190] sm:$0xff]  ;;  %v1927_v0 = vld [vmem:[#allocation2 + $0x380] sm:$0xff]  ;;  %v2039_v31 = vand.u32 4294901760, %v1928_v2  ;;  %4614 = vmatpush1.bf16.msra.mxu1 %v5554_v9  ;;  %v2043_v1 = vand.u32 4294901760, %v1930_v24  ;;  %4232 = vmatprep.subr.bf16.mxu0 %v5562_v53 }
  0x5b   :  { %8122 = vst [vmem:[#allocation142_spill] sm:$0xff] %v5542_v21  ;;  %8123 = vst [vmem:[#allocation143_spill] sm:$0xff] %v5544_v32  ;;  %v5558_v21 = vsub.f32 %v1925_v36, %v2037_v42  ;;  %v210_v37 = vand.u32 4294901760, %v96_v15  ;;  %v214_v36 = vand.u32 4294901760, %v98_v47  ;;  %v2041_v29 = vand.u32 4294901760, %v1927_v0 }
  0x5c   :  { %8124 = vst [vmem:[#allocation144_spill] sm:$0xff] %v5546_v60  ;;  %8125 = vst [vmem:[#allocation145_spill] sm:$0xff] %v5548_v11  ;;  %v5570_v28 = vsub.f32 %v1928_v2, %v2039_v31  ;;  %v2045_v42 = vand.u32 4294901760, %v1929_v8  ;;  %v216_v32 = vand.u32 4294901760, %v101_v55  ;;  %v220_v11 = vand.u32 4294901760, %v103_v54  ;;  %v107_v60 = vld [vmem:[#allocation2 + $0x1d8] sm:$0xff] }
  0x5d   :  { %8126 = vst [vmem:[#allocation146_spill] sm:$0xff] %v5550_v45  ;;  %8127 = vst [vmem:[#allocation147_spill] sm:$0xff] %v5552_v38  ;;  %v5572_v20 = vpack.c.bf16 %v2043_v1, %v2039_v31  ;;  %v5574_v59 = vsub.f32 %v1930_v24, %v2043_v1  ;;  %v5576_v7 = vpack.c.bf16 %v214_v36, %v210_v37  ;;  %v1933_v45 = vld [vmem:[#allocation2 + $0x3b0] sm:$0xff]  ;;  %v105_v31 = vld [vmem:[#allocation2 + $0x1c8] sm:$0xff] }
  0x5e   :  { %8128 = vst [vmem:[#allocation148_spill] sm:$0xff] %v5554_v9  ;;  %8129 = vst [vmem:[#allocation149_spill] sm:$0xff] %v5556_v14  ;;  %v1934_v14 = vld [vmem:[#allocation2 + $0x3b8] sm:$0xff]  ;;  %v5578_v26 = vsub.f32 %v96_v15, %v210_v37  ;;  %v100_v9 = vld [vmem:[#allocation2 + $0x1a0] sm:$0xff]  ;;  %v5580_v38 = vsub.f32 %v98_v47, %v214_v36  ;;  %v5582_v2 = vpack.c.bf16 %v2045_v42, %v2041_v29 }
  0x5f   :  { %8130 = vst [vmem:[#allocation150_spill] sm:$0xff] %v5558_v21  ;;  %8131 = vst [vmem:[#allocation151_spill] sm:$0xff] %v5562_v53  ;;  %v1932_v21 = vld [vmem:[#allocation2 + $0x3a8] sm:$0xff]  ;;  %v5584_v53 = vsub.f32 %v1927_v0, %v2041_v29  ;;  %4616 = vmatprep.subr.bf16.mxu1 %v5572_v20  ;;  %4234 = vmatpush1.bf16.msra.mxu0 %v5576_v7  ;;  %v5590_v24 = vpack.c.bf16 %v220_v11, %v216_v32  ;;  %v2051_v0 = vand.u32 4294901760, %v1934_v14 }
  0x60   :  { %8132 = vst [vmem:[#allocation152_spill] sm:$0xff] %v5564_v49  ;;  %8133 = vst [vmem:[#allocation153_spill] sm:$0xff] %v5566_v22  ;;  %v102_v22 = vld [vmem:[#allocation2 + $0x1b0] sm:$0xff]  ;;  %v1931_v49 = vld [vmem:[#allocation2 + $0x3a0] sm:$0xff]  ;;  %v5592_v15 = vsub.f32 %v101_v55, %v216_v32  ;;  %v5594_v1 = vsub.f32 %v103_v54, %v220_v11  ;;  %v2047_v47 = vand.u32 4294901760, %v1932_v21  ;;  %4618 = vmatpush1.bf16.msra.mxu1 %v5582_v2  ;;  %v218_v37 = vand.u32 4294901760, %v100_v9 }
  0x61   :  { %8134 = vst [vmem:[#allocation154_spill] sm:$0xff] %v5570_v28  ;;  %8135 = vst [vmem:[#allocation155_spill] sm:$0xff] %v5572_v20  ;;  %v5586_v28 = vsub.f32 %v1929_v8, %v2045_v42  ;;  %v222_v8 = vand.u32 4294901760, %v102_v22  ;;  %v2049_v36 = vand.u32 4294901760, %v1931_v49  ;;  %4236 = vmatprep.subr.bf16.mxu0 %v5590_v24  ;;  %v2053_v42 = vand.u32 4294901760, %v1933_v45 }
  0x62   :  { %8136 = vst [vmem:[#allocation156_spill] sm:$0xff] %v5574_v59  ;;  %8137 = vst [vmem:[#allocation157_spill] sm:$0xff] %v5576_v7  ;;  %v5598_v29 = vsub.f32 %v1932_v21, %v2047_v47  ;;  %v224_v20 = vand.u32 4294901760, %v105_v31  ;;  %v228_v7 = vand.u32 4294901760, %v107_v60  ;;  %v5600_v32 = vpack.c.bf16 %v2051_v0, %v2047_v47  ;;  %v109_v47 = vld [vmem:[#allocation2 + $0x1e8] sm:$0xff]  ;;  %v111_v59 = vld [vmem:[#allocation2 + $0x1f8] sm:$0xff] }
  0x63   :  { %8138 = vst [vmem:[#allocation158_spill] sm:$0xff] %v5578_v26  ;;  %8139 = vst [vmem:[#allocation159_spill] sm:$0xff] %v5580_v38  ;;  %v5602_v54 = vsub.f32 %v1934_v14, %v2051_v0  ;;  %v5604_v11 = vpack.c.bf16 %v222_v8, %v218_v37  ;;  %v5606_v55 = vsub.f32 %v100_v9, %v218_v37  ;;  %v1937_v26 = vld [vmem:[#allocation2 + $0x3d0] sm:$0xff] }
  0x64   :  { %8140 = vst [vmem:[#allocation160_spill] sm:$0xff] %v5582_v2  ;;  %8141 = vst [vmem:[#allocation161_spill] sm:$0xff] %v5584_v53  ;;  %v1938_v53 = vld [vmem:[#allocation2 + $0x3d8] sm:$0xff]  ;;  %v104_v2 = vld [vmem:[#allocation2 + $0x1c0] sm:$0xff]  ;;  %v5608_v38 = vsub.f32 %v102_v22, %v222_v8  ;;  %v5610_v21 = vpack.c.bf16 %v2053_v42, %v2049_v36  ;;  %4620 = vmatprep.subr.bf16.mxu1 %v5600_v32  ;;  %v5618_v14 = vpack.c.bf16 %v228_v7, %v224_v20 }
  0x65   :  { %8142 = vst [vmem:[#allocation162_spill] sm:$0xff] %v5586_v28  ;;  %8143 = vst [vmem:[#allocation163_spill] sm:$0xff] %v5590_v24  ;;  %v1936_v28 = vld [vmem:[#allocation2 + $0x3c8] sm:$0xff]  ;;  %v5612_v24 = vsub.f32 %v1931_v49, %v2049_v36  ;;  %4238 = vmatpush1.bf16.msra.mxu0 %v5604_v11  ;;  %v5620_v9 = vsub.f32 %v105_v31, %v224_v20  ;;  %v5622_v0 = vsub.f32 %v107_v60, %v228_v7 }
  0x66   :  { %8144 = vst [vmem:[#allocation164_spill] sm:$0xff] %v5592_v15  ;;  %8145 = vst [vmem:[#allocation165_spill] sm:$0xff] %v5594_v1  ;;  %v106_v1 = vld [vmem:[#allocation2 + $0x1d0] sm:$0xff]  ;;  %v1935_v15 = vld [vmem:[#allocation2 + $0x3c0] sm:$0xff]  ;;  %v2055_v22 = vand.u32 4294901760, %v1936_v28  ;;  %4622 = vmatpush1.bf16.msra.mxu1 %v5610_v21  ;;  %v2059_v49 = vand.u32 4294901760, %v1938_v53  ;;  %4240 = vmatprep.subr.bf16.mxu0 %v5618_v14 }
  0x67   :  { %8146 = vst [vmem:[#allocation166_spill] sm:$0xff] %v5598_v29  ;;  %8147 = vst [vmem:[#allocation167_spill] sm:$0xff] %v5600_v32  ;;  %v5614_v29 = vsub.f32 %v1933_v45, %v2053_v42  ;;  %v226_v37 = vand.u32 4294901760, %v104_v2  ;;  %v230_v45 = vand.u32 4294901760, %v106_v1  ;;  %v2057_v8 = vand.u32 4294901760, %v1935_v15 }
  0x68   :  { %8148 = vst [vmem:[#allocation168_spill] sm:$0xff] %v5602_v54  ;;  %8149 = vst [vmem:[#allocation169_spill] sm:$0xff] %v5604_v11  ;;  %v5626_v36 = vsub.f32 %v1936_v28, %v2055_v22  ;;  %v2061_v42 = vand.u32 4294901760, %v1937_v26  ;;  %v232_v32 = vand.u32 4294901760, %v109_v47  ;;  %v236_v11 = vand.u32 4294901760, %v111_v59 }
  0x69   :  { %8150 = vst [vmem:[#allocation170_spill] sm:$0xff] %v5606_v55  ;;  %8151 = vst [vmem:[#allocation171_spill] sm:$0xff] %v5608_v38  ;;  %v5628_v20 = vpack.c.bf16 %v2059_v49, %v2055_v22  ;;  %v5630_v60 = vsub.f32 %v1938_v53, %v2059_v49  ;;  %v5632_v7 = vpack.c.bf16 %v230_v45, %v226_v37  ;;  %v1941_v55 = vld [vmem:[#allocation2 + $0x3f0] sm:$0xff]  ;;  %v33_v53 = vld [vmem:[%s7407_s1 + $0x8] sm:$0xff] }
  0x6a   :  { %8152 = vst [vmem:[#allocation172_spill] sm:$0xff] %v5610_v21  ;;  %8153 = vst [vmem:[#allocation173_spill] sm:$0xff] %v5612_v24  ;;  %v1942_v24 = vld [vmem:[#allocation2 + $0x3f8] sm:$0xff]  ;;  %v5634_v31 = vsub.f32 %v104_v2, %v226_v37  ;;  %v108_v21 = vld [vmem:[#allocation2 + $0x1e0] sm:$0xff]  ;;  %v5636_v38 = vsub.f32 %v106_v1, %v230_v45  ;;  %v5638_v28 = vpack.c.bf16 %v2061_v42, %v2057_v8 }
  0x6b   :  { %8154 = vst [vmem:[#allocation174_spill] sm:$0xff] %v5614_v29  ;;  %8155 = vst [vmem:[#allocation175_spill] sm:$0xff] %v5618_v14  ;;  %v1940_v29 = vld [vmem:[#allocation2 + $0x3e8] sm:$0xff]  ;;  %v5640_v14 = vsub.f32 %v1935_v15, %v2057_v8  ;;  %4624 = vmatprep.subr.bf16.mxu1 %v5628_v20  ;;  %4242 = vmatpush1.bf16.msra.mxu0 %v5632_v7  ;;  %v5649_v2 = vpack.c.bf16 %v236_v11, %v232_v32  ;;  %v234_v15 = vand.u32 4294901760, %v108_v21 }
  0x6c   :  { %8156 = vst [vmem:[#allocation176_spill] sm:$0xff] %v5620_v9  ;;  %8157 = vst [vmem:[#allocation177_spill] sm:$0xff] %v5622_v0  ;;  %v110_v0 = vld [vmem:[#allocation2 + $0x1f0] sm:$0xff]  ;;  %v1939_v9 = vld [vmem:[#allocation2 + $0x3e0] sm:$0xff]  ;;  %v5651_v22 = vsub.f32 %v109_v47, %v232_v32  ;;  %v5653_v1 = vsub.f32 %v111_v59, %v236_v11  ;;  %v2063_v49 = vand.u32 4294901760, %v1940_v29  ;;  %4626 = vmatpush1.bf16.msra.mxu1 %v5638_v28 }
  0x6d   :  { %8158 = vst [vmem:[#allocation178_spill] sm:$0xff] %v5626_v36  ;;  %8159 = vst [vmem:[#allocation179_spill] sm:$0xff] %v5628_v20  ;;  %v5642_v36 = vsub.f32 %v1937_v26, %v2061_v42  ;;  %v2067_v26 = vand.u32 4294901760, %v1942_v24  ;;  %v238_v37 = vand.u32 4294901760, %v110_v0  ;;  %v2065_v45 = vand.u32 4294901760, %v1939_v9  ;;  %4244 = vmatprep.subr.bf16.mxu0 %v5649_v2 }
  0x6e   :  { %8160 = vst [vmem:[#allocation180_spill] sm:$0xff] %v5632_v7  ;;  %8161 = vst [vmem:[#allocation181_spill] sm:$0xff] %v5638_v28  ;;  %v5657_v8 = vsub.f32 %v1940_v29, %v2063_v49  ;;  %v2069_v42 = vand.u32 4294901760, %v1941_v55  ;;  %v5659_v20 = vand.u32 4294901760, %v33_v53  ;;  %v7615_v7 = vand.u32 4294901760, %v5229_v16  ;;  %v32_v28 = vld [vmem:[%s7407_s1] sm:$0xff] }
  0x6f   :  { %8162 = vst [vmem:[#allocation182_spill] sm:$0xff] %v5640_v14  ;;  %8163 = vst [vmem:[#allocation183_spill] sm:$0xff] %v5642_v36  ;;  %v5662_v32 = vpack.c.bf16 %v2067_v26, %v2063_v49  ;;  %v5664_v59 = vsub.f32 %v1942_v24, %v2067_v26  ;;  %v5666_v11 = vpack.c.bf16 %v238_v37, %v234_v15  ;;  %v7623_v49 = vand.u32 4294901760, %v5233_v18 }
  0x70   :  { %8164 = vst [vmem:[#allocation184_spill] sm:$0xff] %v5649_v2  ;;  %8165 = vst [vmem:[#allocation185_spill] sm:$0xff] %v5651_v22  ;;  %v5668_v47 = vsub.f32 %v108_v21, %v234_v15  ;;  %v5673_v2 = vsub.f32 %v110_v0, %v238_v37  ;;  %v5675_v29 = vpack.c.bf16 %v2069_v42, %v2065_v45  ;;  %v7620_v0 = vand.u32 4294901760, %v5231_v17 }
  0x71   :  { %8166 = vst [vmem:[#allocation186_spill] sm:$0xff] %v5653_v1  ;;  %8167 = vst [vmem:[#allocation187_spill] sm:$0xff] %v5657_v8  ;;  %v5677_v8 = vsub.f32 %v1939_v9, %v2065_v45  ;;  %v5679_v1 = vsub.f32 %v1941_v55, %v2069_v42  ;;  %4628 = vmatprep.subr.bf16.mxu1 %v5662_v32  ;;  %4246 = vmatpush1.bf16.msra.mxu0 %v5666_v11  ;;  %v7628_v55 = vand.u32 4294901760, %v5237_v23 }
  0x72   :  { %8168 = vst [vmem:[#allocation188_spill] sm:$0xff] %v5659_v20  ;;  %8169 = vst [vmem:[#allocation189_spill] sm:$0xff] %v5662_v32  ;;  %v5684_v24 = vsub.f32 %v33_v53, %v5659_v20  ;;  %v372_v21 = vsub.f32 %v5229_v16, %v7615_v7  ;;  %4630 = vmatpush1.bf16.msra.mxu1 %v5675_v29  ;;  %v5693_v9 = vand.u32 4294901760, %v32_v28  ;;  %v8181_v15 = vand.u32 4294901760, %v5241_v25 }
  0x73   :  { %8170 = vst [vmem:[#allocation190_spill] sm:$0xff] %v5664_v59  ;;  %8171 = vst [vmem:[#allocation191_spill] sm:$0xff] %v5666_v11  ;;  %v384_v45 = vsub.f32 %v5231_v17, %v7620_v0  ;;  %v2203_v42 = vsub.f32 %v5233_v18, %v7623_v49  ;;  %v2215_v7 = vsub.f32 %v5237_v23, %v7628_v55  ;;  %v7644_v20 = vand.u32 4294901760, %v5250_v39 }
  0x74   :  { %8172 = vst [vmem:[#allocation192_spill] sm:$0xff] %v5668_v47  ;;  %8173 = vst [vmem:[#allocation193_spill] sm:$0xff] %v5673_v2  ;;  %v5698_v53 = vand.u32 4294901760, %v5684_v24  ;;  %v373_v37 = vand.u32 4294901760, %v372_v21  ;;  %v5710_v26 = vsub.f32 %v32_v28, %v5693_v9  ;;  %v8182_v21 = vand.u32 4294901760, %v5244_v27 }
  0x75   :  { %8174 = vst [vmem:[#allocation194_spill] sm:$0xff] %v5675_v29  ;;  %8175 = vst [vmem:[#allocation195_spill] sm:$0xff] %v5677_v8  ;;  %v378_v29 = vsub.f32 %v5241_v25, %v8181_v15  ;;  %v385_v32 = vand.u32 4294901760, %v384_v45  ;;  %v2204_v49 = vand.u32 4294901760, %v2203_v42  ;;  %v2216_v18 = vand.u32 4294901760, %v2215_v7 }
  0x76   :  { %8176 = vst [vmem:[#allocation196_spill] sm:$0xff] %v5679_v1  ;;  %8177 = vst [vmem:[#allocation197_spill] sm:$0xff] %v5684_v24  ;;  %v390_v11 = vsub.f32 %v5244_v27, %v8182_v21  ;;  %v243_v0 = vsub.f32 %v5684_v24, %v5698_v53  ;;  %v5722_v55 = vand.u32 4294901760, %v5710_v26  ;;  %v2209_v15 = vsub.f32 %v5250_v39, %v7644_v20 }
  0x77   :  { %8178 = vst [vmem:[#allocation198_spill] sm:$0xff] %v5693_v9  ;;  %8179 = vst [vmem:[#allocation199_spill] sm:$0xff] %v5698_v53  ;;  %v379_v28 = vand.u32 4294901760, %v378_v29  ;;  %v4247_v17 = vpack.c.bf16 %v385_v32, %v373_v37  ;;  %v7641_v21 = vand.u32 4294901760, %v5252_v40  ;;  %v4631_v27 = vpack.c.bf16 %v2216_v18, %v2204_v49 }
  0x78   :  { %8180 = vst [vmem:[#allocation200_spill] sm:$0xff] %v5710_v26  ;;  %8183 = vst [vmem:[#allocation201_spill] sm:$0xff] %v5722_v55  ;;  %v391_v9 = vand.u32 4294901760, %v390_v11  ;;  %v244_v23 = vand.u32 4294901760, %v243_v0  ;;  %v249_v45 = vsub.f32 %v5710_v26, %v5722_v55  ;;  %v7640_v7 = vand.u32 4294901760, %v5254_v41 }
  0x79   :  { %4248 = vmatprep.subr.bf16.mxu0 %v4247_v17  ;;  %v2210_v53 = vand.u32 4294901760, %v2209_v15  ;;  %v2221_v32 = vsub.f32 %v5252_v40, %v7641_v21  ;;  %v7639_v11 = vand.u32 4294901760, %v5258_v46  ;;  %v7642_v29 = vand.u32 4294901760, %v5262_v48  ;;  %4632 = vmatprep.subr.bf16.mxu1 %v4631_v27 }
  0x7a   :  { %v4249_v42 = vpack.c.bf16 %v391_v9, %v379_v28  ;;  %245 = vmatprep.mubr.f32.mxu0 %v244_v23  ;;  %2076 = vmatprep.mubr.f32.mxu1 %v244_v23  ;;  %v250_v18 = vand.u32 4294901760, %v249_v45  ;;  %v396_v0 = vsub.f32 %v5254_v41, %v7640_v7  ;;  %v7643_v49 = vand.u32 4294901760, %v5265_v50 }
  0x7b   :  { %v7645_v17 = vand.u32 4294901760, %v5267_v52  ;;  %v2222_v9 = vand.u32 4294901760, %v2221_v32  ;;  %v408_v37 = vsub.f32 %v5258_v46, %v7639_v11  ;;  %v2227_v28 = vsub.f32 %v5262_v48, %v7642_v29 }
  0x7c   :  { %v7666_v23 = vand.u32 4294901760, %v5273_v61  ;;  %251 = vmatmul.mubr.f32.vlgmr.msra.gmra.mrb[0].mxu0 %v250_v18  ;;  %2082 = vmatmul.mubr.f32.vlgmr.msra.gmra.mrb[0].mxu1 %v250_v18  ;;  %v397_v27 = vand.u32 4294901760, %v396_v0  ;;  %v2239_v15 = vsub.f32 %v5265_v50, %v7643_v49  ;;  %v7654_v32 = vand.u32 4294901760, %v5275_v62 }
  0x7d   :  { %v402_v45 = vsub.f32 %v5267_v52, %v7645_v17  ;;  %4250 = vmatpush1.bf16.msra.mxu0 %v4249_v42  ;;  %v4633_v11 = vpack.c.bf16 %v2222_v9, %v2210_v53  ;;  %v409_v7 = vand.u32 4294901760, %v408_v37  ;;  %v2228_v21 = vand.u32 4294901760, %v2227_v28 }
  0x7e   :  { %v414_v29 = vsub.f32 %v5273_v61, %v7666_v23  ;;  %v2240_v18 = vand.u32 4294901760, %v2239_v15  ;;  %v2233_v49 = vsub.f32 %v5275_v62, %v7654_v32  ;;  %v7651_v20 = vand.u32 4294901760, %v5279_v4 }
  0x7f   :  { %v403_v0 = vand.u32 4294901760, %v402_v45  ;;  %4634 = vmatpush1.bf16.msra.mxu1 %v4633_v11  ;;  %v4251_v17 = vpack.c.bf16 %v409_v7, %v397_v27  ;;  %v7649_v42 = vand.u32 4294901760, %v5283_v6  ;;  %v7648_v53 = vand.u32 4294901760, %v5286_v10 }
  0x80   :  { %v415_v55 = vand.u32 4294901760, %v414_v29  ;;  %v4635_v9 = vpack.c.bf16 %v2240_v18, %v2228_v21  ;;  %v2234_v37 = vand.u32 4294901760, %v2233_v49  ;;  %v2245_v28 = vsub.f32 %v5279_v4, %v7651_v20 }
  0x81   :  { %v7650_v15 = vand.u32 4294901760, %v5290_v12  ;;  %4252 = vmatprep.subr.bf16.mxu0 %v4251_v17  ;;  %v420_v11 = vsub.f32 %v5283_v6, %v7649_v42  ;;  %v432_v7 = vsub.f32 %v5286_v10, %v7648_v53  ;;  %v7652_v29 = vand.u32 4294901760, %v5292_v13 }
  0x82   :  { %v4253_v45 = vpack.c.bf16 %v415_v55, %v403_v0  ;;  %4636 = vmatprep.subr.bf16.mxu1 %v4635_v9  ;;  %v2246_v21 = vand.u32 4294901760, %v2245_v28  ;;  %v7653_v27 = vand.u32 4294901760, %v5299_v33  ;;  %v7662_v55 = vand.u32 4294901760, %v5301_v34 }
  0x83   :  { %v2251_v49 = vsub.f32 %v5290_v12, %v7650_v15  ;;  %v421_v17 = vand.u32 4294901760, %v420_v11  ;;  %v433_v18 = vand.u32 4294901760, %v432_v7  ;;  %v2263_v0 = vsub.f32 %v5292_v13, %v7652_v29 }
  0x84   :  { %4254 = vmatpush1.bf16.msra.mxu0 %v4253_v45  ;;  %v7659_v53 = vand.u32 4294901760, %v5305_v43  ;;  %v4637_v42 = vpack.c.bf16 %v2246_v21, %v2234_v37  ;;  %v426_v28 = vsub.f32 %v5299_v33, %v7653_v27  ;;  %v438_v15 = vsub.f32 %v5301_v34, %v7662_v55 }
  0x85   :  { %v2252_v9 = vand.u32 4294901760, %v2251_v49  ;;  %v4255_v20 = vpack.c.bf16 %v433_v18, %v421_v17  ;;  %v2264_v45 = vand.u32 4294901760, %v2263_v0  ;;  %v7657_v7 = vand.u32 4294901760, %v5307_v44 }
  0x86   :  { %v2257_v11 = vsub.f32 %v5305_v43, %v7659_v53  ;;  %4638 = vmatpush1.bf16.msra.mxu1 %v4637_v42  ;;  %v427_v29 = vand.u32 4294901760, %v426_v28  ;;  %v439_v37 = vand.u32 4294901760, %v438_v15  ;;  %v7655_v21 = vand.u32 4294901760, %v5311_v51 }
  0x87   :  { %v7656_v49 = vand.u32 4294901760, %v5315_v56  ;;  %4256 = vmatprep.subr.bf16.mxu0 %v4255_v20  ;;  %v4639_v27 = vpack.c.bf16 %v2264_v45, %v2252_v9  ;;  %v2269_v17 = vsub.f32 %v5307_v44, %v7657_v7  ;;  %v7658_v18 = vand.u32 4294901760, %v5319_v58 }
  0x88   :  { %v2258_v32 = vand.u32 4294901760, %v2257_v11  ;;  %v4257_v0 = vpack.c.bf16 %v439_v37, %v427_v29  ;;  %v444_v42 = vsub.f32 %v5311_v51, %v7655_v21  ;;  %v7660_v28 = vand.u32 4294901760, %v5322_v63 }
  0x89   :  { %v456_v15 = vsub.f32 %v5315_v56, %v7656_v49  ;;  %4640 = vmatprep.subr.bf16.mxu1 %v4639_v27  ;;  %v2270_v20 = vand.u32 4294901760, %v2269_v17  ;;  %v2275_v9 = vsub.f32 %v5319_v58, %v7658_v18  ;;  %v7661_v45 = vand.u32 4294901760, %v5325_v19 }
  0x8a   :  { %v7663_v29 = vand.u32 4294901760, %v5329_v35  ;;  %4258 = vmatpush1.bf16.msra.mxu0 %v4257_v0  ;;  %v445_v11 = vand.u32 4294901760, %v444_v42  ;;  %v2287_v21 = vsub.f32 %v5322_v63, %v7660_v28  ;;  %v7664_v49 = vand.u32 4294901760, %v5333_v30 }
  0x8b   :  { %v457_v37 = vand.u32 4294901760, %v456_v15  ;;  %v4641_v7 = vpack.c.bf16 %v2270_v20, %v2258_v32  ;;  %v2276_v27 = vand.u32 4294901760, %v2275_v9  ;;  %v450_v17 = vsub.f32 %v5325_v19, %v7661_v45 }
  0x8c   :  { %v462_v18 = vsub.f32 %v5329_v35, %v7663_v29  ;;  %v2288_v0 = vand.u32 4294901760, %v2287_v21  ;;  %v2281_v42 = vsub.f32 %v5333_v30, %v7664_v49  ;;  %v7665_v15 = vand.u32 4294901760, %v5335_v57 }
  0x8d   :  { %v4259_v53 = vpack.c.bf16 %v457_v37, %v445_v11  ;;  %4642 = vmatpush1.bf16.msra.mxu1 %v4641_v7  ;;  %v451_v28 = vand.u32 4294901760, %v450_v17  ;;  %v7667_v20 = vand.u32 4294901760, %v5339_v5  ;;  %v7668_v9 = vand.u32 4294901760, %v5341_v3  ;;  %v8184_v11 = vld [vmem:[#allocation58_spill] sm:$0xff]  ;;  %v8185_v17 = vld [vmem:[#allocation60_spill] sm:$0xff] }
  0x8e   :  { %v463_v32 = vand.u32 4294901760, %v462_v18  ;;  %v4643_v45 = vpack.c.bf16 %v2288_v0, %v2276_v27  ;;  %v2282_v55 = vand.u32 4294901760, %v2281_v42  ;;  %v2293_v21 = vsub.f32 %v5335_v57, %v7665_v15  ;;  %v8186_v0 = vld [vmem:[#allocation62_spill] sm:$0xff]  ;;  %v8187_v15 = vld [vmem:[#allocation63_spill] sm:$0xff] }
  0x8f   :  { %4260 = vmatprep.subr.bf16.mxu0 %v4259_v53  ;;  %v7673_v37 = vand.u32 4294901760, %v8184_v11  ;;  %v468_v7 = vsub.f32 %v5339_v5, %v7667_v20  ;;  %v480_v18 = vsub.f32 %v5341_v3, %v7668_v9  ;;  %v7675_v49 = vand.u32 4294901760, %v8185_v17  ;;  %v8188_v9 = vld [vmem:[#allocation65_spill] sm:$0xff] }
  0x90   :  { %v4261_v29 = vpack.c.bf16 %v463_v32, %v451_v28  ;;  %4644 = vmatprep.subr.bf16.mxu1 %v4643_v45  ;;  %v2294_v53 = vand.u32 4294901760, %v2293_v21  ;;  %v7681_v42 = vand.u32 4294901760, %v8186_v0  ;;  %v7683_v28 = vand.u32 4294901760, %v8187_v15  ;;  %v8191_v3 = vld [vmem:[#allocation69_spill] sm:$0xff] }
  0x91   :  { %v2299_v27 = vsub.f32 %v8184_v11, %v7673_v37  ;;  %v469_v32 = vand.u32 4294901760, %v468_v7  ;;  %v481_v23 = vand.u32 4294901760, %v480_v18  ;;  %v2311_v20 = vsub.f32 %v8185_v17, %v7675_v49  ;;  %v8189_v18 = vld [vmem:[#allocation66_spill] sm:$0xff] }
  0x92   :  { %4262 = vmatpush1.bf16.msra.mxu0 %v4261_v29  ;;  %v7684_v26 = vand.u32 4294901760, %v8188_v9  ;;  %v4645_v24 = vpack.c.bf16 %v2294_v53, %v2282_v55  ;;  %v474_v21 = vsub.f32 %v8186_v0, %v7681_v42  ;;  %v486_v37 = vsub.f32 %v8187_v15, %v7683_v28  ;;  %v8190_v53 = vld [vmem:[#allocation68_spill] sm:$0xff] }
  0x93   :  { %v2300_v45 = vand.u32 4294901760, %v2299_v27  ;;  %v4263_v11 = vpack.c.bf16 %v481_v23, %v469_v32  ;;  %v2312_v29 = vand.u32 4294901760, %v2311_v20  ;;  %v7685_v49 = vand.u32 4294901760, %v8189_v18  ;;  %v8192_v20 = vld [vmem:[#allocation70_spill] sm:$0xff] }
  0x94   :  { %v2305_v7 = vsub.f32 %v8188_v9, %v7684_v26  ;;  %4646 = vmatpush1.bf16.msra.mxu1 %v4645_v24  ;;  %v475_v17 = vand.u32 4294901760, %v474_v21  ;;  %v487_v55 = vand.u32 4294901760, %v486_v37  ;;  %v7687_v27 = vand.u32 4294901760, %v8190_v53  ;;  %v8193_v21 = vld [vmem:[#allocation72_spill] sm:$0xff]  ;;  %v8199_v9 = vld [vmem:[#allocation81_spill] sm:$0xff] }
  0x95   :  { %v7688_v5 = vand.u32 4294901760, %v8191_v3  ;;  %4264 = vmatprep.subr.bf16.mxu0 %v4263_v11  ;;  %v4647_v42 = vpack.c.bf16 %v2312_v29, %v2300_v45  ;;  %v2317_v23 = vsub.f32 %v8189_v18, %v7685_v49  ;;  %v7691_v32 = vand.u32 4294901760, %v8192_v20  ;;  %v8194_v29 = vld [vmem:[#allocation74_spill] sm:$0xff]  ;;  %v8195_v49 = vld [vmem:[#allocation75_spill] sm:$0xff] }
  0x96   :  { %v2306_v0 = vand.u32 4294901760, %v2305_v7  ;;  %v4265_v28 = vpack.c.bf16 %v487_v55, %v475_v17  ;;  %v492_v24 = vsub.f32 %v8190_v53, %v7687_v27  ;;  %v7693_v26 = vand.u32 4294901760, %v8193_v21 }
  0x97   :  { %v504_v37 = vsub.f32 %v8191_v3, %v7688_v5  ;;  %4648 = vmatprep.subr.bf16.mxu1 %v4647_v42  ;;  %v2318_v11 = vand.u32 4294901760, %v2317_v23  ;;  %v2323_v45 = vsub.f32 %v8192_v20, %v7691_v32  ;;  %v7697_v7 = vand.u32 4294901760, %v8194_v29  ;;  %v8196_v5 = vld [vmem:[#allocation77_spill] sm:$0xff] }
  0x98   :  { %v7699_v17 = vand.u32 4294901760, %v8195_v49  ;;  %4266 = vmatpush1.bf16.msra.mxu0 %v4265_v28  ;;  %v493_v55 = vand.u32 4294901760, %v492_v24  ;;  %v2335_v27 = vsub.f32 %v8193_v21, %v7693_v26  ;;  %v7700_v3 = vand.u32 4294901760, %v8196_v5 }
  0x99   :  { %v505_v18 = vand.u32 4294901760, %v504_v37  ;;  %v4649_v53 = vpack.c.bf16 %v2318_v11, %v2306_v0  ;;  %v2324_v42 = vand.u32 4294901760, %v2323_v45  ;;  %v498_v23 = vsub.f32 %v8194_v29, %v7697_v7  ;;  %v8197_v37 = vld [vmem:[#allocation78_spill] sm:$0xff]  ;;  %v8198_v11 = vld [vmem:[#allocation80_spill] sm:$0xff] }
  0x9a   :  { %v510_v32 = vsub.f32 %v8195_v49, %v7699_v17  ;;  %v2336_v28 = vand.u32 4294901760, %v2335_v27  ;;  %v2329_v24 = vsub.f32 %v8196_v5, %v7700_v3  ;;  %v7701_v26 = vand.u32 4294901760, %v8197_v37  ;;  %v8200_v27 = vld [vmem:[#allocation82_spill] sm:$0xff]  ;;  %v8207_v5 = vld [vmem:[#allocation93_spill] sm:$0xff] }
  0x9b   :  { %v4267_v20 = vpack.c.bf16 %v505_v18, %v493_v55  ;;  %4650 = vmatpush1.bf16.msra.mxu1 %v4649_v53  ;;  %v499_v21 = vand.u32 4294901760, %v498_v23  ;;  %v7703_v45 = vand.u32 4294901760, %v8198_v11  ;;  %v7704_v15 = vand.u32 4294901760, %v8199_v9  ;;  %v8201_v23 = vld [vmem:[#allocation84_spill] sm:$0xff] }
  0x9c   :  { %v511_v0 = vand.u32 4294901760, %v510_v32  ;;  %v4651_v7 = vpack.c.bf16 %v2336_v28, %v2324_v42  ;;  %v2330_v29 = vand.u32 4294901760, %v2329_v24  ;;  %v2341_v18 = vsub.f32 %v8197_v37, %v7701_v26  ;;  %v8202_v28 = vld [vmem:[#allocation86_spill] sm:$0xff]  ;;  %v8203_v26 = vld [vmem:[#allocation87_spill] sm:$0xff] }
  0x9d   :  { %4268 = vmatprep.subr.bf16.mxu0 %v4267_v20  ;;  %v7707_v55 = vand.u32 4294901760, %v8200_v27  ;;  %v516_v53 = vsub.f32 %v8198_v11, %v7703_v45  ;;  %v528_v32 = vsub.f32 %v8199_v9, %v7704_v15  ;;  %v7709_v3 = vand.u32 4294901760, %v8201_v23  ;;  %v8204_v15 = vld [vmem:[#allocation89_spill] sm:$0xff] }
  0x9e   :  { %v4269_v17 = vpack.c.bf16 %v511_v0, %v499_v21  ;;  %4652 = vmatprep.subr.bf16.mxu1 %v4651_v7  ;;  %v2342_v20 = vand.u32 4294901760, %v2341_v18  ;;  %v7713_v24 = vand.u32 4294901760, %v8202_v28  ;;  %v7715_v21 = vand.u32 4294901760, %v8203_v26 }
  0x9f   :  { %v2347_v42 = vsub.f32 %v8200_v27, %v7707_v55  ;;  %v517_v0 = vand.u32 4294901760, %v516_v53  ;;  %v529_v37 = vand.u32 4294901760, %v528_v32  ;;  %v2359_v45 = vsub.f32 %v8201_v23, %v7709_v3  ;;  %v8205_v32 = vld [vmem:[#allocation90_spill] sm:$0xff] }
  0xa0   :  { %4270 = vmatpush1.bf16.msra.mxu0 %v4269_v17  ;;  %v7716_v9 = vand.u32 4294901760, %v8204_v15  ;;  %v4653_v11 = vpack.c.bf16 %v2342_v20, %v2330_v29  ;;  %v522_v18 = vsub.f32 %v8202_v28, %v7713_v24  ;;  %v534_v55 = vsub.f32 %v8203_v26, %v7715_v21  ;;  %v8206_v20 = vld [vmem:[#allocation92_spill] sm:$0xff] }
  0xa1   :  { %v2348_v7 = vand.u32 4294901760, %v2347_v42  ;;  %v4271_v27 = vpack.c.bf16 %v529_v37, %v517_v0  ;;  %v2360_v17 = vand.u32 4294901760, %v2359_v45  ;;  %v7717_v3 = vand.u32 4294901760, %v8205_v32  ;;  %v8208_v45 = vld [vmem:[#allocation94_spill] sm:$0xff] }
  0xa2   :  { %v2353_v53 = vsub.f32 %v8204_v15, %v7716_v9  ;;  %4654 = vmatpush1.bf16.msra.mxu1 %v4653_v11  ;;  %v523_v23 = vand.u32 4294901760, %v522_v18  ;;  %v535_v29 = vand.u32 4294901760, %v534_v55  ;;  %v7719_v42 = vand.u32 4294901760, %v8206_v20  ;;  %v8209_v18 = vld [vmem:[#allocation96_spill] sm:$0xff]  ;;  %v8215_v15 = vld [vmem:[#allocation105_spill] sm:$0xff] }
  0xa3   :  { %v7720_v49 = vand.u32 4294901760, %v8207_v5  ;;  %4272 = vmatprep.subr.bf16.mxu0 %v4271_v27  ;;  %v4655_v24 = vpack.c.bf16 %v2360_v17, %v2348_v7  ;;  %v2365_v37 = vsub.f32 %v8205_v32, %v7717_v3  ;;  %v7723_v0 = vand.u32 4294901760, %v8208_v45  ;;  %v8210_v17 = vld [vmem:[#allocation98_spill] sm:$0xff]  ;;  %v8211_v3 = vld [vmem:[#allocation99_spill] sm:$0xff] }
  0xa4   :  { %v2354_v28 = vand.u32 4294901760, %v2353_v53  ;;  %v4273_v21 = vpack.c.bf16 %v535_v29, %v523_v23  ;;  %v540_v11 = vsub.f32 %v8206_v20, %v7719_v42  ;;  %v7725_v9 = vand.u32 4294901760, %v8209_v18 }
  0xa5   :  { %v552_v55 = vsub.f32 %v8207_v5, %v7720_v49  ;;  %4656 = vmatprep.subr.bf16.mxu1 %v4655_v24  ;;  %v2366_v27 = vand.u32 4294901760, %v2365_v37  ;;  %v2371_v7 = vsub.f32 %v8208_v45, %v7723_v0  ;;  %v7729_v53 = vand.u32 4294901760, %v8210_v17  ;;  %v8212_v49 = vld [vmem:[#allocation101_spill] sm:$0xff] }
  0xa6   :  { %v7731_v23 = vand.u32 4294901760, %v8211_v3  ;;  %4274 = vmatpush1.bf16.msra.mxu0 %v4273_v21  ;;  %v541_v29 = vand.u32 4294901760, %v540_v11  ;;  %v2383_v42 = vsub.f32 %v8209_v18, %v7725_v9  ;;  %v7732_v5 = vand.u32 4294901760, %v8212_v49 }
  0xa7   :  { %v553_v32 = vand.u32 4294901760, %v552_v55  ;;  %v4657_v20 = vpack.c.bf16 %v2366_v27, %v2354_v28  ;;  %v2372_v24 = vand.u32 4294901760, %v2371_v7  ;;  %v546_v37 = vsub.f32 %v8210_v17, %v7729_v53  ;;  %v8213_v55 = vld [vmem:[#allocation102_spill] sm:$0xff]  ;;  %v8214_v27 = vld [vmem:[#allocation104_spill] sm:$0xff] }
  0xa8   :  { %v558_v0 = vsub.f32 %v8211_v3, %v7731_v23  ;;  %v2384_v21 = vand.u32 4294901760, %v2383_v42  ;;  %v2377_v11 = vsub.f32 %v8212_v49, %v7732_v5  ;;  %v7733_v9 = vand.u32 4294901760, %v8213_v55  ;;  %v8216_v42 = vld [vmem:[#allocation106_spill] sm:$0xff] }
  0xa9   :  { %v4275_v45 = vpack.c.bf16 %v553_v32, %v541_v29  ;;  %4658 = vmatpush1.bf16.msra.mxu1 %v4657_v20  ;;  %v547_v18 = vand.u32 4294901760, %v546_v37  ;;  %v7735_v7 = vand.u32 4294901760, %v8214_v27  ;;  %v7736_v26 = vand.u32 4294901760, %v8215_v15  ;;  %v8217_v37 = vld [vmem:[#allocation108_spill] sm:$0xff] }
  0xaa   :  { %v559_v28 = vand.u32 4294901760, %v558_v0  ;;  %v4659_v53 = vpack.c.bf16 %v2384_v21, %v2372_v24  ;;  %v2378_v17 = vand.u32 4294901760, %v2377_v11  ;;  %v2389_v32 = vsub.f32 %v8213_v55, %v7733_v9  ;;  %v8218_v21 = vld [vmem:[#allocation110_spill] sm:$0xff]  ;;  %v8219_v9 = vld [vmem:[#allocation111_spill] sm:$0xff] }
  0xab   :  { %4276 = vmatprep.subr.bf16.mxu0 %v4275_v45  ;;  %v7739_v29 = vand.u32 4294901760, %v8216_v42  ;;  %v564_v20 = vsub.f32 %v8214_v27, %v7735_v7  ;;  %v576_v0 = vsub.f32 %v8215_v15, %v7736_v26  ;;  %v7740_v5 = vand.u32 4294901760, %v8217_v37  ;;  %v8220_v26 = vld [vmem:[#allocation113_spill] sm:$0xff] }
  0xac   :  { %v4277_v23 = vpack.c.bf16 %v559_v28, %v547_v18  ;;  %4660 = vmatprep.subr.bf16.mxu1 %v4659_v53  ;;  %v2390_v45 = vand.u32 4294901760, %v2389_v32  ;;  %v7745_v11 = vand.u32 4294901760, %v8218_v21  ;;  %v7747_v18 = vand.u32 4294901760, %v8219_v9  ;;  %v35_v53 = vld [vmem:[%s7407_s1 + $0x18] sm:$0xff] }
  0xad   :  { %v2395_v24 = vsub.f32 %v8216_v42, %v7739_v29  ;;  %v565_v28 = vand.u32 4294901760, %v564_v20  ;;  %v577_v55 = vand.u32 4294901760, %v576_v0  ;;  %v2407_v7 = vsub.f32 %v8217_v37, %v7740_v5  ;;  %v8221_v37 = vld [vmem:[#allocation114_spill] sm:$0xff] }
  0xae   :  { %4278 = vmatpush1.bf16.msra.mxu0 %v4277_v23  ;;  %v7746_v15 = vand.u32 4294901760, %v8220_v26  ;;  %v4661_v32 = vpack.c.bf16 %v2390_v45, %v2378_v17  ;;  %v570_v29 = vsub.f32 %v8218_v21, %v7745_v11  ;;  %v582_v23 = vsub.f32 %v8219_v9, %v7747_v18  ;;  %v34_v11 = vld [vmem:[%s7407_s1 + $0x10] sm:$0xff] }
  0xaf   :  { %v2396_v27 = vand.u32 4294901760, %v2395_v24  ;;  %v4279_v20 = vpack.c.bf16 %v577_v55, %v565_v28  ;;  %v2408_v0 = vand.u32 4294901760, %v2407_v7  ;;  %v7750_v42 = vand.u32 4294901760, %v8221_v37  ;;  %v8223_v24 = vld [vmem:[#allocation116_spill] sm:$0xff] }
  0xb0   :  { %v2401_v5 = vsub.f32 %v8220_v26, %v7746_v15  ;;  %4662 = vmatpush1.bf16.msra.mxu1 %v4661_v32  ;;  %v571_v49 = vand.u32 4294901760, %v570_v29  ;;  %v583_v17 = vand.u32 4294901760, %v582_v23  ;;  %v5989_v45 = vand.u32 4294901760, %v35_v53  ;;  %v8224_v15 = vld [vmem:[#allocation117_spill] sm:$0xff]  ;;  %v8226_v26 = vld [vmem:[#allocation118_spill] sm:$0xff] }
  0xb1   :  { %v7751_v3 = vand.u32 4294901760, %v8223_v24  ;;  %4280 = vmatprep.subr.bf16.mxu0 %v4279_v20  ;;  %v4663_v55 = vpack.c.bf16 %v2408_v0, %v2396_v27  ;;  %v2413_v28 = vsub.f32 %v8221_v37, %v7750_v42  ;;  %v7753_v18 = vand.u32 4294901760, %v8224_v15  ;;  %v8227_v27 = vld [vmem:[#allocation120_spill] sm:$0xff] }
  0xb2   :  { %8222 = vst [vmem:[#allocation202_spill] sm:$0xff] %v5989_v45  ;;  %v2402_v7 = vand.u32 4294901760, %v2401_v5  ;;  %v4281_v32 = vpack.c.bf16 %v583_v17, %v571_v49  ;;  %v6000_v29 = vsub.f32 %v35_v53, %v5989_v45  ;;  %v7756_v9 = vand.u32 4294901760, %v8226_v26 }
  0xb3   :  { %v588_v23 = vsub.f32 %v8223_v24, %v7751_v3  ;;  %4664 = vmatprep.subr.bf16.mxu1 %v4663_v55  ;;  %v2414_v20 = vand.u32 4294901760, %v2413_v28  ;;  %v600_v5 = vsub.f32 %v8224_v15, %v7753_v18  ;;  %v7758_v0 = vand.u32 4294901760, %v8227_v27  ;;  %v8230_v3 = vld [vmem:[#allocation122_spill] sm:$0xff] }
  0xb4   :  { %8225 = vst [vmem:[#allocation203_spill] sm:$0xff] %v6000_v29  ;;  %v6010_v42 = vand.u32 4294901760, %v34_v11  ;;  %4282 = vmatpush1.bf16.msra.mxu0 %v4281_v32  ;;  %v6013_v49 = vand.u32 4294901760, %v6000_v29  ;;  %v2419_v17 = vsub.f32 %v8226_v26, %v7756_v9  ;;  %v7762_v55 = vand.u32 4294901760, %v8230_v3  ;;  %v8232_v9 = vld [vmem:[#allocation123_spill] sm:$0xff] }
  0xb5   :  { %v589_v53 = vand.u32 4294901760, %v588_v23  ;;  %v4665_v28 = vpack.c.bf16 %v2414_v20, %v2402_v7  ;;  %v601_v24 = vand.u32 4294901760, %v600_v5  ;;  %v2431_v18 = vsub.f32 %v8227_v27, %v7758_v0  ;;  %v37_v7 = vld [vmem:[%s7407_s1 + $0x28] sm:$0xff] }
  0xb6   :  { %8228 = vst [vmem:[#allocation204_spill] sm:$0xff] %v6010_v42  ;;  %8229 = vst [vmem:[#allocation205_spill] sm:$0xff] %v6013_v49  ;;  %v6023_v15 = vsub.f32 %v34_v11, %v6010_v42  ;;  %v259_v32 = vsub.f32 %v6000_v29, %v6013_v49  ;;  %v2420_v37 = vand.u32 4294901760, %v2419_v17  ;;  %v594_v23 = vsub.f32 %v8230_v3, %v7762_v55  ;;  %v8234_v0 = vld [vmem:[#allocation125_spill] sm:$0xff]  ;;  %v8235_v29 = vld [vmem:[#allocation126_spill] sm:$0xff] }
  0xb7   :  { %v7767_v26 = vand.u32 4294901760, %v8232_v9  ;;  %4666 = vmatpush1.bf16.msra.mxu1 %v4665_v28  ;;  %v4283_v20 = vpack.c.bf16 %v601_v24, %v589_v53  ;;  %v2432_v5 = vand.u32 4294901760, %v2431_v18  ;;  %v7770_v27 = vand.u32 4294901760, %v8234_v0 }
  0xb8   :  { %8231 = vst [vmem:[#allocation206_spill] sm:$0xff] %v6023_v15  ;;  %v6035_v11 = vand.u32 4294901760, %v6023_v15  ;;  %v260_v49 = vand.u32 4294901760, %v259_v32  ;;  %v595_v17 = vand.u32 4294901760, %v594_v23  ;;  %v7775_v3 = vand.u32 4294901760, %v8235_v29  ;;  %v8237_v23 = vld [vmem:[#allocation128_spill] sm:$0xff] }
  0xb9   :  { %v606_v55 = vsub.f32 %v8232_v9, %v7767_v26  ;;  %4284 = vmatprep.subr.bf16.mxu0 %v4283_v20  ;;  %v4667_v21 = vpack.c.bf16 %v2432_v5, %v2420_v37  ;;  %v2425_v18 = vsub.f32 %v8234_v0, %v7770_v27  ;;  %v6047_v24 = vand.u32 4294901760, %v37_v7  ;;  %v8238_v20 = vld [vmem:[#allocation129_spill] sm:$0xff]  ;;  %v36_v5 = vld [vmem:[%s7407_s1 + $0x20] sm:$0xff] }
  0xba   :  { %8233 = vst [vmem:[#allocation207_spill] sm:$0xff] %v6035_v11  ;;  %v265_v28 = vsub.f32 %v6023_v15, %v6035_v11  ;;  %261 = vmatprep.mubr.f32.mxu0 %v260_v49  ;;  %2092 = vmatprep.mubr.f32.mxu1 %v260_v49  ;;  %v2437_v32 = vsub.f32 %v8235_v29, %v7775_v3  ;;  %v7777_v26 = vand.u32 4294901760, %v8237_v23  ;;  %v7781_v37 = vand.u32 4294901760, %v8238_v20  ;;  %v8240_v49 = vld [vmem:[#allocation130_spill] sm:$0xff] }
  0xbb   :  { %8236 = vst [vmem:[#allocation208_spill] sm:$0xff] %v6047_v24  ;;  %v607_v53 = vand.u32 4294901760, %v606_v55  ;;  %4668 = vmatprep.subr.bf16.mxu1 %v4667_v21  ;;  %v2426_v27 = vand.u32 4294901760, %v2425_v18  ;;  %v6058_v15 = vsub.f32 %v37_v7, %v6047_v24  ;;  %v7783_v55 = vand.u32 4294901760, %v8240_v49 }
  0xbc   :  { %v266_v11 = vand.u32 4294901760, %v265_v28  ;;  %v2438_v9 = vand.u32 4294901760, %v2437_v32  ;;  %v612_v3 = vsub.f32 %v8237_v23, %v7777_v26  ;;  %v624_v29 = vsub.f32 %v8238_v20, %v7781_v37  ;;  %v8242_v28 = vld [vmem:[#allocation132_spill] sm:$0xff]  ;;  %v8244_v23 = vld [vmem:[#allocation134_spill] sm:$0xff] }
  0xbd   :  { %8239 = vst [vmem:[#allocation209_spill] sm:$0xff] %v6058_v15  ;;  %v4285_v0 = vpack.c.bf16 %v607_v53, %v595_v17  ;;  %v6068_v21 = vand.u32 4294901760, %v6058_v15  ;;  %v2443_v7 = vsub.f32 %v8240_v49, %v7783_v55  ;;  %v7789_v17 = vand.u32 4294901760, %v8242_v28 }
  0xbe   :  { %267 = vmatmul.mubr.f32.gmra.mrb[2].mxu0 %v266_v11  ;;  %2098 = vmatmul.mubr.f32.gmra.mrb[2].mxu1 %v266_v11  ;;  %v6074_v18 = vand.u32 4294901760, %v36_v5  ;;  %v4669_v53 = vpack.c.bf16 %v2438_v9, %v2426_v27  ;;  %v613_v32 = vand.u32 4294901760, %v612_v3  ;;  %v625_v26 = vand.u32 4294901760, %v624_v29  ;;  %v8246_v29 = vld [vmem:[#allocation135_spill] sm:$0xff] }
  0xbf   :  { %8241 = vst [vmem:[#allocation210_spill] sm:$0xff] %v6068_v21  ;;  %4286 = vmatpush1.bf16.msra.mxu0 %v4285_v0  ;;  %v7793_v24 = vand.u32 4294901760, %v8244_v23  ;;  %v275_v11 = vsub.f32 %v6058_v15, %v6068_v21  ;;  %v2444_v37 = vand.u32 4294901760, %v2443_v7  ;;  %v2455_v20 = vsub.f32 %v8242_v28, %v7789_v17  ;;  %v39_v0 = vld [vmem:[%s7407_s1 + $0x38] sm:$0xff]  ;;  %v8247_v7 = vld [vmem:[#allocation137_spill] sm:$0xff] }
  0xc0   :  { %8243 = vst [vmem:[#allocation211_spill] sm:$0xff] %v6074_v18  ;;  %v6083_v55 = vsub.f32 %v36_v5, %v6074_v18  ;;  %4670 = vmatpush1.bf16.msra.mxu1 %v4669_v53  ;;  %v4287_v3 = vpack.c.bf16 %v625_v26, %v613_v32  ;;  %v7795_v27 = vand.u32 4294901760, %v8246_v29  ;;  %v7797_v21 = vand.u32 4294901760, %v8247_v7  ;;  %v8249_v5 = vld [vmem:[#allocation138_spill] sm:$0xff] }
  0xc1   :  { %v618_v9 = vsub.f32 %v8244_v23, %v7793_v24  ;;  %v276_v15 = vand.u32 4294901760, %v275_v11  ;;  %v2456_v49 = vand.u32 4294901760, %v2455_v20  ;;  %v7799_v28 = vand.u32 4294901760, %v8249_v5 }
  0xc2   :  { %8245 = vst [vmem:[#allocation212_spill] sm:$0xff] %v6083_v55  ;;  %v6094_v17 = vand.u32 4294901760, %v6083_v55  ;;  %4288 = vmatprep.subr.bf16.mxu0 %v4287_v3  ;;  %v630_v26 = vsub.f32 %v8246_v29, %v7795_v27  ;;  %v2449_v53 = vsub.f32 %v8247_v7, %v7797_v21  ;;  %v6103_v32 = vand.u32 4294901760, %v39_v0  ;;  %v8253_v21 = vld [vmem:[#allocation141_spill] sm:$0xff] }
  0xc3   :  { %v619_v18 = vand.u32 4294901760, %v618_v9  ;;  %277 = vmatprep.mubr.f32.mxu0 %v276_v15  ;;  %2108 = vmatprep.mubr.f32.mxu1 %v276_v15  ;;  %v4671_v20 = vpack.c.bf16 %v2456_v49, %v2444_v37  ;;  %v2461_v3 = vsub.f32 %v8249_v5, %v7799_v28  ;;  %v8251_v9 = vld [vmem:[#allocation140_spill] sm:$0xff]  ;;  %v7808_v7 = vand.u32 4294901760, %v8253_v21  ;;  %v38_v15 = vld [vmem:[%s7407_s1 + $0x30] sm:$0xff] }
  0xc4   :  { %8248 = vst [vmem:[#allocation213_spill] sm:$0xff] %v6094_v17  ;;  %8250 = vst [vmem:[#allocation214_spill] sm:$0xff] %v6103_v32  ;;  %v281_v11 = vsub.f32 %v6083_v55, %v6094_v17  ;;  %v7807_v24 = vand.u32 4294901760, %v8251_v9  ;;  %v631_v23 = vand.u32 4294901760, %v630_v26  ;;  %v2450_v27 = vand.u32 4294901760, %v2449_v53  ;;  %v8254_v17 = vld [vmem:[#allocation142_spill] sm:$0xff] }
  0xc5   :  { %v6112_v29 = vsub.f32 %v39_v0, %v6103_v32  ;;  %4672 = vmatprep.subr.bf16.mxu1 %v4671_v20  ;;  %v2462_v49 = vand.u32 4294901760, %v2461_v3  ;;  %v7811_v55 = vand.u32 4294901760, %v8254_v17  ;;  %v648_v0 = vsub.f32 %v8253_v21, %v7808_v7  ;;  %v8256_v5 = vld [vmem:[#allocation144_spill] sm:$0xff]  ;;  %v8258_v21 = vld [vmem:[#allocation146_spill] sm:$0xff] }
  0xc6   :  { %v282_v37 = vand.u32 4294901760, %v281_v11  ;;  %v636_v28 = vsub.f32 %v8251_v9, %v7807_v24  ;;  %v4289_v26 = vpack.c.bf16 %v631_v23, %v619_v18  ;;  %v7817_v32 = vand.u32 4294901760, %v8256_v5 }
  0xc7   :  { %8252 = vst [vmem:[#allocation215_spill] sm:$0xff] %v6112_v29  ;;  %v6123_v53 = vand.u32 4294901760, %v6112_v29  ;;  %v4673_v20 = vpack.c.bf16 %v2462_v49, %v2450_v27  ;;  %v2467_v3 = vsub.f32 %v8254_v17, %v7811_v55  ;;  %v6132_v24 = vand.u32 4294901760, %v38_v15  ;;  %v8261_v55 = vld [vmem:[#allocation149_spill] sm:$0xff] }
  0xc8   :  { %283 = vmatmul.mubr.f32.gmra.mrb[4].mxu0 %v282_v37  ;;  %2114 = vmatmul.mubr.f32.gmra.mrb[4].mxu1 %v282_v37  ;;  %v637_v11 = vand.u32 4294901760, %v636_v28  ;;  %v649_v18 = vand.u32 4294901760, %v648_v0  ;;  %v2479_v7 = vsub.f32 %v8256_v5, %v7817_v32  ;;  %v7821_v9 = vand.u32 4294901760, %v8258_v21  ;;  %v8260_v37 = vld [vmem:[#allocation147_spill] sm:$0xff] }
  0xc9   :  { %8255 = vst [vmem:[#allocation216_spill] sm:$0xff] %v6123_v53  ;;  %8257 = vst [vmem:[#allocation217_spill] sm:$0xff] %v6132_v24  ;;  %4290 = vmatpush1.bf16.msra.mxu0 %v4289_v26  ;;  %v291_v23 = vsub.f32 %v6112_v29, %v6123_v53  ;;  %4674 = vmatpush1.bf16.msra.mxu1 %v4673_v20  ;;  %v2468_v27 = vand.u32 4294901760, %v2467_v3  ;;  %v6141_v28 = vsub.f32 %v38_v15, %v6132_v24  ;;  %v41_v26 = vld [vmem:[%s7407_s1 + $0x48] sm:$0xff]  ;;  %v8263_v24 = vld [vmem:[#allocation150_spill] sm:$0xff] }
  0xca   :  { %v7825_v49 = vand.u32 4294901760, %v8260_v37  ;;  %v7826_v17 = vand.u32 4294901760, %v8261_v55  ;;  %v4291_v53 = vpack.c.bf16 %v649_v18, %v637_v11  ;;  %v2480_v29 = vand.u32 4294901760, %v2479_v7  ;;  %v8265_v18 = vld [vmem:[#allocation152_spill] sm:$0xff] }
  0xcb   :  { %8259 = vst [vmem:[#allocation218_spill] sm:$0xff] %v6141_v28  ;;  %v292_v0 = vand.u32 4294901760, %v291_v23  ;;  %v642_v32 = vsub.f32 %v8258_v21, %v7821_v9  ;;  %v6152_v20 = vand.u32 4294901760, %v6141_v28  ;;  %v7832_v5 = vand.u32 4294901760, %v8263_v24 }
  0xcc   :  { %v654_v15 = vsub.f32 %v8260_v37, %v7825_v49  ;;  %v2473_v3 = vsub.f32 %v8261_v55, %v7826_v17  ;;  %4292 = vmatprep.subr.bf16.mxu0 %v4291_v53  ;;  %v4675_v7 = vpack.c.bf16 %v2480_v29, %v2468_v27  ;;  %v6161_v23 = vand.u32 4294901760, %v41_v26  ;;  %v8268_v27 = vld [vmem:[#allocation154_spill] sm:$0xff]  ;;  %v8273_v37 = vld [vmem:[#allocation159_spill] sm:$0xff] }
  0xcd   :  { %8262 = vst [vmem:[#allocation219_spill] sm:$0xff] %v6152_v20  ;;  %293 = vmatprep.mubr.f32.mxu0 %v292_v0  ;;  %v643_v11 = vand.u32 4294901760, %v642_v32  ;;  %v7835_v9 = vand.u32 4294901760, %v8265_v18  ;;  %2124 = vmatprep.mubr.f32.mxu1 %v292_v0  ;;  %v297_v21 = vsub.f32 %v6141_v28, %v6152_v20  ;;  %v2485_v17 = vsub.f32 %v8263_v24, %v7832_v5  ;;  %v8267_v32 = vld [vmem:[#allocation153_spill] sm:$0xff]  ;;  %v8269_v5 = vld [vmem:[#allocation156_spill] sm:$0xff] }
  0xce   :  { %8264 = vst [vmem:[#allocation220_spill] sm:$0xff] %v6161_v23  ;;  %v655_v57 = vand.u32 4294901760, %v654_v15  ;;  %v2474_v49 = vand.u32 4294901760, %v2473_v3  ;;  %4676 = vmatprep.subr.bf16.mxu1 %v4675_v7  ;;  %v6170_v55 = vsub.f32 %v41_v26, %v6161_v23  ;;  %v7838_v53 = vand.u32 4294901760, %v8267_v32  ;;  %v40_v15 = vld [vmem:[%s7407_s1 + $0x40] sm:$0xff] }
  0xcf   :  { %v660_v29 = vsub.f32 %v8265_v18, %v7835_v9  ;;  %v7843_v0 = vand.u32 4294901760, %v8268_v27  ;;  %v298_v3 = vand.u32 4294901760, %v297_v21  ;;  %v2486_v28 = vand.u32 4294901760, %v2485_v17  ;;  %v8272_v17 = vld [vmem:[#allocation158_spill] sm:$0xff] }
  0xd0   :  { %8266 = vst [vmem:[#allocation221_spill] sm:$0xff] %v6170_v55  ;;  %v4293_v20 = vpack.c.bf16 %v655_v57, %v643_v11  ;;  %v7844_v7 = vand.u32 4294901760, %v8269_v5  ;;  %v6182_v26 = vand.u32 4294901760, %v6170_v55  ;;  %v672_v9 = vsub.f32 %v8267_v32, %v7838_v53 }
  0xd1   :  { %v661_v23 = vand.u32 4294901760, %v660_v29  ;;  %v2491_v18 = vsub.f32 %v8268_v27, %v7843_v0  ;;  %299 = vmatmul.mubr.f32.gmra.mrb[6].mxu0 %v298_v3  ;;  %2130 = vmatmul.mubr.f32.gmra.mrb[6].mxu1 %v298_v3  ;;  %v4677_v24 = vpack.c.bf16 %v2486_v28, %v2474_v49  ;;  %v6193_v21 = vand.u32 4294901760, %v40_v15  ;;  %v8275_v3 = vld [vmem:[#allocation161_spill] sm:$0xff] }
  0xd2   :  { %8270 = vst [vmem:[#allocation154_spill] sm:$0xff] %v6182_v26  ;;  %v2503_v57 = vsub.f32 %v8269_v5, %v7844_v7  ;;  %v7851_v11 = vand.u32 4294901760, %v8272_v17  ;;  %4294 = vmatpush1.bf16.msra.mxu0 %v4293_v20  ;;  %v307_v29 = vsub.f32 %v6170_v55, %v6182_v26  ;;  %v673_v53 = vand.u32 4294901760, %v672_v9  ;;  %v43_v20 = vld [vmem:[%s7407_s1 + $0x58] sm:$0xff] }
  0xd3   :  { %8271 = vst [vmem:[#allocation156_spill] sm:$0xff] %v6193_v21  ;;  %v2492_v32 = vand.u32 4294901760, %v2491_v18  ;;  %v7853_v30 = vand.u32 4294901760, %v8273_v37  ;;  %4678 = vmatpush1.bf16.msra.mxu1 %v4677_v24  ;;  %v6200_v28 = vsub.f32 %v40_v15, %v6193_v21  ;;  %v7855_v7 = vand.u32 4294901760, %v8275_v3  ;;  %v8276_v18 = vld [vmem:[#allocation162_spill] sm:$0xff] }
  0xd4   :  { %v2504_v0 = vand.u32 4294901760, %v2503_v57  ;;  %v666_v49 = vsub.f32 %v8272_v17, %v7851_v11  ;;  %v308_v26 = vand.u32 4294901760, %v307_v29  ;;  %v4295_v9 = vpack.c.bf16 %v673_v53, %v661_v23  ;;  %v8279_v29 = vld [vmem:[#allocation164_spill] sm:$0xff] }
  0xd5   :  { %8274 = vst [vmem:[#allocation222_spill] sm:$0xff] %v6200_v28  ;;  %v678_v24 = vsub.f32 %v8273_v37, %v7853_v30  ;;  %v7857_v57 = vand.u32 4294901760, %v8276_v18  ;;  %v6214_v55 = vand.u32 4294901760, %v6200_v28  ;;  %v2497_v11 = vsub.f32 %v8275_v3, %v7855_v7  ;;  %v8281_v7 = vld [vmem:[#allocation166_spill] sm:$0xff] }
  0xd6   :  { %v4679_v15 = vpack.c.bf16 %v2504_v0, %v2492_v32  ;;  %v667_v21 = vand.u32 4294901760, %v666_v49  ;;  %309 = vmatprep.mubr.f32.mxu0 %v308_v26  ;;  %4296 = vmatprep.subr.bf16.mxu0 %v4295_v9  ;;  %v6222_v53 = vand.u32 4294901760, %v43_v20  ;;  %v7863_v30 = vand.u32 4294901760, %v8279_v29  ;;  %v8280_v49 = vld [vmem:[#allocation165_spill] sm:$0xff]  ;;  %v42_v9 = vld [vmem:[%s7407_s1 + $0x50] sm:$0xff] }
  0xd7   :  { %8277 = vst [vmem:[#allocation223_spill] sm:$0xff] %v6214_v55  ;;  %v679_v17 = vand.u32 4294901760, %v678_v24  ;;  %v2509_v23 = vsub.f32 %v8276_v18, %v7857_v57  ;;  %2140 = vmatprep.mubr.f32.mxu1 %v308_v26  ;;  %v313_v32 = vsub.f32 %v6200_v28, %v6214_v55  ;;  %v2498_v0 = vand.u32 4294901760, %v2497_v11 }
  0xd8   :  { %8278 = vst [vmem:[#allocation224_spill] sm:$0xff] %v6222_v53  ;;  %4680 = vmatprep.subr.bf16.mxu1 %v4679_v15  ;;  %v7864_v37 = vand.u32 4294901760, %v8280_v49  ;;  %v7867_v3 = vand.u32 4294901760, %v8281_v7  ;;  %v6233_v18 = vsub.f32 %v43_v20, %v6222_v53  ;;  %v684_v26 = vsub.f32 %v8279_v29, %v7863_v30  ;;  %v8285_v53 = vld [vmem:[#allocation170_spill] sm:$0xff] }
  0xd9   :  { %v4297_v24 = vpack.c.bf16 %v679_v17, %v667_v21  ;;  %v2510_v57 = vand.u32 4294901760, %v2509_v23  ;;  %v314_v15 = vand.u32 4294901760, %v313_v32  ;;  %v7870_v28 = vand.u32 4294901760, %v5602_v54 }
  0xda   :  { %8282 = vst [vmem:[#allocation225_spill] sm:$0xff] %v6233_v18  ;;  %v696_v11 = vsub.f32 %v8280_v49, %v7864_v37  ;;  %v2515_v55 = vsub.f32 %v8281_v7, %v7867_v3  ;;  %v6246_v17 = vand.u32 4294901760, %v6233_v18  ;;  %v685_v20 = vand.u32 4294901760, %v684_v26  ;;  %v8288_v7 = vld [vmem:[#allocation173_spill] sm:$0xff] }
  0xdb   :  { %4298 = vmatpush1.bf16.msra.mxu0 %v4297_v24  ;;  %v4681_v21 = vpack.c.bf16 %v2510_v57, %v2498_v0  ;;  %v6248_v23 = vand.u32 4294901760, %v42_v9  ;;  %2146 = vmatmul.mubr.f32.gmra.mrb[8].mxu1 %v314_v15  ;;  %v2527_v37 = vsub.f32 %v5602_v54, %v7870_v28  ;;  %v7879_v3 = vand.u32 4294901760, %v8285_v53  ;;  %v8287_v24 = vld [vmem:[#allocation171_spill] sm:$0xff]  ;;  %v8289_v28 = vld [vmem:[#allocation174_spill] sm:$0xff] }
  0xdc   :  { %8283 = vst [vmem:[#allocation226_spill] sm:$0xff] %v6246_v17  ;;  %315 = vmatmul.mubr.f32.gmra.mrb[8].mxu0 %v314_v15  ;;  %v697_v32 = vand.u32 4294901760, %v696_v11  ;;  %v2516_v30 = vand.u32 4294901760, %v2515_v55  ;;  %v323_v57 = vsub.f32 %v6233_v18, %v6246_v17  ;;  %v7881_v26 = vand.u32 4294901760, %v8287_v24  ;;  %v45_v55 = vld [vmem:[%s7407_s1 + $0x68] sm:$0xff] }
  0xdd   :  { %8284 = vst [vmem:[#allocation227_spill] sm:$0xff] %v6248_v23  ;;  %4682 = vmatpush1.bf16.msra.mxu1 %v4681_v21  ;;  %v6257_v0 = vsub.f32 %v42_v9, %v6248_v23  ;;  %v2528_v11 = vand.u32 4294901760, %v2527_v37  ;;  %v690_v21 = vsub.f32 %v8285_v53, %v7879_v3  ;;  %v7884_v54 = vand.u32 4294901760, %v8289_v28 }
  0xde   :  { %v4299_v15 = vpack.c.bf16 %v697_v32, %v685_v20  ;;  %v324_v17 = vand.u32 4294901760, %v323_v57  ;;  %v702_v49 = vsub.f32 %v8287_v24, %v7881_v26  ;;  %v8291_v18 = vand.u32 4294901760, %v8288_v7  ;;  %v8293_v24 = vld [vmem:[#allocation176_spill] sm:$0xff] }
  0xdf   :  { %8286 = vst [vmem:[#allocation228_spill] sm:$0xff] %v6257_v0  ;;  %v6269_v9 = vand.u32 4294901760, %v6257_v0  ;;  %v4683_v37 = vpack.c.bf16 %v2528_v11, %v2516_v30  ;;  %v691_v20 = vand.u32 4294901760, %v690_v21  ;;  %v2533_v32 = vsub.f32 %v8289_v28, %v7884_v54  ;;  %v8296_v21 = vld [vmem:[#allocation178_spill] sm:$0xff] }
  0xe0   :  { %v2521_v23 = vsub.f32 %v8288_v7, %v8291_v18  ;;  %4300 = vmatprep.subr.bf16.mxu0 %v4299_v15  ;;  %v6280_v3 = vand.u32 4294901760, %v45_v55  ;;  %325 = vmatprep.mubr.f32.mxu0 %v324_v17  ;;  %v703_v53 = vand.u32 4294901760, %v702_v49  ;;  %v7890_v29 = vand.u32 4294901760, %v8293_v24  ;;  %v8295_v15 = vld [vmem:[#allocation177_spill] sm:$0xff] }
  0xe1   :  { %8290 = vst [vmem:[#allocation229_spill] sm:$0xff] %v6269_v9  ;;  %2156 = vmatprep.mubr.f32.mxu1 %v324_v17  ;;  %v329_v57 = vsub.f32 %v6257_v0, %v6269_v9  ;;  %4684 = vmatprep.subr.bf16.mxu1 %v4683_v37  ;;  %v2534_v18 = vand.u32 4294901760, %v2533_v32  ;;  %v7889_v11 = vand.u32 4294901760, %v8295_v15  ;;  %v7891_v54 = vand.u32 4294901760, %v8296_v21  ;;  %v44_v17 = vld [vmem:[%s7407_s1 + $0x60] sm:$0xff] }
  0xe2   :  { %8292 = vst [vmem:[#allocation230_spill] sm:$0xff] %v6280_v3  ;;  %v2522_v26 = vand.u32 4294901760, %v2521_v23  ;;  %v6286_v30 = vsub.f32 %v45_v55, %v6280_v3  ;;  %v4301_v7 = vpack.c.bf16 %v703_v53, %v691_v20  ;;  %v708_v49 = vsub.f32 %v8293_v24, %v7890_v29 }
  0xe3   :  { %v330_v28 = vand.u32 4294901760, %v329_v57  ;;  %v7894_v23 = vand.u32 4294901760, %v5630_v60  ;;  %v720_v32 = vsub.f32 %v8295_v15, %v7889_v11  ;;  %v2539_v9 = vsub.f32 %v8296_v21, %v7891_v54 }
  0xe4   :  { %8294 = vst [vmem:[#allocation176_spill] sm:$0xff] %v6286_v30  ;;  %v4685_v37 = vpack.c.bf16 %v2534_v18, %v2522_v26  ;;  %v6298_v55 = vand.u32 4294901760, %v6286_v30  ;;  %v709_v53 = vand.u32 4294901760, %v708_v49  ;;  %v6309_v57 = vand.u32 4294901760, %v44_v17  ;;  %4302 = vmatpush1.bf16.msra.mxu0 %v4301_v7  ;;  %v47_v7 = vld [vmem:[%s7407_s1 + $0x78] sm:$0xff] }
  0xe5   :  { %331 = vmatmul.mubr.f32.gmra.mrb[10].mxu0 %v330_v28  ;;  %2162 = vmatmul.mubr.f32.gmra.mrb[10].mxu1 %v330_v28  ;;  %v2551_v20 = vsub.f32 %v5630_v60, %v7894_v23  ;;  %v7899_v26 = vand.u32 4294901760, %v5634_v31  ;;  %v721_v11 = vand.u32 4294901760, %v720_v32  ;;  %v2540_v29 = vand.u32 4294901760, %v2539_v9 }
  0xe6   :  { %8297 = vst [vmem:[#allocation177_spill] sm:$0xff] %v6298_v55  ;;  %8298 = vst [vmem:[#allocation178_spill] sm:$0xff] %v6309_v57  ;;  %4686 = vmatpush1.bf16.msra.mxu1 %v4685_v37  ;;  %v339_v18 = vsub.f32 %v6286_v30, %v6298_v55  ;;  %v7902_v54 = vand.u32 4294901760, %v5636_v38  ;;  %v6316_v28 = vsub.f32 %v44_v17, %v6309_v57  ;;  %v7903_v23 = vand.u32 4294901760, %v5640_v14 }
  0xe7   :  { %v2552_v0 = vand.u32 4294901760, %v2551_v20  ;;  %v714_v49 = vsub.f32 %v5634_v31, %v7899_v26  ;;  %v4303_v55 = vpack.c.bf16 %v721_v11, %v709_v53  ;;  %v7906_v32 = vand.u32 4294901760, %v5642_v36 }
  0xe8   :  { %8299 = vst [vmem:[#allocation231_spill] sm:$0xff] %v6316_v28  ;;  %v340_v37 = vand.u32 4294901760, %v339_v18  ;;  %v726_v9 = vsub.f32 %v5636_v38, %v7902_v54  ;;  %v6330_v20 = vand.u32 4294901760, %v6316_v28  ;;  %v2545_v26 = vsub.f32 %v5640_v14, %v7903_v23  ;;  %v8303_v23 = vld [vmem:[#allocation187_spill] sm:$0xff] }
  0xe9   :  { %v4687_v17 = vpack.c.bf16 %v2552_v0, %v2540_v29  ;;  %v715_v30 = vand.u32 4294901760, %v714_v49  ;;  %4304 = vmatprep.subr.bf16.mxu0 %v4303_v55  ;;  %v2557_v11 = vsub.f32 %v5642_v36, %v7906_v32  ;;  %v6338_v53 = vand.u32 4294901760, %v47_v7  ;;  %v8302_v49 = vld [vmem:[#allocation186_spill] sm:$0xff] }
  0xea   :  { %8300 = vst [vmem:[#allocation232_spill] sm:$0xff] %v6330_v20  ;;  %341 = vmatprep.mubr.f32.mxu0 %v340_v37  ;;  %v727_v57 = vand.u32 4294901760, %v726_v9  ;;  %v7913_v18 = vand.u32 4294901760, %v5651_v22  ;;  %2172 = vmatprep.mubr.f32.mxu1 %v340_v37  ;;  %v345_v29 = vsub.f32 %v6316_v28, %v6330_v20  ;;  %v2546_v0 = vand.u32 4294901760, %v2545_v26  ;;  %v46_v55 = vld [vmem:[%s7407_s1 + $0x70] sm:$0xff] }
  0xeb   :  { %8301 = vst [vmem:[#allocation233_spill] sm:$0xff] %v6338_v53  ;;  %4688 = vmatprep.subr.bf16.mxu1 %v4687_v17  ;;  %v7914_v54 = vand.u32 4294901760, %v8302_v49  ;;  %v7915_v3 = vand.u32 4294901760, %v8303_v23  ;;  %v2558_v32 = vand.u32 4294901760, %v2557_v11  ;;  %v6349_v36 = vsub.f32 %v47_v7, %v6338_v53 }
  0xec   :  { %v4305_v9 = vpack.c.bf16 %v727_v57, %v715_v30  ;;  %v732_v37 = vsub.f32 %v5651_v22, %v7913_v18  ;;  %v346_v17 = vand.u32 4294901760, %v345_v29  ;;  %v7916_v28 = vand.u32 4294901760, %v5664_v59 }
  0xed   :  { %8304 = vst [vmem:[#allocation234_spill] sm:$0xff] %v6349_v36  ;;  %v744_v26 = vsub.f32 %v8302_v49, %v7914_v54  ;;  %v2563_v20 = vsub.f32 %v8303_v23, %v7915_v3  ;;  %v4689_v30 = vpack.c.bf16 %v2558_v32, %v2546_v0  ;;  %v6362_v57 = vand.u32 4294901760, %v6349_v36 }
  0xee   :  { %4306 = vmatpush1.bf16.msra.mxu0 %v4305_v9  ;;  %v733_v7 = vand.u32 4294901760, %v732_v37  ;;  %v6364_v11 = vand.u32 4294901760, %v46_v55  ;;  %2178 = vmatmul.mubr.f32.gmra.mrb[12].mxu1 %v346_v17  ;;  %v2575_v54 = vsub.f32 %v5664_v59, %v7916_v28  ;;  %v7921_v3 = vand.u32 4294901760, %v5668_v47 }
  0xef   :  { %8305 = vst [vmem:[#allocation235_spill] sm:$0xff] %v6362_v57  ;;  %347 = vmatmul.mubr.f32.gmra.mrb[12].mxu0 %v346_v17  ;;  %v745_v29 = vand.u32 4294901760, %v744_v26  ;;  %v2564_v18 = vand.u32 4294901760, %v2563_v20  ;;  %4690 = vmatpush1.bf16.msra.mxu1 %v4689_v30  ;;  %v355_v32 = vsub.f32 %v6349_v36, %v6362_v57  ;;  %v7924_v9 = vand.u32 4294901760, %v5673_v2 }
  0xf0   :  { %8306 = vst [vmem:[#allocation236_spill] sm:$0xff] %v6364_v11  ;;  %v6373_v0 = vsub.f32 %v46_v55, %v6364_v11  ;;  %v7929_v37 = vand.u32 4294901760, %v5677_v8  ;;  %v2576_v26 = vand.u32 4294901760, %v2575_v54  ;;  %v738_v20 = vsub.f32 %v5668_v47, %v7921_v3 }
  0xf1   :  { %v4307_v17 = vpack.c.bf16 %v745_v29, %v733_v7  ;;  %v7932_v28 = vand.u32 4294901760, %v5679_v1  ;;  %v356_v53 = vand.u32 4294901760, %v355_v32  ;;  %v750_v55 = vsub.f32 %v5673_v2, %v7924_v9 }
  0xf2   :  { %v6382_v30 = vand.u32 4294901760, %v6373_v0  ;;  %v2569_v57 = vsub.f32 %v5677_v8, %v7929_v37  ;;  %v4691_v54 = vpack.c.bf16 %v2576_v26, %v2564_v18  ;;  %v739_v7 = vand.u32 4294901760, %v738_v20  ;;  %v8308_v37 = vld [vmem:[#allocation9_spill] sm:$0xff]  ;;  %v8309_v26 = vld [vmem:[#allocation10_spill] sm:$0xff]  ;;  %v8310_v20 = vld [vmem:[#allocation12_spill] sm:$0xff] }
  0xf3   :  { %4308 = vmatprep.subr.bf16.mxu0 %v4307_v17  ;;  %v2581_v29 = vsub.f32 %v5679_v1, %v7932_v28  ;;  %357 = vmatprep.mubr.f32.mxu0 %v356_v53  ;;  %v751_v3 = vand.u32 4294901760, %v750_v55  ;;  %v4311_v17 = vpack.c.bf16 %v8308_v37, %v5229_v16  ;;  %v4695_v8 = vpack.c.bf16 %v8310_v20, %v8309_v26  ;;  %v8312_v55 = vld [vmem:[#allocation188_spill] sm:$0xff] }
  0xf4   :  { %8307 = vst [vmem:[#allocation237_spill] sm:$0xff] %v6382_v30  ;;  %2188 = vmatprep.mubr.f32.mxu1 %v356_v53  ;;  %v361_v32 = vsub.f32 %v6373_v0, %v6382_v30  ;;  %v2570_v36 = vand.u32 4294901760, %v2569_v57  ;;  %4692 = vmatprep.subr.bf16.mxu1 %v4691_v54  ;;  %v8311_v53 = vld [vmem:[#allocation15_spill] sm:$0xff]  ;;  %v4697_v57 = vpack.c.bf16 %v5252_v40, %v5250_v39  ;;  %v8318_v30 = vld [vmem:[#allocation58_spill] sm:$0xff]  ;;  %v8356_v39 = vld [vmem:[#allocation72_spill] sm:$0xff] }
  0xf5   :  { %v2582_v9 = vand.u32 4294901760, %v2581_v29  ;;  %v4309_v2 = vpack.c.bf16 %v751_v3, %v739_v7  ;;  %v4313_v28 = vpack.c.bf16 %v8311_v53, %v5241_v25  ;;  %v4315_v3 = vpack.c.bf16 %v5258_v46, %v5254_v41  ;;  %v8354_v41 = vld [vmem:[#allocation69_spill] sm:$0xff]  ;;  %v8360_v46 = vld [vmem:[#allocation75_spill] sm:$0xff]  ;;  %v8409_v25 = vld [vmem:[#allocation138_spill] sm:$0xff] }
  0xf6   :  { %v362_v11 = vand.u32 4294901760, %v361_v32  ;;  %v4319_v54 = vpack.c.bf16 %v5286_v10, %v5283_v6  ;;  %v4705_v7 = vpack.c.bf16 %v5307_v44, %v5305_v43  ;;  %v4323_v29 = vpack.c.bf16 %v5315_v56, %v5311_v51  ;;  %v8320_v51 = vld [vmem:[#allocation62_spill] sm:$0xff]  ;;  %v8339_v10 = vld [vmem:[#allocation165_spill] sm:$0xff] }
  0xf7   :  { %v4693_v18 = vpack.c.bf16 %v2582_v9, %v2570_v36  ;;  %4310 = vmatpush1.bf16.msra.mxu0 %v4309_v2  ;;  %v4699_v36 = vpack.c.bf16 %v5265_v50, %v5262_v48  ;;  %v8313_v2 = vld [vmem:[#allocation198_spill] sm:$0xff]  ;;  %v4701_v9 = vpack.c.bf16 %v5279_v4, %v5275_v62  ;;  %v4707_v32 = vpack.c.bf16 %v5322_v63, %v5319_v58  ;;  %v8322_v63 = vld [vmem:[#allocation208_spill] sm:$0xff]  ;;  %v8347_v62 = vld [vmem:[#allocation217_spill] sm:$0xff] }
  0xf8   :  { %363 = vmatmul.mubr.f32.gmra.mrb[14].mxu0 %v362_v11  ;;  %2194 = vmatmul.mubr.f32.gmra.mrb[14].mxu1 %v362_v11  ;;  %v4317_v11 = vpack.c.bf16 %v5273_v61, %v5267_v52  ;;  %v8323_v58 = vld [vmem:[#allocation140_spill] sm:$0xff]  ;;  %v8325_v44 = vld [vmem:[#allocation142_spill] sm:$0xff]  ;;  %v8343_v61 = vld [vmem:[#allocation171_spill] sm:$0xff] }
  0xf9   :  { %4694 = vmatpush1.bf16.msra.mxu1 %v4693_v18  ;;  %754 = vmatprep.mubr.f32.mxu0 %v8312_v55  ;;  %v8314_v18 = vld [vmem:[#allocation53_spill] sm:$0xff]  ;;  %v8337_v43 = vld [vmem:[#allocation162_spill] sm:$0xff]  ;;  %v8341_v4 = vld [vmem:[#allocation168_spill] sm:$0xff] }
  0xfa   :  { %4312 = vmatprep.subr.bf16.mxu0 %v4311_v17  ;;  %2585 = vmatprep.mubr.f32.mxu1 %v8312_v55  ;;  %v4325_v17 = vpack.c.bf16 %v5329_v35, %v5325_v19  ;;  %v8324_v35 = vld [vmem:[#allocation141_spill] sm:$0xff]  ;;  %v8334_v19 = vld [vmem:[#allocation158_spill] sm:$0xff]  ;;  %v8348_v52 = vld [vmem:[#allocation183_spill] sm:$0xff] }
  0xfb   :  { %4696 = vmatprep.subr.bf16.mxu1 %v4695_v8  ;;  %v4703_v8 = vpack.c.bf16 %v5292_v13, %v5290_v12  ;;  %v8336_v13 = vld [vmem:[#allocation161_spill] sm:$0xff]  ;;  %v8355_v6 = vld [vmem:[#allocation70_spill] sm:$0xff] }
  0xfc   :  { %756 = vmatmul.mubr.f32.vlgmr.msra.gmra.mrb[0].mxu0 %v8313_v2  ;;  %2587 = vmatmul.mubr.f32.vlgmr.msra.gmra.mrb[0].mxu1 %v8313_v2  ;;  %v8317_v2 = vld [vmem:[#allocation57_spill] sm:$0xff]  ;;  %v4715_v53 = vpack.c.bf16 %v8356_v39, %v8355_v6  ;;  %v8359_v48 = vld [vmem:[#allocation74_spill] sm:$0xff] }
  0xfd   :  { %4314 = vmatpush1.bf16.msra.mxu0 %v4313_v28  ;;  %4698 = vmatpush1.bf16.msra.mxu1 %v4697_v57  ;;  %v4321_v28 = vpack.c.bf16 %v5301_v34, %v5299_v33  ;;  %v8315_v57 = vld [vmem:[#allocation54_spill] sm:$0xff]  ;;  %v8344_v34 = vld [vmem:[#allocation173_spill] sm:$0xff] }
  0xfe   :  { %4316 = vmatprep.subr.bf16.mxu0 %v4315_v3  ;;  %4700 = vmatprep.subr.bf16.mxu1 %v4699_v36  ;;  %v4709_v3 = vpack.c.bf16 %v8315_v57, %v8314_v18  ;;  %v8316_v36 = vld [vmem:[#allocation56_spill] sm:$0xff]  ;;  %v8328_v18 = vld [vmem:[#allocation147_spill] sm:$0xff]  ;;  %v8346_v33 = vld [vmem:[#allocation214_spill] sm:$0xff] }
  0xff   :  { %762 = vmatprep.mubr.f32.mxu0 %v5989_v45  ;;  %2593 = vmatprep.mubr.f32.mxu1 %v5989_v45  ;;  %v4327_v55 = vpack.c.bf16 %v8317_v2, %v8316_v36  ;;  %v8319_v45 = vld [vmem:[#allocation60_spill] sm:$0xff]  ;;  %v8329_v2 = vld [vmem:[#allocation211_spill] sm:$0xff]  ;;  %v8342_v36 = vld [vmem:[#allocation170_spill] sm:$0xff] }
 0x100   :  { %764 = vmatmul.mubr.f32.gmra.mrb[2].mxu0 %v6010_v42  ;;  %v4711_v56 = vpack.c.bf16 %v8319_v45, %v8318_v30  ;;  %2595 = vmatmul.mubr.f32.gmra.mrb[2].mxu1 %v6010_v42  ;;  %v8326_v57 = vld [vmem:[#allocation144_spill] sm:$0xff]  ;;  %v8330_v45 = vld [vmem:[#allocation149_spill] sm:$0xff]  ;;  %v8331_v30 = vld [vmem:[#allocation150_spill] sm:$0xff] }
 0x101   :  { %4318 = vmatpush1.bf16.msra.mxu0 %v4317_v11  ;;  %4702 = vmatpush1.bf16.msra.mxu1 %v4701_v9  ;;  %v8321_v11 = vld [vmem:[#allocation63_spill] sm:$0xff]  ;;  %v8333_v42 = vld [vmem:[#allocation153_spill] sm:$0xff] }
 0x102   :  { %4320 = vmatprep.subr.bf16.mxu0 %v4319_v54  ;;  %4704 = vmatprep.subr.bf16.mxu1 %v4703_v8  ;;  %v4329_v9 = vpack.c.bf16 %v8321_v11, %v8320_v51  ;;  %v8327_v8 = vld [vmem:[#allocation146_spill] sm:$0xff]  ;;  %v8332_v51 = vld [vmem:[#allocation152_spill] sm:$0xff]  ;;  %v8335_v54 = vld [vmem:[#allocation159_spill] sm:$0xff] }
 0x103   :  { %770 = vmatprep.mubr.f32.mxu0 %v8322_v63  ;;  %2601 = vmatprep.mubr.f32.mxu1 %v8322_v63  ;;  %v8338_v63 = vld [vmem:[#allocation164_spill] sm:$0xff]  ;;  %v8340_v11 = vld [vmem:[#allocation166_spill] sm:$0xff]  ;;  %v8349_v12 = vld [vmem:[#allocation65_spill] sm:$0xff] }
 0x104   :  { %772 = vmatmul.mubr.f32.gmra.mrb[4].mxu0 %v8329_v2  ;;  %2603 = vmatmul.mubr.f32.gmra.mrb[4].mxu1 %v8329_v2  ;;  %v8362_v2 = vld [vmem:[#allocation78_spill] sm:$0xff]  ;;  %v8364_v39 = vld [vmem:[#allocation81_spill] sm:$0xff] }
 0x105   :  { %4322 = vmatpush1.bf16.msra.mxu0 %v4321_v28  ;;  %4706 = vmatpush1.bf16.msra.mxu1 %v4705_v7  ;;  %v8345_v28 = vld [vmem:[#allocation174_spill] sm:$0xff]  ;;  %v8353_v7 = vld [vmem:[#allocation68_spill] sm:$0xff] }
 0x106   :  { %4324 = vmatprep.subr.bf16.mxu0 %v4323_v29  ;;  %4708 = vmatprep.subr.bf16.mxu1 %v4707_v32  ;;  %v8350_v29 = vld [vmem:[#allocation66_spill] sm:$0xff]  ;;  %v8351_v32 = vld [vmem:[#allocation193_spill] sm:$0xff]  ;;  %v4331_v40 = vpack.c.bf16 %v8354_v41, %v8353_v7  ;;  %v8363_v41 = vld [vmem:[#allocation80_spill] sm:$0xff] }
 0x107   :  { %778 = vmatprep.mubr.f32.mxu0 %v8346_v33  ;;  %2609 = vmatprep.mubr.f32.mxu1 %v8346_v33  ;;  %v4713_v50 = vpack.c.bf16 %v8350_v29, %v8349_v12  ;;  %v8352_v33 = vld [vmem:[#allocation195_spill] sm:$0xff]  ;;  %v4335_v6 = vpack.c.bf16 %v8364_v39, %v8363_v41  ;;  %v8366_v7 = vld [vmem:[#allocation84_spill] sm:$0xff] }
 0x108   :  { %780 = vmatmul.mubr.f32.gmra.mrb[6].mxu0 %v8347_v62  ;;  %2611 = vmatmul.mubr.f32.gmra.mrb[6].mxu1 %v8347_v62  ;;  %v8365_v62 = vld [vmem:[#allocation82_spill] sm:$0xff]  ;;  %v8373_v39 = vld [vmem:[#allocation92_spill] sm:$0xff] }
 0x109   :  { %4326 = vmatpush1.bf16.msra.mxu0 %v4325_v17  ;;  %4710 = vmatpush1.bf16.msra.mxu1 %v4709_v3  ;;  %v8357_v17 = vld [vmem:[#allocation220_spill] sm:$0xff]  ;;  %v4719_v12 = vpack.c.bf16 %v8366_v7, %v8365_v62  ;;  %v8374_v7 = vld [vmem:[#allocation93_spill] sm:$0xff] }
 0x10a   :  { %4328 = vmatprep.subr.bf16.mxu0 %v4327_v55  ;;  %4712 = vmatprep.subr.bf16.mxu1 %v4711_v56  ;;  %v8358_v3 = vld [vmem:[#allocation156_spill] sm:$0xff]  ;;  %v4333_v55 = vpack.c.bf16 %v8360_v46, %v8359_v48  ;;  %v8361_v56 = vld [vmem:[#allocation77_spill] sm:$0xff]  ;;  %v4339_v62 = vpack.c.bf16 %v8374_v7, %v8373_v39 }
 0x10b   :  { %786 = vmatprep.mubr.f32.mxu0 %v8357_v17  ;;  %2617 = vmatprep.mubr.f32.mxu1 %v8357_v17  ;;  %v4717_v29 = vpack.c.bf16 %v8362_v2, %v8361_v56  ;;  %v8367_v17 = vld [vmem:[#allocation224_spill] sm:$0xff]  ;;  %v8370_v2 = vld [vmem:[#allocation87_spill] sm:$0xff]  ;;  %v8372_v56 = vld [vmem:[#allocation90_spill] sm:$0xff] }
 0x10c   :  { %788 = vmatmul.mubr.f32.gmra.mrb[8].mxu0 %v8358_v3  ;;  %2619 = vmatmul.mubr.f32.gmra.mrb[8].mxu1 %v8358_v3  ;;  %v8375_v3 = vld [vmem:[#allocation94_spill] sm:$0xff]  ;;  %v8376_v41 = vld [vmem:[#allocation96_spill] sm:$0xff] }
 0x10d   :  { %4330 = vmatpush1.bf16.msra.mxu0 %v4329_v9  ;;  %4714 = vmatpush1.bf16.msra.mxu1 %v4713_v50  ;;  %v8368_v50 = vld [vmem:[#allocation227_spill] sm:$0xff]  ;;  %v8369_v9 = vld [vmem:[#allocation86_spill] sm:$0xff]  ;;  %v4723_v48 = vpack.c.bf16 %v8376_v41, %v8375_v3  ;;  %v8383_v7 = vld [vmem:[#allocation104_spill] sm:$0xff] }
 0x10e   :  { %4332 = vmatprep.subr.bf16.mxu0 %v4331_v40  ;;  %4716 = vmatprep.subr.bf16.mxu1 %v4715_v53  ;;  %v4337_v40 = vpack.c.bf16 %v8370_v2, %v8369_v9  ;;  %v8371_v53 = vld [vmem:[#allocation89_spill] sm:$0xff]  ;;  %v8386_v39 = vld [vmem:[#allocation108_spill] sm:$0xff] }
 0x10f   :  { %794 = vmatprep.mubr.f32.mxu0 %v8367_v17  ;;  %2625 = vmatprep.mubr.f32.mxu1 %v8367_v17  ;;  %v4721_v46 = vpack.c.bf16 %v8372_v56, %v8371_v53  ;;  %v8377_v17 = vld [vmem:[#allocation230_spill] sm:$0xff]  ;;  %v8380_v56 = vld [vmem:[#allocation99_spill] sm:$0xff]  ;;  %v8384_v41 = vld [vmem:[#allocation105_spill] sm:$0xff] }
 0x110   :  { %796 = vmatmul.mubr.f32.gmra.mrb[10].mxu0 %v8368_v50  ;;  %2627 = vmatmul.mubr.f32.gmra.mrb[10].mxu1 %v8368_v50  ;;  %v8382_v53 = vld [vmem:[#allocation102_spill] sm:$0xff]  ;;  %v4343_v3 = vpack.c.bf16 %v8384_v41, %v8383_v7  ;;  %v8393_v41 = vld [vmem:[#allocation116_spill] sm:$0xff] }
 0x111   :  { %4334 = vmatpush1.bf16.msra.mxu0 %v4333_v55  ;;  %4718 = vmatpush1.bf16.msra.mxu1 %v4717_v29  ;;  %v8378_v29 = vld [vmem:[#allocation178_spill] sm:$0xff]  ;;  %v8396_v7 = vld [vmem:[#allocation120_spill] sm:$0xff] }
 0x112   :  { %4336 = vmatprep.subr.bf16.mxu0 %v4335_v6  ;;  %4720 = vmatprep.subr.bf16.mxu1 %v4719_v12  ;;  %v8379_v55 = vld [vmem:[#allocation98_spill] sm:$0xff]  ;;  %v8381_v12 = vld [vmem:[#allocation101_spill] sm:$0xff] }
 0x113   :  { %802 = vmatprep.mubr.f32.mxu0 %v8377_v17  ;;  %2633 = vmatprep.mubr.f32.mxu1 %v8377_v17  ;;  %v4341_v6 = vpack.c.bf16 %v8380_v56, %v8379_v55  ;;  %v4725_v2 = vpack.c.bf16 %v8382_v53, %v8381_v12  ;;  %v8385_v50 = vld [vmem:[#allocation106_spill] sm:$0xff]  ;;  %v8387_v17 = vld [vmem:[#allocation233_spill] sm:$0xff]  ;;  %v8390_v53 = vld [vmem:[#allocation111_spill] sm:$0xff] }
 0x114   :  { %804 = vmatmul.mubr.f32.gmra.mrb[12].mxu0 %v8378_v29  ;;  %v4727_v9 = vpack.c.bf16 %v8386_v39, %v8385_v50  ;;  %2635 = vmatmul.mubr.f32.gmra.mrb[12].mxu1 %v8378_v29  ;;  %v8392_v12 = vld [vmem:[#allocation114_spill] sm:$0xff]  ;;  %v8394_v39 = vld [vmem:[#allocation117_spill] sm:$0xff] }
 0x115   :  { %4338 = vmatpush1.bf16.msra.mxu0 %v4337_v40  ;;  %4722 = vmatpush1.bf16.msra.mxu1 %v4721_v46  ;;  %v8388_v46 = vld [vmem:[#allocation236_spill] sm:$0xff]  ;;  %v8389_v40 = vld [vmem:[#allocation110_spill] sm:$0xff]  ;;  %v4347_v50 = vpack.c.bf16 %v8394_v39, %v8393_v41  ;;  %v8403_v41 = vld [vmem:[#allocation129_spill] sm:$0xff] }
 0x116   :  { %4340 = vmatprep.subr.bf16.mxu0 %v4339_v62  ;;  %4724 = vmatprep.subr.bf16.mxu1 %v4723_v48  ;;  %v4345_v62 = vpack.c.bf16 %v8390_v53, %v8389_v40  ;;  %v8391_v48 = vld [vmem:[#allocation113_spill] sm:$0xff]  ;;  %v8395_v29 = vld [vmem:[#allocation118_spill] sm:$0xff]  ;;  %v8402_v39 = vld [vmem:[#allocation128_spill] sm:$0xff] }
 0x117   :  { %810 = vmatprep.mubr.f32.mxu0 %v8387_v17  ;;  %2641 = vmatprep.mubr.f32.mxu1 %v8387_v17  ;;  %v4729_v56 = vpack.c.bf16 %v8392_v12, %v8391_v48  ;;  %v4731_v55 = vpack.c.bf16 %v8396_v7, %v8395_v29  ;;  %v8397_v17 = vld [vmem:[#allocation197_spill] sm:$0xff]  ;;  %v4351_v48 = vpack.c.bf16 %v8403_v41, %v8402_v39  ;;  %v8404_v7 = vld [vmem:[#allocation130_spill] sm:$0xff]  ;;  %v8405_v29 = vld [vmem:[#allocation132_spill] sm:$0xff] }
 0x118   :  { %812 = vmatmul.mubr.f32.gmra.mrb[14].mxu0 %v8388_v46  ;;  %2643 = vmatmul.mubr.f32.gmra.mrb[14].mxu1 %v8388_v46  ;;  %v8400_v12 = vld [vmem:[#allocation125_spill] sm:$0xff]  ;;  %v4735_v46 = vpack.c.bf16 %v8405_v29, %v8404_v7  ;;  %v8406_v40 = vld [vmem:[#allocation134_spill] sm:$0xff] }
 0x119   :  { %4342 = vmatpush1.bf16.msra.mxu0 %v4341_v6  ;;  %4726 = vmatpush1.bf16.msra.mxu1 %v4725_v2  ;;  %v8398_v2 = vld [vmem:[#allocation122_spill] sm:$0xff]  ;;  %v8399_v6 = vld [vmem:[#allocation123_spill] sm:$0xff] }
 0x11a   :  { %4344 = vmatprep.subr.bf16.mxu0 %v4343_v3  ;;  %4728 = vmatprep.subr.bf16.mxu1 %v4727_v9  ;;  %v4349_v53 = vpack.c.bf16 %v8399_v6, %v8398_v2  ;;  %v8401_v3 = vld [vmem:[#allocation126_spill] sm:$0xff] }
 0x11b   :  { %1012 = vmatprep.mubr.f32.mxu0 %v8397_v17  ;;  %2843 = vmatprep.mubr.f32.mxu1 %v8397_v17  ;;  %v4733_v9 = vpack.c.bf16 %v8401_v3, %v8400_v12  ;;  %v8407_v17 = vld [vmem:[#allocation135_spill] sm:$0xff] }
 0x11d   :  { %4346 = vmatpush1.bf16.msra.mxu0 %v4345_v62  ;;  %4730 = vmatpush1.bf16.msra.mxu1 %v4729_v56  ;;  %v4353_v62 = vpack.c.bf16 %v8407_v17, %v8406_v40  ;;  %v8408_v56 = vld [vmem:[#allocation137_spill] sm:$0xff] }
 0x11e   :  { %4348 = vmatprep.subr.bf16.mxu0 %v4347_v50  ;;  %4732 = vmatprep.subr.bf16.mxu1 %v4731_v55  ;;  %v4737_v20 = vpack.c.bf16 %v8409_v25, %v8408_v56  ;;  %v8410_v50 = vpack.c.bf16 %v8324_v35, %v8323_v58  ;;  %v8411_v55 = vpack.c.bf16 %v8326_v57, %v8325_v44 }
 0x121   :  { %4350 = vmatpush1.bf16.msra.mxu0 %v4349_v53  ;;  %4734 = vmatpush1.bf16.msra.mxu1 %v4733_v9  ;;  %v8412_v53 = vpack.c.bf16 %v8328_v18, %v8327_v8  ;;  %v8413_v9 = vpack.c.bf16 %v8331_v30, %v8330_v45 }
 0x122   :  { %4352 = vmatprep.subr.bf16.mxu0 %v4351_v48  ;;  %4736 = vmatprep.subr.bf16.mxu1 %v4735_v46  ;;  %v8414_v46 = vpack.c.bf16 %v8333_v42, %v8332_v51  ;;  %v8416_v48 = vpack.c.bf16 %v8335_v54, %v8334_v19 }
 0x125   :  { %4354 = vmatpush1.bf16.msra.mxu0 %v4353_v62  ;;  %4738 = vmatpush1.bf16.msra.mxu1 %v4737_v20  ;;  %v8415_v20 = vpack.c.bf16 %v8269_v5, %v8268_v27  ;;  %v8417_v62 = vpack.c.bf16 %v8337_v43, %v8336_v13 }
 0x126   :  { %4356 = vmatprep.subr.bf16.mxu0 %v8410_v50  ;;  %4740 = vmatprep.subr.bf16.mxu1 %v8411_v55  ;;  %v8418_v50 = vpack.c.bf16 %v8339_v10, %v8338_v63  ;;  %v8419_v55 = vpack.c.bf16 %v8341_v4, %v8340_v11 }
 0x129   :  { %4358 = vmatpush1.bf16.msra.mxu0 %v8412_v53  ;;  %4742 = vmatpush1.bf16.msra.mxu1 %v8413_v9  ;;  %v8420_v53 = vpack.c.bf16 %v8343_v61, %v8342_v36  ;;  %v8421_v9 = vpack.c.bf16 %v8345_v28, %v8344_v34 }
 0x12a   :  { %4360 = vmatprep.subr.bf16.mxu0 %v8414_v46  ;;  %4744 = vmatprep.subr.bf16.mxu1 %v8415_v20  ;;  %v8422_v46 = vpack.c.bf16 %v8295_v15, %v8293_v24  ;;  %v8423_v20 = vpack.c.bf16 %v5630_v60, %v8296_v21 }
 0x12d   :  { %4362 = vmatpush1.bf16.msra.mxu0 %v8416_v48  ;;  %4746 = vmatpush1.bf16.msra.mxu1 %v8417_v62  ;;  %v8424_v48 = vpack.c.bf16 %v5636_v38, %v5634_v31  ;;  %v8425_v62 = vpack.c.bf16 %v8348_v52, %v5640_v14  ;;  %v8530_v14 = vld [vmem:[#allocation201_spill] sm:$0xff] }
 0x12e   :  { %4364 = vmatprep.subr.bf16.mxu0 %v8418_v50  ;;  %4748 = vmatprep.subr.bf16.mxu1 %v8419_v55  ;;  %v8426_v50 = vpack.c.bf16 %v8302_v49, %v5651_v22  ;;  %v8427_v55 = vpack.c.bf16 %v5664_v59, %v8303_v23  ;;  %v8516_v59 = vld [vmem:[#allocation15_spill] sm:$0xff] }
 0x131   :  { %4366 = vmatpush1.bf16.msra.mxu0 %v8420_v53  ;;  %4750 = vmatpush1.bf16.msra.mxu1 %v8421_v9  ;;  %v8428_v53 = vpack.c.bf16 %v8351_v32, %v5668_v47  ;;  %v8429_v9 = vpack.c.bf16 %v5679_v1, %v8352_v33  ;;  %v8436_v32 = vld [vmem:[#allocation22_spill] sm:$0xff]  ;;  %v8488_v1 = vld [vmem:[#allocation136_spill] sm:$0xff]  ;;  %v8512_v47 = vld [vmem:[#allocation191_spill] sm:$0xff] }
 0x132   :  { %4368 = vmatprep.subr.bf16.mxu0 %v8422_v46  ;;  %4752 = vmatprep.subr.bf16.mxu1 %v8423_v20  ;;  %v8430_v46 = vld [vmem:[#allocation8_spill] sm:$0xff]  ;;  %v8431_v20 = vld [vmem:[#allocation11_spill] sm:$0xff] }
 0x135   :  { %4370 = vmatpush1.bf16.msra.mxu0 %v8424_v48  ;;  %4754 = vmatpush1.bf16.msra.mxu1 %v8425_v62  ;;  %v8432_v48 = vld [vmem:[#allocation200_spill] sm:$0xff]  ;;  %v8433_v62 = vld [vmem:[#allocation13_spill] sm:$0xff] }
 0x136   :  { %4372 = vmatprep.subr.bf16.mxu0 %v8426_v50  ;;  %4756 = vmatprep.subr.bf16.mxu1 %v8427_v55  ;;  %v8434_v50 = vld [vmem:[#allocation16_spill] sm:$0xff] }
 0x137   :  { %v8435_v55 = vld [vmem:[#allocation20_spill] sm:$0xff] }
 0x139   :  { %4374 = vmatpush1.bf16.msra.mxu0 %v8428_v53  ;;  %4758 = vmatpush1.bf16.msra.mxu1 %v8429_v9  ;;  %v8437_v53 = vld [vmem:[#allocation203_spill] sm:$0xff]  ;;  %v8438_v9 = vld [vmem:[#allocation206_spill] sm:$0xff] }
 0x13a   :  { %4376 = vmatprep.subr.bf16.mxu0 %v8430_v46  ;;  %4760 = vmatprep.subr.bf16.mxu1 %v8431_v20  ;;  %v8439_v20 = vld [vmem:[#allocation26_spill] sm:$0xff]  ;;  %v8440_v46 = vld [vmem:[#allocation29_spill] sm:$0xff] }
 0x13c   :  { %1015 = vmatmul.mubr.f32.vlgmr.msra.gmra.mrb[0].mxu0 %v8432_v48  ;;  %2846 = vmatmul.mubr.f32.vlgmr.msra.gmra.mrb[0].mxu1 %v8432_v48  ;;  %v8441_v48 = vld [vmem:[#allocation31_spill] sm:$0xff] }
 0x13d   :  { %4378 = vmatpush1.bf16.msra.mxu0 %v8433_v62  ;;  %4762 = vmatpush1.bf16.msra.mxu1 %v8434_v50  ;;  %v8442_v62 = vld [vmem:[#allocation34_spill] sm:$0xff]  ;;  %v8443_v50 = vld [vmem:[#allocation209_spill] sm:$0xff] }
 0x13e   :  { %4380 = vmatprep.subr.bf16.mxu0 %v8435_v55  ;;  %4764 = vmatprep.subr.bf16.mxu1 %v8436_v32  ;;  %v8444_v32 = vld [vmem:[#allocation212_spill] sm:$0xff] }
 0x13f   :  { %1022 = vmatprep.mubr.f32.mxu0 %v8437_v53  ;;  %2853 = vmatprep.mubr.f32.mxu1 %v8437_v53  ;;  %v8445_v53 = vld [vmem:[#allocation37_spill] sm:$0xff]  ;;  %v8446_v55 = vld [vmem:[#allocation40_spill] sm:$0xff] }
 0x140   :  { %1025 = vmatmul.mubr.f32.gmra.mrb[2].mxu0 %v8438_v9  ;;  %2856 = vmatmul.mubr.f32.gmra.mrb[2].mxu1 %v8438_v9  ;;  %v8447_v9 = vld [vmem:[#allocation43_spill] sm:$0xff] }
 0x141   :  { %4382 = vmatpush1.bf16.msra.mxu0 %v8439_v20  ;;  %4766 = vmatpush1.bf16.msra.mxu1 %v8440_v46  ;;  %v8448_v20 = vld [vmem:[#allocation46_spill] sm:$0xff]  ;;  %v8449_v46 = vld [vmem:[#allocation215_spill] sm:$0xff] }
 0x142   :  { %4384 = vmatprep.subr.bf16.mxu0 %v8441_v48  ;;  %4768 = vmatprep.subr.bf16.mxu1 %v8442_v62  ;;  %v8450_v62 = vld [vmem:[#allocation218_spill] sm:$0xff]  ;;  %v8452_v48 = vld [vmem:[#allocation52_spill] sm:$0xff] }
 0x143   :  { %1032 = vmatprep.mubr.f32.mxu0 %v8443_v50  ;;  %2863 = vmatprep.mubr.f32.mxu1 %v8443_v50  ;;  %v8451_v50 = vld [vmem:[#allocation50_spill] sm:$0xff] }
 0x144   :  { %1035 = vmatmul.mubr.f32.gmra.mrb[4].mxu0 %v8444_v32  ;;  %2866 = vmatmul.mubr.f32.gmra.mrb[4].mxu1 %v8444_v32  ;;  %v8453_v32 = vld [vmem:[#allocation55_spill] sm:$0xff] }
 0x145   :  { %4386 = vmatpush1.bf16.msra.mxu0 %v8445_v53  ;;  %4770 = vmatpush1.bf16.msra.mxu1 %v8446_v55  ;;  %v8454_v53 = vld [vmem:[#allocation59_spill] sm:$0xff]  ;;  %v8455_v55 = vld [vmem:[#allocation221_spill] sm:$0xff] }
 0x146   :  { %4388 = vmatprep.subr.bf16.mxu0 %v8447_v9  ;;  %4772 = vmatprep.subr.bf16.mxu1 %v8448_v20  ;;  %v8456_v20 = vld [vmem:[#allocation222_spill] sm:$0xff]  ;;  %v8458_v9 = vld [vmem:[#allocation64_spill] sm:$0xff] }
 0x147   :  { %1042 = vmatprep.mubr.f32.mxu0 %v8449_v46  ;;  %2873 = vmatprep.mubr.f32.mxu1 %v8449_v46  ;;  %v8457_v46 = vld [vmem:[#allocation61_spill] sm:$0xff] }
 0x148   :  { %1045 = vmatmul.mubr.f32.gmra.mrb[6].mxu0 %v8450_v62  ;;  %2876 = vmatmul.mubr.f32.gmra.mrb[6].mxu1 %v8450_v62  ;;  %v8459_v62 = vld [vmem:[#allocation67_spill] sm:$0xff] }
 0x149   :  { %4390 = vmatpush1.bf16.msra.mxu0 %v8451_v50  ;;  %4774 = vmatpush1.bf16.msra.mxu1 %v8452_v48  ;;  %v8460_v50 = vld [vmem:[#allocation71_spill] sm:$0xff]  ;;  %v8461_v48 = vld [vmem:[#allocation225_spill] sm:$0xff] }
 0x14a   :  { %4392 = vmatprep.subr.bf16.mxu0 %v8453_v32  ;;  %4776 = vmatprep.subr.bf16.mxu1 %v8454_v53  ;;  %v8462_v53 = vld [vmem:[#allocation228_spill] sm:$0xff] }
 0x14b   :  { %1052 = vmatprep.mubr.f32.mxu0 %v8455_v55  ;;  %2883 = vmatprep.mubr.f32.mxu1 %v8455_v55  ;;  %v8463_v55 = vld [vmem:[#allocation73_spill] sm:$0xff]  ;;  %v8464_v32 = vld [vmem:[#allocation76_spill] sm:$0xff] }
 0x14c   :  { %1055 = vmatmul.mubr.f32.gmra.mrb[8].mxu0 %v8456_v20  ;;  %2886 = vmatmul.mubr.f32.gmra.mrb[8].mxu1 %v8456_v20  ;;  %v8465_v20 = vld [vmem:[#allocation79_spill] sm:$0xff] }
 0x14d   :  { %4394 = vmatpush1.bf16.msra.mxu0 %v8457_v46  ;;  %4778 = vmatpush1.bf16.msra.mxu1 %v8458_v9  ;;  %v8466_v46 = vld [vmem:[#allocation83_spill] sm:$0xff]  ;;  %v8467_v9 = vld [vmem:[#allocation176_spill] sm:$0xff] }
 0x14e   :  { %4396 = vmatprep.subr.bf16.mxu0 %v8459_v62  ;;  %4780 = vmatprep.subr.bf16.mxu1 %v8460_v50  ;;  %v8468_v50 = vld [vmem:[#allocation231_spill] sm:$0xff]  ;;  %v8470_v62 = vld [vmem:[#allocation88_spill] sm:$0xff] }
 0x14f   :  { %1062 = vmatprep.mubr.f32.mxu0 %v8461_v48  ;;  %2893 = vmatprep.mubr.f32.mxu1 %v8461_v48  ;;  %v8469_v48 = vld [vmem:[#allocation85_spill] sm:$0xff] }
 0x150   :  { %1065 = vmatmul.mubr.f32.gmra.mrb[10].mxu0 %v8462_v53  ;;  %2896 = vmatmul.mubr.f32.gmra.mrb[10].mxu1 %v8462_v53  ;;  %v8471_v53 = vld [vmem:[#allocation91_spill] sm:$0xff] }
 0x151   :  { %4398 = vmatpush1.bf16.msra.mxu0 %v8463_v55  ;;  %4782 = vmatpush1.bf16.msra.mxu1 %v8464_v32  ;;  %v8472_v55 = vld [vmem:[#allocation95_spill] sm:$0xff]  ;;  %v8473_v32 = vld [vmem:[#allocation234_spill] sm:$0xff] }
 0x152   :  { %4400 = vmatprep.subr.bf16.mxu0 %v8465_v20  ;;  %4784 = vmatprep.subr.bf16.mxu1 %v8466_v46  ;;  %v8475_v46 = vld [vmem:[#allocation100_spill] sm:$0xff]  ;;  %v8482_v20 = vld [vmem:[#allocation119_spill] sm:$0xff] }
 0x153   :  { %1072 = vmatprep.mubr.f32.mxu0 %v8467_v9  ;;  %2903 = vmatprep.mubr.f32.mxu1 %v8467_v9  ;;  %v8474_v9 = vld [vmem:[#allocation97_spill] sm:$0xff] }
 0x154   :  { %1075 = vmatmul.mubr.f32.gmra.mrb[12].mxu0 %v8468_v50  ;;  %2906 = vmatmul.mubr.f32.gmra.mrb[12].mxu1 %v8468_v50  ;;  %v8476_v50 = vld [vmem:[#allocation103_spill] sm:$0xff] }
 0x155   :  { %4402 = vmatpush1.bf16.msra.mxu0 %v8469_v48  ;;  %4786 = vmatpush1.bf16.msra.mxu1 %v8470_v62  ;;  %v8477_v48 = vld [vmem:[#allocation107_spill] sm:$0xff] }
 0x156   :  { %4404 = vmatprep.subr.bf16.mxu0 %v8471_v53  ;;  %4788 = vmatprep.subr.bf16.mxu1 %v8472_v55  ;;  %v8478_v62 = vld [vmem:[#allocation199_spill] sm:$0xff]  ;;  %v8479_v55 = vld [vmem:[#allocation109_spill] sm:$0xff]  ;;  %v8480_v53 = vld [vmem:[#allocation112_spill] sm:$0xff] }
 0x157   :  { %1082 = vmatprep.mubr.f32.mxu0 %v8473_v32  ;;  %2913 = vmatprep.mubr.f32.mxu1 %v8473_v32  ;;  %v8481_v32 = vld [vmem:[#allocation115_spill] sm:$0xff] }
 0x158   :  { %1085 = vmatmul.mubr.f32.gmra.mrb[14].mxu0 %v6373_v0  ;;  %2916 = vmatmul.mubr.f32.gmra.mrb[14].mxu1 %v6373_v0  ;;  %v8483_v0 = vld [vmem:[#allocation121_spill] sm:$0xff] }
 0x159   :  { %4406 = vmatpush1.bf16.msra.mxu0 %v8474_v9  ;;  %4790 = vmatpush1.bf16.msra.mxu1 %v8475_v46  ;;  %v8484_v9 = vld [vmem:[#allocation124_spill] sm:$0xff]  ;;  %v8485_v46 = vld [vmem:[#allocation127_spill] sm:$0xff] }
 0x15a   :  { %4408 = vmatprep.subr.bf16.mxu0 %v8476_v50  ;;  %4792 = vmatprep.subr.bf16.mxu1 %v8477_v48  ;;  %v8486_v50 = vld [vmem:[#allocation131_spill] sm:$0xff]  ;;  %v8487_v48 = vld [vmem:[#allocation133_spill] sm:$0xff] }
 0x15b   :  { %1222 = vmatprep.mubr.f32.mxu0 %v8478_v62  ;;  %3053 = vmatprep.mubr.f32.mxu1 %v8478_v62  ;;  %v8489_v62 = vld [vmem:[#allocation139_spill] sm:$0xff] }
 0x15d   :  { %4410 = vmatpush1.bf16.msra.mxu0 %v8479_v55  ;;  %4794 = vmatpush1.bf16.msra.mxu1 %v8480_v53  ;;  %v8490_v55 = vld [vmem:[#allocation143_spill] sm:$0xff]  ;;  %v8491_v53 = vld [vmem:[#allocation145_spill] sm:$0xff] }
 0x15e   :  { %4412 = vmatprep.subr.bf16.mxu0 %v8481_v32  ;;  %4796 = vmatprep.subr.bf16.mxu1 %v8482_v20  ;;  %v8492_v32 = vld [vmem:[#allocation148_spill] sm:$0xff]  ;;  %v8493_v20 = vld [vmem:[#allocation151_spill] sm:$0xff] }
 0x161   :  { %4414 = vmatpush1.bf16.msra.mxu0 %v8483_v0  ;;  %4798 = vmatpush1.bf16.msra.mxu1 %v8484_v9  ;;  %v8494_v0 = vld [vmem:[#allocation155_spill] sm:$0xff]  ;;  %v8495_v9 = vld [vmem:[#allocation157_spill] sm:$0xff] }
 0x162   :  { %4416 = vmatprep.subr.bf16.mxu0 %v8485_v46  ;;  %4800 = vmatprep.subr.bf16.mxu1 %v8486_v50  ;;  %v8496_v46 = vld [vmem:[#allocation160_spill] sm:$0xff]  ;;  %v8497_v50 = vld [vmem:[#allocation163_spill] sm:$0xff] }
 0x165   :  { %4418 = vmatpush1.bf16.msra.mxu0 %v8487_v48  ;;  %4802 = vmatpush1.bf16.msra.mxu1 %v8488_v1  ;;  %v8498_v48 = vld [vmem:[#allocation167_spill] sm:$0xff]  ;;  %v8499_v1 = vld [vmem:[#allocation169_spill] sm:$0xff] }
 0x166   :  { %4420 = vmatprep.subr.bf16.mxu0 %v8489_v62  ;;  %4804 = vmatprep.subr.bf16.mxu1 %v8490_v55  ;;  %v8500_v62 = vld [vmem:[#allocation172_spill] sm:$0xff]  ;;  %v8501_v55 = vld [vmem:[#allocation175_spill] sm:$0xff] }
 0x169   :  { %4422 = vmatpush1.bf16.msra.mxu0 %v8491_v53  ;;  %4806 = vmatpush1.bf16.msra.mxu1 %v8492_v32  ;;  %v8502_v53 = vld [vmem:[#allocation179_spill] sm:$0xff]  ;;  %v8503_v32 = vld [vmem:[#allocation180_spill] sm:$0xff] }
 0x16a   :  { %4424 = vmatprep.subr.bf16.mxu0 %v8493_v20  ;;  %4808 = vmatprep.subr.bf16.mxu1 %v8494_v0  ;;  %v8504_v20 = vld [vmem:[#allocation181_spill] sm:$0xff]  ;;  %v8505_v0 = vld [vmem:[#allocation184_spill] sm:$0xff] }
 0x16d   :  { %4426 = vmatpush1.bf16.msra.mxu0 %v8495_v9  ;;  %4810 = vmatpush1.bf16.msra.mxu1 %v8496_v46  ;;  %v8506_v9 = vld [vmem:[#allocation189_spill] sm:$0xff] }
 0x16e   :  { %4428 = vmatprep.subr.bf16.mxu0 %v8497_v50  ;;  %4812 = vmatprep.subr.bf16.mxu1 %v8498_v48  ;;  %v8507_v50 = vand.u32 4294901760, %v5229_v16  ;;  %v8508_v48 = vand.u32 4294901760, %v8308_v37  ;;  %v8520_v16 = vld [vmem:[#allocation18_spill] sm:$0xff] }
 0x16f   :  { %v8521_v22 = vand.u32 4294901760, %v8520_v16 }
 0x170   :  { %v4439_v46 = vpack.c.bf16 %v8508_v48, %v8507_v50  ;;  %v8524_v50 = vld [vmem:[#allocation21_spill] sm:$0xff] }
 0x171   :  { %4430 = vmatpush1.bf16.msra.mxu0 %v8499_v1  ;;  %4814 = vmatpush1.bf16.msra.mxu1 %v8500_v62  ;;  %v8509_v1 = vand.u32 4294901760, %v8309_v26  ;;  %v8510_v62 = vld [vmem:[#allocation12_spill] sm:$0xff]  ;;  %v8522_v26 = vld [vmem:[#allocation19_spill] sm:$0xff] }
 0x172   :  { %4432 = vmatprep.subr.bf16.mxu0 %v8501_v55  ;;  %4816 = vmatprep.subr.bf16.mxu1 %v8502_v53  ;;  %v8511_v33 = vand.u32 4294901760, %v8510_v62  ;;  %v8513_v53 = vld [vmem:[#allocation194_spill] sm:$0xff]  ;;  %v8523_v48 = vand.u32 4294901760, %v8522_v26  ;;  %v8526_v62 = vld [vmem:[#allocation23_spill] sm:$0xff] }
 0x174   :  { %v4823_v55 = vpack.c.bf16 %v8511_v33, %v8509_v1  ;;  %v8525_v33 = vand.u32 4294901760, %v8524_v50 }
 0x175   :  { %4434 = vmatpush1.bf16.msra.mxu0 %v8503_v32  ;;  %4818 = vmatpush1.bf16.msra.mxu1 %v8504_v20  ;;  %v8514_v32 = vld [vmem:[#allocation14_spill] sm:$0xff] }
 0x176   :  { %4436 = vmatprep.subr.bf16.mxu0 %v8505_v0  ;;  %4820 = vmatprep.subr.bf16.mxu1 %v8506_v9  ;;  %v8515_v20 = vand.u32 4294901760, %v8514_v32  ;;  %v8517_v0 = vand.u32 4294901760, %v8516_v59  ;;  %v8518_v9 = vld [vmem:[#allocation17_spill] sm:$0xff]  ;;  %v4443_v1 = vpack.c.bf16 %v8525_v33, %v8523_v48 }
 0x177   :  { %v8519_v49 = vand.u32 4294901760, %v8518_v9  ;;  %v8531_v59 = vld [vmem:[#allocation25_spill] sm:$0xff] }
 0x178   :  { %v4441_v23 = vpack.c.bf16 %v8517_v0, %v8515_v20  ;;  %v8535_v20 = vld [vmem:[#allocation28_spill] sm:$0xff]  ;;  %v8537_v0 = vld [vmem:[#allocation30_spill] sm:$0xff] }
 0x179   :  { %4438 = vmatpush1.bf16.msra.mxu0 %v8512_v47  ;;  %4822 = vmatpush1.bf16.msra.mxu1 %v8513_v53  ;;  %v4825_v37 = vpack.c.bf16 %v8521_v22, %v8519_v49  ;;  %v8527_v47 = vand.u32 4294901760, %v8526_v62  ;;  %v8528_v53 = vld [vmem:[#allocation24_spill] sm:$0xff]  ;;  %v8532_v22 = vand.u32 4294901760, %v8531_v59  ;;  %v8533_v49 = vld [vmem:[#allocation27_spill] sm:$0xff]  ;;  %v8536_v9 = vand.u32 4294901760, %v8535_v20  ;;  %v8547_v59 = vld [vmem:[#allocation205_spill] sm:$0xff] }
 0x17a   :  { %4440 = vmatprep.subr.bf16.mxu0 %v4439_v46  ;;  %4824 = vmatprep.subr.bf16.mxu1 %v4823_v55  ;;  %v8529_v52 = vand.u32 4294901760, %v8528_v53  ;;  %v8534_v46 = vand.u32 4294901760, %v8533_v49  ;;  %v8538_v16 = vand.u32 4294901760, %v8537_v0  ;;  %v8539_v53 = vld [vmem:[#allocation32_spill] sm:$0xff]  ;;  %v8551_v49 = vld [vmem:[#allocation39_spill] sm:$0xff] }
 0x17c   :  { %v4827_v32 = vpack.c.bf16 %v8529_v52, %v8527_v47  ;;  %1226 = vmatmul.mubr.f32.vlgmr.msra.gmra.mrb[0].mxu0 %v8530_v14  ;;  %3057 = vmatmul.mubr.f32.vlgmr.msra.gmra.mrb[0].mxu1 %v8530_v14  ;;  %v4445_v55 = vpack.c.bf16 %v8534_v46, %v8532_v22  ;;  %v4829_v26 = vpack.c.bf16 %v8538_v16, %v8536_v9  ;;  %v8540_v52 = vand.u32 4294901760, %v8539_v53  ;;  %v8541_v47 = vld [vmem:[#allocation33_spill] sm:$0xff]  ;;  %v8543_v14 = vld [vmem:[#allocation35_spill] sm:$0xff]  ;;  %v8555_v16 = vld [vmem:[#allocation42_spill] sm:$0xff] }
 0x17d   :  { %4442 = vmatpush1.bf16.msra.mxu0 %v4441_v23  ;;  %4826 = vmatpush1.bf16.msra.mxu1 %v4825_v37  ;;  %v8542_v48 = vand.u32 4294901760, %v8541_v47  ;;  %v8544_v23 = vand.u32 4294901760, %v8543_v14  ;;  %v8545_v37 = vld [vmem:[#allocation36_spill] sm:$0xff]  ;;  %v8548_v22 = vld [vmem:[#allocation207_spill] sm:$0xff]  ;;  %v8552_v46 = vand.u32 4294901760, %v8551_v49  ;;  %v8553_v9 = vld [vmem:[#allocation41_spill] sm:$0xff] }
 0x17e   :  { %4444 = vmatprep.subr.bf16.mxu0 %v4443_v1  ;;  %4828 = vmatprep.subr.bf16.mxu1 %v4827_v32  ;;  %v8546_v33 = vand.u32 4294901760, %v8545_v37  ;;  %v8549_v1 = vld [vmem:[#allocation38_spill] sm:$0xff]  ;;  %v8554_v0 = vand.u32 4294901760, %v8553_v9  ;;  %v8556_v53 = vand.u32 4294901760, %v8555_v16  ;;  %v8557_v47 = vld [vmem:[#allocation44_spill] sm:$0xff]  ;;  %v8559_v14 = vld [vmem:[#allocation45_spill] sm:$0xff] }
 0x17f   :  { %v4447_v50 = vpack.c.bf16 %v8542_v48, %v8540_v52  ;;  %1234 = vmatprep.mubr.f32.mxu0 %v8547_v59  ;;  %3065 = vmatprep.mubr.f32.mxu1 %v8547_v59  ;;  %v8550_v32 = vand.u32 4294901760, %v8549_v1  ;;  %v8558_v48 = vand.u32 4294901760, %v8557_v47  ;;  %v8565_v1 = vld [vmem:[#allocation210_spill] sm:$0xff]  ;;  %v8569_v49 = vld [vmem:[#allocation51_spill] sm:$0xff] }
 0x180   :  { %v4831_v62 = vpack.c.bf16 %v8546_v33, %v8544_v23  ;;  %1238 = vmatmul.mubr.f32.gmra.mrb[2].mxu0 %v8548_v22  ;;  %3069 = vmatmul.mubr.f32.gmra.mrb[2].mxu1 %v8548_v22  ;;  %v4833_v52 = vpack.c.bf16 %v8556_v53, %v8554_v0  ;;  %v8560_v23 = vand.u32 4294901760, %v8559_v14  ;;  %v8561_v33 = vld [vmem:[#allocation47_spill] sm:$0xff]  ;;  %v8571_v0 = vld [vmem:[#allocation53_spill] sm:$0xff]  ;;  %v8573_v53 = vld [vmem:[#allocation54_spill] sm:$0xff] }
 0x181   :  { %4446 = vmatpush1.bf16.msra.mxu0 %v4445_v55  ;;  %4830 = vmatpush1.bf16.msra.mxu1 %v4829_v26  ;;  %v4449_v20 = vpack.c.bf16 %v8552_v46, %v8550_v32  ;;  %v8562_v55 = vand.u32 4294901760, %v8561_v33  ;;  %v8563_v26 = vld [vmem:[#allocation48_spill] sm:$0xff]  ;;  %v8566_v32 = vld [vmem:[#allocation213_spill] sm:$0xff]  ;;  %v8570_v46 = vand.u32 4294901760, %v8569_v49  ;;  %v8572_v16 = vand.u32 4294901760, %v8571_v0  ;;  %v8587_v49 = vld [vmem:[#allocation63_spill] sm:$0xff] }
 0x182   :  { %4448 = vmatprep.subr.bf16.mxu0 %v4447_v50  ;;  %4832 = vmatprep.subr.bf16.mxu1 %v4831_v62  ;;  %v4451_v37 = vpack.c.bf16 %v8560_v23, %v8558_v48  ;;  %v8564_v59 = vand.u32 4294901760, %v8563_v26  ;;  %v8567_v50 = vld [vmem:[#allocation49_spill] sm:$0xff]  ;;  %v8574_v47 = vand.u32 4294901760, %v8573_v53  ;;  %v8575_v14 = vld [vmem:[#allocation56_spill] sm:$0xff] }
 0x183   :  { %1246 = vmatprep.mubr.f32.mxu0 %v8565_v1  ;;  %3077 = vmatprep.mubr.f32.mxu1 %v8565_v1  ;;  %v8568_v62 = vand.u32 4294901760, %v8567_v50  ;;  %v8576_v23 = vand.u32 4294901760, %v8575_v14  ;;  %v8577_v33 = vld [vmem:[#allocation57_spill] sm:$0xff]  ;;  %v8583_v50 = vld [vmem:[#allocation216_spill] sm:$0xff] }
 0x184   :  { %v4835_v22 = vpack.c.bf16 %v8564_v59, %v8562_v55  ;;  %1250 = vmatmul.mubr.f32.gmra.mrb[4].mxu0 %v8566_v32  ;;  %3081 = vmatmul.mubr.f32.gmra.mrb[4].mxu1 %v8566_v32  ;;  %v4837_v48 = vpack.c.bf16 %v8574_v47, %v8572_v16  ;;  %v8578_v55 = vand.u32 4294901760, %v8577_v33  ;;  %v8579_v59 = vld [vmem:[#allocation58_spill] sm:$0xff]  ;;  %v8589_v16 = vld [vmem:[#allocation65_spill] sm:$0xff]  ;;  %v8593_v33 = vld [vmem:[#allocation68_spill] sm:$0xff] }
 0x185   :  { %4450 = vmatpush1.bf16.msra.mxu0 %v4449_v20  ;;  %4834 = vmatpush1.bf16.msra.mxu1 %v4833_v52  ;;  %v4453_v9 = vpack.c.bf16 %v8570_v46, %v8568_v62  ;;  %v8580_v20 = vand.u32 4294901760, %v8579_v59  ;;  %v8581_v52 = vld [vmem:[#allocation60_spill] sm:$0xff]  ;;  %v8584_v62 = vld [vmem:[#allocation219_spill] sm:$0xff]  ;;  %v8588_v46 = vand.u32 4294901760, %v8587_v49  ;;  %v8590_v53 = vand.u32 4294901760, %v8589_v16  ;;  %v8591_v47 = vld [vmem:[#allocation66_spill] sm:$0xff] }
 0x186   :  { %4452 = vmatprep.subr.bf16.mxu0 %v4451_v37  ;;  %4836 = vmatprep.subr.bf16.mxu1 %v4835_v22  ;;  %v4455_v26 = vpack.c.bf16 %v8578_v55, %v8576_v23  ;;  %v8582_v1 = vand.u32 4294901760, %v8581_v52  ;;  %v8585_v37 = vld [vmem:[#allocation62_spill] sm:$0xff]  ;;  %v8592_v14 = vand.u32 4294901760, %v8591_v47  ;;  %v8594_v55 = vand.u32 4294901760, %v8593_v33  ;;  %v8595_v59 = vld [vmem:[#allocation69_spill] sm:$0xff]  ;;  %v8605_v49 = vld [vmem:[#allocation75_spill] sm:$0xff] }
 0x187   :  { %1258 = vmatprep.mubr.f32.mxu0 %v8583_v50  ;;  %3089 = vmatprep.mubr.f32.mxu1 %v8583_v50  ;;  %v8586_v22 = vand.u32 4294901760, %v8585_v37  ;;  %v8601_v37 = vld [vmem:[#allocation154_spill] sm:$0xff] }
 0x188   :  { %v4839_v32 = vpack.c.bf16 %v8582_v1, %v8580_v20  ;;  %1262 = vmatmul.mubr.f32.gmra.mrb[6].mxu0 %v8584_v62  ;;  %3093 = vmatmul.mubr.f32.gmra.mrb[6].mxu1 %v8584_v62  ;;  %v4841_v23 = vpack.c.bf16 %v8592_v14, %v8590_v53  ;;  %v8596_v20 = vand.u32 4294901760, %v8595_v59  ;;  %v8597_v1 = vld [vmem:[#allocation70_spill] sm:$0xff]  ;;  %v8607_v53 = vld [vmem:[#allocation77_spill] sm:$0xff]  ;;  %v8611_v59 = vld [vmem:[#allocation80_spill] sm:$0xff] }
 0x189   :  { %4454 = vmatpush1.bf16.msra.mxu0 %v4453_v9  ;;  %4838 = vmatpush1.bf16.msra.mxu1 %v4837_v48  ;;  %v4457_v0 = vpack.c.bf16 %v8588_v46, %v8586_v22  ;;  %v8598_v9 = vand.u32 4294901760, %v8597_v1  ;;  %v8599_v48 = vld [vmem:[#allocation72_spill] sm:$0xff]  ;;  %v8602_v22 = vld [vmem:[#allocation223_spill] sm:$0xff]  ;;  %v8606_v46 = vand.u32 4294901760, %v8605_v49  ;;  %v8608_v47 = vand.u32 4294901760, %v8607_v53  ;;  %v8609_v14 = vld [vmem:[#allocation78_spill] sm:$0xff] }
 0x18a   :  { %4456 = vmatprep.subr.bf16.mxu0 %v4455_v26  ;;  %4840 = vmatprep.subr.bf16.mxu1 %v4839_v32  ;;  %v4459_v52 = vpack.c.bf16 %v8596_v20, %v8594_v55  ;;  %v8600_v50 = vand.u32 4294901760, %v8599_v48  ;;  %v8603_v26 = vld [vmem:[#allocation74_spill] sm:$0xff]  ;;  %v8610_v33 = vand.u32 4294901760, %v8609_v14  ;;  %v8612_v20 = vand.u32 4294901760, %v8611_v59  ;;  %v8613_v1 = vld [vmem:[#allocation81_spill] sm:$0xff]  ;;  %v8623_v49 = vld [vmem:[#allocation87_spill] sm:$0xff] }
 0x18b   :  { %1270 = vmatprep.mubr.f32.mxu0 %v8601_v37  ;;  %3101 = vmatprep.mubr.f32.mxu1 %v8601_v37  ;;  %v8604_v32 = vand.u32 4294901760, %v8603_v26  ;;  %v8619_v26 = vld [vmem:[#allocation226_spill] sm:$0xff] }
 0x18c   :  { %v4843_v62 = vpack.c.bf16 %v8600_v50, %v8598_v9  ;;  %1274 = vmatmul.mubr.f32.gmra.mrb[8].mxu0 %v8602_v22  ;;  %3105 = vmatmul.mubr.f32.gmra.mrb[8].mxu1 %v8602_v22  ;;  %v4845_v55 = vpack.c.bf16 %v8610_v33, %v8608_v47  ;;  %v8614_v9 = vand.u32 4294901760, %v8613_v1  ;;  %v8615_v50 = vld [vmem:[#allocation82_spill] sm:$0xff]  ;;  %v8625_v47 = vld [vmem:[#allocation89_spill] sm:$0xff]  ;;  %v8629_v1 = vld [vmem:[#allocation92_spill] sm:$0xff] }
 0x18d   :  { %4458 = vmatpush1.bf16.msra.mxu0 %v4457_v0  ;;  %4842 = vmatpush1.bf16.msra.mxu1 %v4841_v23  ;;  %v4461_v16 = vpack.c.bf16 %v8606_v46, %v8604_v32  ;;  %v8616_v0 = vand.u32 4294901760, %v8615_v50  ;;  %v8617_v23 = vld [vmem:[#allocation84_spill] sm:$0xff]  ;;  %v8620_v32 = vld [vmem:[#allocation229_spill] sm:$0xff]  ;;  %v8624_v46 = vand.u32 4294901760, %v8623_v49  ;;  %v8626_v14 = vand.u32 4294901760, %v8625_v47  ;;  %v8627_v33 = vld [vmem:[#allocation90_spill] sm:$0xff] }
 0x18e   :  { %4460 = vmatprep.subr.bf16.mxu0 %v4459_v52  ;;  %4844 = vmatprep.subr.bf16.mxu1 %v4843_v62  ;;  %v4463_v48 = vpack.c.bf16 %v8614_v9, %v8612_v20  ;;  %v8618_v37 = vand.u32 4294901760, %v8617_v23  ;;  %v8621_v52 = vld [vmem:[#allocation86_spill] sm:$0xff]  ;;  %v8628_v59 = vand.u32 4294901760, %v8627_v33  ;;  %v8630_v9 = vand.u32 4294901760, %v8629_v1  ;;  %v8631_v50 = vld [vmem:[#allocation93_spill] sm:$0xff]  ;;  %v8641_v49 = vld [vmem:[#allocation99_spill] sm:$0xff] }
 0x18f   :  { %1282 = vmatprep.mubr.f32.mxu0 %v8619_v26  ;;  %3113 = vmatprep.mubr.f32.mxu1 %v8619_v26  ;;  %v8622_v62 = vand.u32 4294901760, %v8621_v52  ;;  %v8637_v52 = vld [vmem:[#allocation177_spill] sm:$0xff] }
 0x190   :  { %v4847_v22 = vpack.c.bf16 %v8618_v37, %v8616_v0  ;;  %1286 = vmatmul.mubr.f32.gmra.mrb[10].mxu0 %v8620_v32  ;;  %3117 = vmatmul.mubr.f32.gmra.mrb[10].mxu1 %v8620_v32  ;;  %v4849_v20 = vpack.c.bf16 %v8628_v59, %v8626_v14  ;;  %v8632_v0 = vand.u32 4294901760, %v8631_v50  ;;  %v8633_v37 = vld [vmem:[#allocation94_spill] sm:$0xff]  ;;  %v8643_v14 = vld [vmem:[#allocation101_spill] sm:$0xff]  ;;  %v8647_v50 = vld [vmem:[#allocation104_spill] sm:$0xff] }
 0x191   :  { %4462 = vmatpush1.bf16.msra.mxu0 %v4461_v16  ;;  %4846 = vmatpush1.bf16.msra.mxu1 %v4845_v55  ;;  %v4465_v53 = vpack.c.bf16 %v8624_v46, %v8622_v62  ;;  %v8634_v16 = vand.u32 4294901760, %v8633_v37  ;;  %v8635_v55 = vld [vmem:[#allocation96_spill] sm:$0xff]  ;;  %v8642_v46 = vand.u32 4294901760, %v8641_v49  ;;  %v8644_v33 = vand.u32 4294901760, %v8643_v14  ;;  %v8645_v59 = vld [vmem:[#allocation102_spill] sm:$0xff]  ;;  %v8649_v37 = vld [vmem:[#allocation105_spill] sm:$0xff] }
 0x192   :  { %4464 = vmatprep.subr.bf16.mxu0 %v4463_v48  ;;  %4848 = vmatprep.subr.bf16.mxu1 %v4847_v22  ;;  %v4467_v23 = vpack.c.bf16 %v8632_v0, %v8630_v9  ;;  %v8636_v26 = vand.u32 4294901760, %v8635_v55  ;;  %v8638_v62 = vld [vmem:[#allocation232_spill] sm:$0xff]  ;;  %v8639_v48 = vld [vmem:[#allocation98_spill] sm:$0xff]  ;;  %v8646_v1 = vand.u32 4294901760, %v8645_v59  ;;  %v8648_v0 = vand.u32 4294901760, %v8647_v50  ;;  %v8659_v49 = vld [vmem:[#allocation111_spill] sm:$0xff] }
 0x193   :  { %1294 = vmatprep.mubr.f32.mxu0 %v8637_v52  ;;  %3125 = vmatprep.mubr.f32.mxu1 %v8637_v52  ;;  %v8640_v22 = vand.u32 4294901760, %v8639_v48  ;;  %v8655_v48 = vld [vmem:[#allocation235_spill] sm:$0xff] }
 0x194   :  { %v4851_v32 = vpack.c.bf16 %v8636_v26, %v8634_v16  ;;  %1298 = vmatmul.mubr.f32.gmra.mrb[12].mxu0 %v8638_v62  ;;  %3129 = vmatmul.mubr.f32.gmra.mrb[12].mxu1 %v8638_v62  ;;  %v4853_v9 = vpack.c.bf16 %v8646_v1, %v8644_v33  ;;  %v8650_v16 = vand.u32 4294901760, %v8649_v37  ;;  %v8651_v26 = vld [vmem:[#allocation106_spill] sm:$0xff]  ;;  %v8661_v33 = vld [vmem:[#allocation113_spill] sm:$0xff]  ;;  %v8665_v37 = vld [vmem:[#allocation116_spill] sm:$0xff] }
 0x195   :  { %4466 = vmatpush1.bf16.msra.mxu0 %v4465_v53  ;;  %4850 = vmatpush1.bf16.msra.mxu1 %v4849_v20  ;;  %v4469_v47 = vpack.c.bf16 %v8642_v46, %v8640_v22  ;;  %v8652_v53 = vand.u32 4294901760, %v8651_v26  ;;  %v8653_v20 = vld [vmem:[#allocation108_spill] sm:$0xff]  ;;  %v8656_v22 = vld [vmem:[#allocation237_spill] sm:$0xff]  ;;  %v8660_v46 = vand.u32 4294901760, %v8659_v49  ;;  %v8662_v59 = vand.u32 4294901760, %v8661_v33  ;;  %v8663_v1 = vld [vmem:[#allocation114_spill] sm:$0xff] }
 0x196   :  { %4468 = vmatprep.subr.bf16.mxu0 %v4467_v23  ;;  %4852 = vmatprep.subr.bf16.mxu1 %v4851_v32  ;;  %v4471_v55 = vpack.c.bf16 %v8650_v16, %v8648_v0  ;;  %v8654_v52 = vand.u32 4294901760, %v8653_v20  ;;  %v8657_v23 = vld [vmem:[#allocation110_spill] sm:$0xff]  ;;  %v8664_v50 = vand.u32 4294901760, %v8663_v1  ;;  %v8666_v16 = vand.u32 4294901760, %v8665_v37  ;;  %v8667_v26 = vld [vmem:[#allocation117_spill] sm:$0xff] }
 0x197   :  { %1306 = vmatprep.mubr.f32.mxu0 %v8655_v48  ;;  %3137 = vmatprep.mubr.f32.mxu1 %v8655_v48  ;;  %v8658_v32 = vand.u32 4294901760, %v8657_v23  ;;  %v8673_v23 = vld [vmem:[#allocation188_spill] sm:$0xff]  ;;  %v8676_v49 = vand.u32 4294901760, %v8400_v12  ;;  %v8679_v1 = vand.u32 4294901760, %v8403_v41  ;;  %v8683_v12 = vand.u32 4294901760, %v8407_v17 }
 0x198   :  { %v4855_v62 = vpack.c.bf16 %v8654_v52, %v8652_v53  ;;  %1310 = vmatmul.mubr.f32.gmra.mrb[14].mxu0 %v8656_v22  ;;  %3141 = vmatmul.mubr.f32.gmra.mrb[14].mxu1 %v8656_v22  ;;  %v4857_v0 = vpack.c.bf16 %v8664_v50, %v8662_v59  ;;  %v8668_v53 = vand.u32 4294901760, %v8667_v26  ;;  %v8669_v52 = vld [vmem:[#allocation118_spill] sm:$0xff]  ;;  %v8678_v59 = vand.u32 4294901760, %v8402_v39 }
 0x199   :  { %4470 = vmatpush1.bf16.msra.mxu0 %v4469_v47  ;;  %4854 = vmatpush1.bf16.msra.mxu1 %v4853_v9  ;;  %v4473_v14 = vpack.c.bf16 %v8660_v46, %v8658_v32  ;;  %v8670_v47 = vand.u32 4294901760, %v8669_v52  ;;  %v8671_v9 = vld [vmem:[#allocation120_spill] sm:$0xff]  ;;  %v8674_v32 = vand.u32 4294901760, %v8398_v2  ;;  %v8677_v46 = vand.u32 4294901760, %v8401_v3 }
 0x19a   :  { %4472 = vmatprep.subr.bf16.mxu0 %v4471_v55  ;;  %4856 = vmatprep.subr.bf16.mxu1 %v4855_v62  ;;  %v4475_v20 = vpack.c.bf16 %v8668_v53, %v8666_v16  ;;  %v8672_v48 = vand.u32 4294901760, %v8671_v9  ;;  %v8675_v55 = vand.u32 4294901760, %v8399_v6  ;;  %v4479_v50 = vpack.c.bf16 %v8679_v1, %v8678_v59  ;;  %v8716_v59 = vld [vmem:[#allocation182_spill] sm:$0xff] }
 0x19b   :  { %1573 = vmatprep.mubr.f32.mxu0 %v8673_v23  ;;  %3404 = vmatprep.mubr.f32.mxu1 %v8673_v23  ;;  %v4861_v33 = vpack.c.bf16 %v8677_v46, %v8676_v49  ;;  %v8682_v6 = vand.u32 4294901760, %v8406_v40  ;;  %v8684_v37 = vand.u32 4294901760, %v8408_v56  ;;  %v8685_v16 = vand.u32 4294901760, %v8409_v25 }
 0x19c   :  { %v4859_v22 = vpack.c.bf16 %v8672_v48, %v8670_v47  ;;  %v4477_v62 = vpack.c.bf16 %v8675_v55, %v8674_v32  ;;  %v8686_v41 = vand.u32 4294901760, %v8323_v58  ;;  %v8688_v26 = vand.u32 4294901760, %v8325_v44 }
 0x19d   :  { %4474 = vmatpush1.bf16.msra.mxu0 %v4473_v14  ;;  %4858 = vmatpush1.bf16.msra.mxu1 %v4857_v0  ;;  %v8680_v14 = vand.u32 4294901760, %v8404_v7  ;;  %v8681_v0 = vand.u32 4294901760, %v8405_v29  ;;  %v4481_v3 = vpack.c.bf16 %v8683_v12, %v8682_v6  ;;  %v4865_v39 = vpack.c.bf16 %v8685_v16, %v8684_v37  ;;  %v8724_v6 = vld [vmem:[#allocation187_spill] sm:$0xff] }
 0x19e   :  { %4476 = vmatprep.subr.bf16.mxu0 %v4475_v20  ;;  %4860 = vmatprep.subr.bf16.mxu1 %v4859_v22  ;;  %v8687_v7 = vand.u32 4294901760, %v8324_v35  ;;  %v8689_v53 = vand.u32 4294901760, %v8326_v57  ;;  %v8690_v17 = vand.u32 4294901760, %v8327_v8  ;;  %v8691_v56 = vand.u32 4294901760, %v8328_v18 }
 0x19f   :  { %v4863_v2 = vpack.c.bf16 %v8681_v0, %v8680_v14  ;;  %v8692_v20 = vand.u32 4294901760, %v8330_v45  ;;  %v8693_v52 = vand.u32 4294901760, %v8331_v30  ;;  %v8694_v35 = vand.u32 4294901760, %v8332_v51 }
 0x1a0   :  { %v4483_v29 = vpack.c.bf16 %v8687_v7, %v8686_v41  ;;  %v4867_v40 = vpack.c.bf16 %v8689_v53, %v8688_v26  ;;  %v4485_v25 = vpack.c.bf16 %v8691_v56, %v8690_v17  ;;  %v8695_v44 = vand.u32 4294901760, %v8333_v42  ;;  %v8734_v53 = vld [vmem:[#allocation196_spill] sm:$0xff] }
 0x1a1   :  { %4478 = vmatpush1.bf16.msra.mxu0 %v4477_v62  ;;  %4862 = vmatpush1.bf16.msra.mxu1 %v4861_v33  ;;  %v4869_v58 = vpack.c.bf16 %v8693_v52, %v8692_v20  ;;  %v8696_v47 = vand.u32 4294901760, %v8268_v27  ;;  %v8697_v9 = vand.u32 4294901760, %v8269_v5  ;;  %v8698_v18 = vand.u32 4294901760, %v8334_v19  ;;  %v8736_v56 = vld [vmem:[#allocation8_spill] sm:$0xff]  ;;  %v8738_v20 = vld [vmem:[#allocation198_spill] sm:$0xff]  ;;  %v8739_v52 = vld [vmem:[#allocation13_spill] sm:$0xff] }
 0x1a2   :  { %4480 = vmatprep.subr.bf16.mxu0 %v4479_v50  ;;  %4864 = vmatprep.subr.bf16.mxu1 %v4863_v2  ;;  %v4487_v57 = vpack.c.bf16 %v8695_v44, %v8694_v35  ;;  %v8699_v45 = vand.u32 4294901760, %v8335_v54  ;;  %v8700_v48 = vand.u32 4294901760, %v8336_v13  ;;  %v8701_v22 = vand.u32 4294901760, %v8337_v43  ;;  %v8718_v50 = vld [vmem:[#allocation183_spill] sm:$0xff]  ;;  %v8741_v35 = vld [vmem:[#allocation20_spill] sm:$0xff]  ;;  %v8742_v44 = vld [vmem:[#allocation22_spill] sm:$0xff] }
 0x1a3   :  { %v4871_v8 = vpack.c.bf16 %v8697_v9, %v8696_v47  ;;  %v8702_v42 = vand.u32 4294901760, %v8338_v63  ;;  %v8703_v27 = vand.u32 4294901760, %v8339_v10  ;;  %v8704_v32 = vand.u32 4294901760, %v8340_v11  ;;  %v8744_v47 = vld [vmem:[#allocation204_spill] sm:$0xff]  ;;  %v8745_v9 = vld [vmem:[#allocation26_spill] sm:$0xff] }
 0x1a4   :  { %v4489_v30 = vpack.c.bf16 %v8699_v45, %v8698_v18  ;;  %v4873_v51 = vpack.c.bf16 %v8701_v22, %v8700_v48  ;;  %v8705_v55 = vand.u32 4294901760, %v8341_v4  ;;  %v8706_v54 = vand.u32 4294901760, %v8342_v36  ;;  %v8747_v18 = vld [vmem:[#allocation31_spill] sm:$0xff]  ;;  %v8748_v45 = vld [vmem:[#allocation34_spill] sm:$0xff]  ;;  %v8751_v22 = vld [vmem:[#allocation37_spill] sm:$0xff] }
 0x1a5   :  { %4482 = vmatpush1.bf16.msra.mxu0 %v4481_v3  ;;  %4866 = vmatpush1.bf16.msra.mxu1 %v4865_v39  ;;  %v4491_v5 = vpack.c.bf16 %v8703_v27, %v8702_v42  ;;  %v8707_v13 = vand.u32 4294901760, %v8343_v61  ;;  %v8708_v62 = vand.u32 4294901760, %v8344_v34  ;;  %v8709_v49 = vand.u32 4294901760, %v8345_v28  ;;  %v8726_v3 = vld [vmem:[#allocation190_spill] sm:$0xff]  ;;  %v8730_v39 = vld [vmem:[#allocation193_spill] sm:$0xff]  ;;  %v8750_v48 = vld [vmem:[#allocation211_spill] sm:$0xff] }
 0x1a6   :  { %4484 = vmatprep.subr.bf16.mxu0 %v4483_v29  ;;  %4868 = vmatprep.subr.bf16.mxu1 %v4867_v40  ;;  %v4875_v19 = vpack.c.bf16 %v8705_v55, %v8704_v32  ;;  %v8710_v10 = vand.u32 4294901760, %v8293_v24  ;;  %v8711_v11 = vand.u32 4294901760, %v8295_v15  ;;  %v8712_v46 = vand.u32 4294901760, %v8296_v21  ;;  %v8720_v15 = vld [vmem:[#allocation185_spill] sm:$0xff]  ;;  %v8722_v21 = vld [vmem:[#allocation186_spill] sm:$0xff]  ;;  %v8732_v29 = vld [vmem:[#allocation195_spill] sm:$0xff] }
 0x1a7   :  { %v4493_v43 = vpack.c.bf16 %v8707_v13, %v8706_v54  ;;  %v4877_v63 = vpack.c.bf16 %v8709_v49, %v8708_v62  ;;  %v8713_v33 = vand.u32 4294901760, %v5630_v60  ;;  %v8714_v61 = vand.u32 4294901760, %v5634_v31  ;;  %v8753_v42 = vld [vmem:[#allocation43_spill] sm:$0xff]  ;;  %v8754_v27 = vld [vmem:[#allocation46_spill] sm:$0xff]  ;;  %v8756_v32 = vld [vmem:[#allocation217_spill] sm:$0xff] }
 0x1a8   :  { %v4495_v4 = vpack.c.bf16 %v8711_v11, %v8710_v10  ;;  %v8715_v34 = vand.u32 4294901760, %v5636_v38  ;;  %v8717_v1 = vand.u32 4294901760, %v8716_v59  ;;  %v8719_v14 = vand.u32 4294901760, %v8718_v50  ;;  %v8728_v38 = vld [vmem:[#allocation192_spill] sm:$0xff]  ;;  %v8757_v55 = vld [vmem:[#allocation50_spill] sm:$0xff]  ;;  %v8759_v54 = vld [vmem:[#allocation55_spill] sm:$0xff] }
 0x1a9   :  { %4486 = vmatpush1.bf16.msra.mxu0 %v4485_v25  ;;  %4870 = vmatpush1.bf16.msra.mxu1 %v4869_v58  ;;  %v4879_v36 = vpack.c.bf16 %v8713_v33, %v8712_v46  ;;  %v8721_v0 = vand.u32 4294901760, %v8720_v15  ;;  %v8723_v2 = vand.u32 4294901760, %v8722_v21  ;;  %v8725_v12 = vand.u32 4294901760, %v8724_v6  ;;  %v8737_v25 = vld [vmem:[#allocation11_spill] sm:$0xff]  ;;  %v8740_v58 = vld [vmem:[#allocation16_spill] sm:$0xff]  ;;  %v8763_v49 = vld [vmem:[#allocation61_spill] sm:$0xff] }
 0x1aa   :  { %4488 = vmatprep.subr.bf16.mxu0 %v4487_v57  ;;  %4872 = vmatprep.subr.bf16.mxu1 %v4871_v8  ;;  %v4497_v28 = vpack.c.bf16 %v8715_v34, %v8714_v61  ;;  %v4881_v24 = vpack.c.bf16 %v8719_v14, %v8717_v1  ;;  %v8727_v37 = vand.u32 4294901760, %v8726_v3  ;;  %v8729_v16 = vand.u32 4294901760, %v8728_v38  ;;  %v8743_v57 = vld [vmem:[#allocation202_spill] sm:$0xff]  ;;  %v8746_v8 = vld [vmem:[#allocation29_spill] sm:$0xff]  ;;  %v8760_v13 = vld [vmem:[#allocation59_spill] sm:$0xff] }
 0x1ab   :  { %v4499_v60 = vpack.c.bf16 %v8723_v2, %v8721_v0  ;;  %v8731_v41 = vand.u32 4294901760, %v8730_v39  ;;  %v8733_v26 = vand.u32 4294901760, %v8732_v29  ;;  %v8735_v40 = vand.u32 4294901760, %v8734_v53  ;;  %v8762_v62 = vld [vmem:[#allocation156_spill] sm:$0xff]  ;;  %v8765_v10 = vld [vmem:[#allocation67_spill] sm:$0xff]  ;;  %v8769_v33 = vld [vmem:[#allocation73_spill] sm:$0xff] }
 0x1ac   :  { %v4883_v31 = vpack.c.bf16 %v8727_v37, %v8725_v12  ;;  %v8766_v11 = vld [vmem:[#allocation71_spill] sm:$0xff]  ;;  %v8774_v59 = vld [vmem:[#allocation178_spill] sm:$0xff]  ;;  %v8775_v1 = vld [vmem:[#allocation85_spill] sm:$0xff] }
 0x1ad   :  { %4490 = vmatpush1.bf16.msra.mxu0 %v4489_v30  ;;  %4874 = vmatpush1.bf16.msra.mxu1 %v4873_v51  ;;  %v4501_v7 = vpack.c.bf16 %v8731_v41, %v8729_v16  ;;  %v4885_v17 = vpack.c.bf16 %v8735_v40, %v8733_v26  ;;  %v8749_v30 = vld [vmem:[#allocation208_spill] sm:$0xff]  ;;  %v8768_v46 = vld [vmem:[#allocation227_spill] sm:$0xff]  ;;  %v8779_v15 = vld [vmem:[#allocation233_spill] sm:$0xff] }
 0x1ae   :  { %4492 = vmatprep.subr.bf16.mxu0 %v4491_v5  ;;  %4876 = vmatprep.subr.bf16.mxu1 %v4875_v19  ;;  %v8752_v51 = vld [vmem:[#allocation40_spill] sm:$0xff]  ;;  %v8755_v5 = vld [vmem:[#allocation214_spill] sm:$0xff]  ;;  %v8771_v61 = vld [vmem:[#allocation79_spill] sm:$0xff] }
 0x1af   :  { %v8758_v19 = vld [vmem:[#allocation52_spill] sm:$0xff]  ;;  %v8772_v34 = vld [vmem:[#allocation83_spill] sm:$0xff]  ;;  %v8781_v21 = vld [vmem:[#allocation97_spill] sm:$0xff] }
 0x1b0   :  { %v8776_v50 = vld [vmem:[#allocation88_spill] sm:$0xff]  ;;  %v8777_v14 = vld [vmem:[#allocation91_spill] sm:$0xff]  ;;  %v8785_v12 = vld [vmem:[#allocation109_spill] sm:$0xff] }
 0x1b1   :  { %4494 = vmatpush1.bf16.msra.mxu0 %v4493_v43  ;;  %4878 = vmatpush1.bf16.msra.mxu1 %v4877_v63  ;;  %v8761_v43 = vld [vmem:[#allocation220_spill] sm:$0xff]  ;;  %v8784_v6 = vld [vmem:[#allocation107_spill] sm:$0xff]  ;;  %v8789_v38 = vld [vmem:[#allocation121_spill] sm:$0xff] }
 0x1b2   :  { %4496 = vmatprep.subr.bf16.mxu0 %v4495_v4  ;;  %4880 = vmatprep.subr.bf16.mxu1 %v4879_v36  ;;  %v8764_v63 = vld [vmem:[#allocation64_spill] sm:$0xff]  ;;  %v8787_v37 = vld [vmem:[#allocation115_spill] sm:$0xff]  ;;  %v8797_v53 = vld [vmem:[#allocation145_spill] sm:$0xff] }
 0x1b3   :  { %v8767_v4 = vld [vmem:[#allocation224_spill] sm:$0xff]  ;;  %v8791_v39 = vld [vmem:[#allocation127_spill] sm:$0xff] }
 0x1b4   :  { %v8770_v36 = vld [vmem:[#allocation76_spill] sm:$0xff]  ;;  %v8792_v41 = vld [vmem:[#allocation131_spill] sm:$0xff] }
 0x1b5   :  { %4498 = vmatpush1.bf16.msra.mxu0 %v4497_v28  ;;  %4882 = vmatpush1.bf16.msra.mxu1 %v4881_v24  ;;  %v8773_v28 = vld [vmem:[#allocation230_spill] sm:$0xff]  ;;  %v8778_v24 = vld [vmem:[#allocation95_spill] sm:$0xff]  ;;  %v8780_v0 = vld [vmem:[#allocation236_spill] sm:$0xff] }
 0x1b6   :  { %4500 = vmatprep.subr.bf16.mxu0 %v4499_v60  ;;  %4884 = vmatprep.subr.bf16.mxu1 %v4883_v31  ;;  %v8782_v2 = vld [vmem:[#allocation100_spill] sm:$0xff]  ;;  %v8783_v60 = vld [vmem:[#allocation103_spill] sm:$0xff] }
 0x1b7   :  { %v8786_v3 = vld [vmem:[#allocation112_spill] sm:$0xff]  ;;  %v8788_v31 = vld [vmem:[#allocation119_spill] sm:$0xff] }
 0x1b8   :  { %v8790_v16 = vld [vmem:[#allocation124_spill] sm:$0xff]  ;;  %v8796_v26 = vld [vmem:[#allocation143_spill] sm:$0xff] }
 0x1b9   :  { %4502 = vmatpush1.bf16.msra.mxu0 %v4501_v7  ;;  %4886 = vmatpush1.bf16.msra.mxu1 %v4885_v17  ;;  %v8793_v7 = vld [vmem:[#allocation133_spill] sm:$0xff]  ;;  %v8794_v29 = vld [vmem:[#allocation136_spill] sm:$0xff]  ;;  %v8799_v17 = vld [vmem:[#allocation151_spill] sm:$0xff] }
 0x1ba   :  { %4504 = vmatprep.subr.bf16.mxu0 %v8736_v56  ;;  %4888 = vmatprep.subr.bf16.mxu1 %v8737_v25  ;;  %v8798_v40 = vld [vmem:[#allocation148_spill] sm:$0xff]  ;;  %v8800_v56 = vld [vmem:[#allocation155_spill] sm:$0xff]  ;;  %v8801_v25 = vld [vmem:[#allocation157_spill] sm:$0xff] }
 0x1bc   :  { %1575 = vmatmul.mubr.f32.vlgmr.msra.gmra.mrb[0].mxu0 %v8738_v20  ;;  %3406 = vmatmul.mubr.f32.vlgmr.msra.gmra.mrb[0].mxu1 %v8738_v20 }
 0x1bd   :  { %4506 = vmatpush1.bf16.msra.mxu0 %v8739_v52  ;;  %4890 = vmatpush1.bf16.msra.mxu1 %v8740_v58  ;;  %v8802_v52 = vld [vmem:[#allocation160_spill] sm:$0xff]  ;;  %v8803_v58 = vld [vmem:[#allocation163_spill] sm:$0xff] }
 0x1be   :  { %4508 = vmatprep.subr.bf16.mxu0 %v8741_v35  ;;  %4892 = vmatprep.subr.bf16.mxu1 %v8742_v44  ;;  %v8804_v35 = vld [vmem:[#allocation167_spill] sm:$0xff]  ;;  %v8805_v44 = vld [vmem:[#allocation169_spill] sm:$0xff] }
 0x1bf   :  { %1581 = vmatprep.mubr.f32.mxu0 %v8743_v57  ;;  %3412 = vmatprep.mubr.f32.mxu1 %v8743_v57 }
 0x1c0   :  { %1583 = vmatmul.mubr.f32.gmra.mrb[2].mxu0 %v8744_v47  ;;  %3414 = vmatmul.mubr.f32.gmra.mrb[2].mxu1 %v8744_v47 }
 0x1c1   :  { %4510 = vmatpush1.bf16.msra.mxu0 %v8745_v9  ;;  %4894 = vmatpush1.bf16.msra.mxu1 %v8746_v8  ;;  %v8806_v9 = vld [vmem:[#allocation172_spill] sm:$0xff]  ;;  %v8807_v8 = vld [vmem:[#allocation175_spill] sm:$0xff] }
 0x1c2   :  { %4512 = vmatprep.subr.bf16.mxu0 %v8747_v18  ;;  %4896 = vmatprep.subr.bf16.mxu1 %v8748_v45  ;;  %v8808_v18 = vld [vmem:[#allocation179_spill] sm:$0xff]  ;;  %v8809_v45 = vld [vmem:[#allocation180_spill] sm:$0xff] }
 0x1c3   :  { %1589 = vmatprep.mubr.f32.mxu0 %v8749_v30  ;;  %3420 = vmatprep.mubr.f32.mxu1 %v8749_v30 }
 0x1c4   :  { %1591 = vmatmul.mubr.f32.gmra.mrb[4].mxu0 %v8750_v48  ;;  %3422 = vmatmul.mubr.f32.gmra.mrb[4].mxu1 %v8750_v48 }
 0x1c5   :  { %4514 = vmatpush1.bf16.msra.mxu0 %v8751_v22  ;;  %4898 = vmatpush1.bf16.msra.mxu1 %v8752_v51  ;;  %v8810_v22 = vld [vmem:[#allocation181_spill] sm:$0xff]  ;;  %v8811_v51 = vld [vmem:[#allocation184_spill] sm:$0xff] }
 0x1c6   :  { %4516 = vmatprep.subr.bf16.mxu0 %v8753_v42  ;;  %4900 = vmatprep.subr.bf16.mxu1 %v8754_v27  ;;  %v8812_v42 = vld [vmem:[#allocation189_spill] sm:$0xff]  ;;  %v8813_v27 = vld [vmem:[#allocation191_spill] sm:$0xff] }
 0x1c7   :  { %1597 = vmatprep.mubr.f32.mxu0 %v8755_v5  ;;  %3428 = vmatprep.mubr.f32.mxu1 %v8755_v5 }
 0x1c8   :  { %1599 = vmatmul.mubr.f32.gmra.mrb[6].mxu0 %v8756_v32  ;;  %3430 = vmatmul.mubr.f32.gmra.mrb[6].mxu1 %v8756_v32 }
 0x1c9   :  { %4518 = vmatpush1.bf16.msra.mxu0 %v8757_v55  ;;  %4902 = vmatpush1.bf16.msra.mxu1 %v8758_v19  ;;  %v8814_v55 = vld [vmem:[#allocation194_spill] sm:$0xff] }
 0x1ca   :  { %4520 = vmatprep.subr.bf16.mxu0 %v8759_v54  ;;  %4904 = vmatprep.subr.bf16.mxu1 %v8760_v13 }
 0x1cb   :  { %1605 = vmatprep.mubr.f32.mxu0 %v8761_v43  ;;  %3436 = vmatprep.mubr.f32.mxu1 %v8761_v43 }
 0x1cc   :  { %1607 = vmatmul.mubr.f32.gmra.mrb[8].mxu0 %v8762_v62  ;;  %3438 = vmatmul.mubr.f32.gmra.mrb[8].mxu1 %v8762_v62 }
 0x1cd   :  { %4522 = vmatpush1.bf16.msra.mxu0 %v8763_v49  ;;  %4906 = vmatpush1.bf16.msra.mxu1 %v8764_v63 }
 0x1ce   :  { %4524 = vmatprep.subr.bf16.mxu0 %v8765_v10  ;;  %4908 = vmatprep.subr.bf16.mxu1 %v8766_v11 }
 0x1cf   :  { %1613 = vmatprep.mubr.f32.mxu0 %v8767_v4  ;;  %3444 = vmatprep.mubr.f32.mxu1 %v8767_v4 }
 0x1d0   :  { %1615 = vmatmul.mubr.f32.gmra.mrb[10].mxu0 %v8768_v46  ;;  %3446 = vmatmul.mubr.f32.gmra.mrb[10].mxu1 %v8768_v46 }
 0x1d1   :  { %4526 = vmatpush1.bf16.msra.mxu0 %v8769_v33  ;;  %4910 = vmatpush1.bf16.msra.mxu1 %v8770_v36 }
 0x1d2   :  { %4528 = vmatprep.subr.bf16.mxu0 %v8771_v61  ;;  %4912 = vmatprep.subr.bf16.mxu1 %v8772_v34 }
 0x1d3   :  { %1621 = vmatprep.mubr.f32.mxu0 %v8773_v28  ;;  %3452 = vmatprep.mubr.f32.mxu1 %v8773_v28 }
 0x1d4   :  { %1623 = vmatmul.mubr.f32.gmra.mrb[12].mxu0 %v8774_v59  ;;  %3454 = vmatmul.mubr.f32.gmra.mrb[12].mxu1 %v8774_v59 }
 0x1d5   :  { %4530 = vmatpush1.bf16.msra.mxu0 %v8775_v1  ;;  %4914 = vmatpush1.bf16.msra.mxu1 %v8776_v50 }
 0x1d6   :  { %4532 = vmatprep.subr.bf16.mxu0 %v8777_v14  ;;  %4916 = vmatprep.subr.bf16.mxu1 %v8778_v24 }
 0x1d7   :  { %1629 = vmatprep.mubr.f32.mxu0 %v8779_v15  ;;  %3460 = vmatprep.mubr.f32.mxu1 %v8779_v15 }
 0x1d8   :  { %1631 = vmatmul.mubr.f32.gmra.mrb[14].mxu0 %v8780_v0  ;;  %3462 = vmatmul.mubr.f32.gmra.mrb[14].mxu1 %v8780_v0 }
 0x1d9   :  { %4534 = vmatpush1.bf16.msra.mxu0 %v8781_v21  ;;  %4918 = vmatpush1.bf16.msra.mxu1 %v8782_v2 }
 0x1da   :  { %4536 = vmatprep.subr.bf16.mxu0 %v8783_v60  ;;  %4920 = vmatprep.subr.bf16.mxu1 %v8784_v6 }
 0x1db   :  { %1766 = vmatprep.mubr.f32.mxu0 %v8673_v23  ;;  %3597 = vmatprep.mubr.f32.mxu1 %v8673_v23  ;;  %v8795_v23 = vld [vmem:[#allocation139_spill] sm:$0xff] }
 0x1dd   :  { %4538 = vmatpush1.bf16.msra.mxu0 %v8785_v12  ;;  %4922 = vmatpush1.bf16.msra.mxu1 %v8786_v3 }
 0x1de   :  { %4540 = vmatprep.subr.bf16.mxu0 %v8787_v37  ;;  %4924 = vmatprep.subr.bf16.mxu1 %v8788_v31 }
 0x1e1   :  { %4542 = vmatpush1.bf16.msra.mxu0 %v8789_v38  ;;  %4926 = vmatpush1.bf16.msra.mxu1 %v8790_v16 }
 0x1e2   :  { %4544 = vmatprep.subr.bf16.mxu0 %v8791_v39  ;;  %4928 = vmatprep.subr.bf16.mxu1 %v8792_v41 }
 0x1e5   :  { %4546 = vmatpush1.bf16.msra.mxu0 %v8793_v7  ;;  %4930 = vmatpush1.bf16.msra.mxu1 %v8794_v29 }
 0x1e6   :  { %4548 = vmatprep.subr.bf16.mxu0 %v8795_v23  ;;  %4932 = vmatprep.subr.bf16.mxu1 %v8796_v26 }
 0x1e9   :  { %4550 = vmatpush1.bf16.msra.mxu0 %v8797_v53  ;;  %4934 = vmatpush1.bf16.msra.mxu1 %v8798_v40 }
 0x1ea   :  { %4552 = vmatprep.subr.bf16.mxu0 %v8799_v17  ;;  %4936 = vmatprep.subr.bf16.mxu1 %v8800_v56 }
 0x1ed   :  { %4554 = vmatpush1.bf16.msra.mxu0 %v8801_v25  ;;  %4938 = vmatpush1.bf16.msra.mxu1 %v8802_v52 }
 0x1ee   :  { %4556 = vmatprep.subr.bf16.mxu0 %v8803_v58  ;;  %4940 = vmatprep.subr.bf16.mxu1 %v8804_v35 }
 0x1f1   :  { %4558 = vmatpush1.bf16.msra.mxu0 %v8805_v44  ;;  %4942 = vmatpush1.bf16.msra.mxu1 %v8806_v9 }
 0x1f2   :  { %4560 = vmatprep.subr.bf16.mxu0 %v8807_v8  ;;  %4944 = vmatprep.subr.bf16.mxu1 %v8808_v18 }
 0x1f5   :  { %4562 = vmatpush1.bf16.msra.mxu0 %v8809_v45  ;;  %4946 = vmatpush1.bf16.msra.mxu1 %v8810_v22 }
 0x1f6   :  { %4564 = vmatprep.subr.bf16.mxu0 %v8811_v51  ;;  %4948 = vmatprep.subr.bf16.mxu1 %v8812_v42 }
 0x1f9   :  { %4566 = vmatpush1.bf16.msra.mxu0 %v8813_v27  ;;  %4950 = vmatpush1.bf16.msra.mxu1 %v8814_v55 }
 0x1fc   :  { %1768 = vmatmul.mubr.f32.vlgmr.msra.gmra.mrb[0].mxu0 %v8738_v20  ;;  %3599 = vmatmul.mubr.f32.vlgmr.msra.gmra.mrb[0].mxu1 %v8738_v20 }
 0x1fd   :  { %1774 = vmatprep.mubr.f32.mxu0 %v8743_v57  ;;  %3605 = vmatprep.mubr.f32.mxu1 %v8743_v57 }
 0x200   :  { %1776 = vmatmul.mubr.f32.gmra.mrb[2].mxu0 %v8744_v47  ;;  %3607 = vmatmul.mubr.f32.gmra.mrb[2].mxu1 %v8744_v47 }
 0x201   :  { %1782 = vmatprep.mubr.f32.mxu0 %v8749_v30  ;;  %3613 = vmatprep.mubr.f32.mxu1 %v8749_v30 }
 0x204   :  { %1784 = vmatmul.mubr.f32.gmra.mrb[4].mxu0 %v8750_v48  ;;  %3615 = vmatmul.mubr.f32.gmra.mrb[4].mxu1 %v8750_v48 }
 0x205   :  { %1790 = vmatprep.mubr.f32.mxu0 %v8755_v5  ;;  %3621 = vmatprep.mubr.f32.mxu1 %v8755_v5 }
 0x208   :  { %1792 = vmatmul.mubr.f32.gmra.mrb[6].mxu0 %v8756_v32  ;;  %3623 = vmatmul.mubr.f32.gmra.mrb[6].mxu1 %v8756_v32 }
 0x209   :  { %1798 = vmatprep.mubr.f32.mxu0 %v8761_v43  ;;  %3629 = vmatprep.mubr.f32.mxu1 %v8761_v43 }
 0x20c   :  { %1800 = vmatmul.mubr.f32.gmra.mrb[8].mxu0 %v8762_v62  ;;  %3631 = vmatmul.mubr.f32.gmra.mrb[8].mxu1 %v8762_v62 }
 0x20d   :  { %1806 = vmatprep.mubr.f32.mxu0 %v8767_v4  ;;  %3637 = vmatprep.mubr.f32.mxu1 %v8767_v4 }
 0x210   :  { %1808 = vmatmul.mubr.f32.gmra.mrb[10].mxu0 %v8768_v46  ;;  %3639 = vmatmul.mubr.f32.gmra.mrb[10].mxu1 %v8768_v46 }
 0x211   :  { %1814 = vmatprep.mubr.f32.mxu0 %v8773_v28  ;;  %3645 = vmatprep.mubr.f32.mxu1 %v8773_v28 }
 0x214   :  { %1816 = vmatmul.mubr.f32.gmra.mrb[12].mxu0 %v8774_v59  ;;  %3647 = vmatmul.mubr.f32.gmra.mrb[12].mxu1 %v8774_v59 }
 0x215   :  { %1822 = vmatprep.mubr.f32.mxu0 %v8779_v15  ;;  %3653 = vmatprep.mubr.f32.mxu1 %v8779_v15 }
 0x218   :  { %1824 = vmatmul.mubr.f32.gmra.mrb[14].mxu0 %v8780_v0  ;;  %3655 = vmatmul.mubr.f32.gmra.mrb[14].mxu1 %v8780_v0 }
 0x2cf   :  { %v7127_v20 = vpop.f32.mrb[0].mxu0  ;;  %v7129_v57 = vpop.f32.mrb[0].mxu1 }
 0x2d0   :  { %v7131_v47 = vpop.f32.mrb[1].mxu0  ;;  %v7133_v30 = vpop.f32.mrb[1].mxu1 }
 0x2d1   :  { %v1846_v48 = vadd.f32 %v7131_v47, %v7127_v20  ;;  %v3678_v5 = vadd.f32 %v7133_v30, %v7129_v57 }
 0x2d3   :  { %v7139_v32 = vpop.f32.mrb[2].mxu1  ;;  %1847 = vadd.xlane.f32.xlu0 %v1846_v48  ;;  %v7141_v19 = vpop.f32.mrb[2].mxu0 }
 0x2d4   :  { %v7143_v54 = vpop.f32.mrb[3].mxu0  ;;  %v7145_v13 = vpop.f32.mrb[3].mxu1 }
 0x2d5   :  { %v3681_v43 = vadd.f32 %v7145_v13, %v7139_v32  ;;  %v1849_v62 = vadd.f32 %v7143_v54, %v7141_v19 }
 0x2d7   :  { %3682 = vadd.xlane.f32.xlu1 %v3681_v43  ;;  %v7151_v49 = vpop.f32.mrb[4].mxu1  ;;  %3679 = vadd.xlane.f32.xlu0 %v3678_v5  ;;  %v7153_v63 = vpop.f32.mrb[4].mxu0 }
 0x2d8   :  { %v7155_v10 = vpop.f32.mrb[5].mxu0  ;;  %v7157_v11 = vpop.f32.mrb[5].mxu1 }
 0x2d9   :  { %v1852_v4 = vadd.f32 %v7155_v10, %v7153_v63  ;;  %v3684_v46 = vadd.f32 %v7157_v11, %v7151_v49 }
 0x2db   :  { %v7163_v33 = vpop.f32.mrb[6].mxu1  ;;  %1850 = vadd.xlane.f32.xlu0 %v1849_v62  ;;  %1853 = vadd.xlane.f32.xlu1 %v1852_v4  ;;  %v7165_v36 = vpop.f32.mrb[6].mxu0 }
 0x2dc   :  { %v7167_v61 = vpop.f32.mrb[7].mxu0  ;;  %v7169_v34 = vpop.f32.mrb[7].mxu1 }
 0x2dd   :  { %v1855_v28 = vadd.f32 %v7167_v61, %v7165_v36  ;;  %v3687_v59 = vadd.f32 %v7169_v34, %v7163_v33 }
 0x2df   :  { %v7175_v1 = vpop.f32.mrb[8].mxu1  ;;  %3685 = vadd.xlane.f32.xlu0 %v3684_v46  ;;  %1856 = vadd.xlane.f32.xlu1 %v1855_v28  ;;  %v7177_v50 = vpop.f32.mrb[8].mxu0 }
 0x2e0   :  { %v7179_v14 = vpop.f32.mrb[9].mxu0  ;;  %v7181_v24 = vpop.f32.mrb[9].mxu1 }
 0x2e1   :  { %v1858_v15 = vadd.f32 %v7179_v14, %v7177_v50  ;;  %v3690_v0 = vadd.f32 %v7181_v24, %v7175_v1 }
 0x2e3   :  { %v7187_v21 = vpop.f32.mrb[10].mxu1  ;;  %3688 = vadd.xlane.f32.xlu1 %v3687_v59  ;;  %1859 = vadd.xlane.f32.xlu0 %v1858_v15  ;;  %v7189_v2 = vpop.f32.mrb[10].mxu0 }
 0x2e4   :  { %v7191_v60 = vpop.f32.mrb[11].mxu0  ;;  %v7193_v6 = vpop.f32.mrb[11].mxu1 }
 0x2e5   :  { %v1861_v12 = vadd.f32 %v7191_v60, %v7189_v2  ;;  %v3693_v3 = vadd.f32 %v7193_v6, %v7187_v21 }
 0x2e7   :  { %v7199_v37 = vpop.f32.mrb[12].mxu1  ;;  %3691 = vadd.xlane.f32.xlu0 %v3690_v0  ;;  %1862 = vadd.xlane.f32.xlu1 %v1861_v12  ;;  %v7201_v31 = vpop.f32.mrb[12].mxu0 }
 0x2e8   :  { %v7203_v38 = vpop.f32.mrb[13].mxu0  ;;  %v7205_v16 = vpop.f32.mrb[13].mxu1 }
 0x2e9   :  { %v1864_v39 = vadd.f32 %v7203_v38, %v7201_v31  ;;  %v3696_v41 = vadd.f32 %v7205_v16, %v7199_v37 }
 0x2eb   :  { %v7211_v7 = vpop.f32.mrb[14].mxu1  ;;  %3694 = vadd.xlane.f32.xlu1 %v3693_v3  ;;  %1865 = vadd.xlane.f32.xlu0 %v1864_v39  ;;  %v7213_v29 = vpop.f32.mrb[14].mxu0 }
 0x2ec   :  { %v7215_v23 = vpop.f32.mrb[15].mxu0  ;;  %v7217_v26 = vpop.f32.mrb[15].mxu1 }
 0x2ed   :  { %v1867_v53 = vadd.f32 %v7215_v23, %v7213_v29  ;;  %v3699_v40 = vadd.f32 %v7217_v26, %v7211_v7 }
 0x2ef   :  { %3697 = vadd.xlane.f32.xlu0 %v3696_v41  ;;  %1868 = vadd.xlane.f32.xlu1 %v1867_v53 }
 0x2f3   :  { %3700 = vadd.xlane.f32.xlu1 %v3699_v40 }
 0x360   :  { %v1848_v17 = vpop.xlane.xlu0 %1847 }
 0x364   :  { %v3683_v56 = vpop.xlane.xlu1 %3682  ;;  %v3680_v25 = vpop.xlane.xlu0 %3679 }
 0x365   :  { %v3702_v52 = vadd.f32 %v3680_v25, %v1848_v17 }
 0x367   :  { %v7223_v58 = vmul.f32 0.001953125, %v3702_v52 }
 0x368   :  { %v1851_v35 = vpop.xlane.xlu0 %1850  ;;  %v1854_v44 = vpop.xlane.xlu1 %1853 }
 0x369   :  { %v3703_v9 = vadd.f32 %v3683_v56, %v1851_v35  ;;  %v3734_v8 = vsub.f32 %v7127_v20, %v7223_v58  ;;  %v3735_v18 = vsub.f32 %v7131_v47, %v7223_v58  ;;  %v3814_v45 = vsub.f32 %v7129_v57, %v7223_v58 }
 0x36a   :  { %v3815_v22 = vsub.f32 %v7133_v30, %v7223_v58 }
 0x36b   :  { %v7233_v51 = vmul.f32 0.001953125, %v3703_v9  ;;  %v3750_v42 = vmul.f32 %v3734_v8, %v3734_v8  ;;  %v3751_v27 = vmul.f32 %v3735_v18, %v3735_v18  ;;  %v3830_v55 = vmul.f32 %v3814_v45, %v3814_v45 }
 0x36c   :  { %v3686_v48 = vpop.xlane.xlu0 %3685  ;;  %v1857_v5 = vpop.xlane.xlu1 %1856  ;;  %v3831_v43 = vmul.f32 %v3815_v22, %v3815_v22 }
 0x36d   :  { %v3704_v62 = vadd.f32 %v3686_v48, %v1854_v44  ;;  %v3766_v4 = vadd.f32 %v3751_v27, %v3750_v42  ;;  %v3736_v46 = vsub.f32 %v7141_v19, %v7233_v51  ;;  %v3737_v28 = vsub.f32 %v7143_v54, %v7233_v51 }
 0x36e   :  { %v3846_v59 = vadd.f32 %v3831_v43, %v3830_v55  ;;  %v3816_v15 = vsub.f32 %v7139_v32, %v7233_v51  ;;  %v3817_v0 = vsub.f32 %v7145_v13, %v7233_v51 }
 0x36f   :  { %v7243_v12 = vmul.f32 0.001953125, %v3704_v62  ;;  %3767 = vadd.xlane.f32.xlu0 %v3766_v4  ;;  %v3752_v3 = vmul.f32 %v3736_v46, %v3736_v46  ;;  %v3753_v39 = vmul.f32 %v3737_v28, %v3737_v28 }
 0x370   :  { %v3689_v41 = vpop.xlane.xlu1 %3688  ;;  %v1860_v53 = vpop.xlane.xlu0 %1859  ;;  %v3832_v40 = vmul.f32 %v3816_v15, %v3816_v15  ;;  %v3833_v17 = vmul.f32 %v3817_v0, %v3817_v0 }
 0x371   :  { %v3705_v56 = vadd.f32 %v3689_v41, %v1857_v5  ;;  %v3769_v25 = vadd.f32 %v3753_v39, %v3752_v3  ;;  %v3738_v52 = vsub.f32 %v7153_v63, %v7243_v12  ;;  %v3739_v35 = vsub.f32 %v7155_v10, %v7243_v12 }
 0x372   :  { %v3849_v44 = vadd.f32 %v3833_v17, %v3832_v40  ;;  %v3818_v9 = vsub.f32 %v7151_v49, %v7243_v12  ;;  %v3819_v8 = vsub.f32 %v7157_v11, %v7243_v12 }
 0x373   :  { %v7253_v18 = vmul.f32 0.001953125, %v3705_v56  ;;  %3847 = vadd.xlane.f32.xlu0 %v3846_v59  ;;  %3770 = vadd.xlane.f32.xlu1 %v3769_v25  ;;  %v3754_v45 = vmul.f32 %v3738_v52, %v3738_v52  ;;  %v3755_v22 = vmul.f32 %v3739_v35, %v3739_v35 }
 0x374   :  { %v3692_v42 = vpop.xlane.xlu0 %3691  ;;  %v1863_v27 = vpop.xlane.xlu1 %1862  ;;  %v3834_v55 = vmul.f32 %v3818_v9, %v3818_v9  ;;  %v3835_v48 = vmul.f32 %v3819_v8, %v3819_v8 }
 0x375   :  { %v3706_v5 = vadd.f32 %v3692_v42, %v1860_v53  ;;  %v3772_v43 = vadd.f32 %v3755_v22, %v3754_v45  ;;  %v3740_v62 = vsub.f32 %v7165_v36, %v7253_v18  ;;  %v3741_v4 = vsub.f32 %v7167_v61, %v7253_v18 }
 0x376   :  { %v3852_v46 = vadd.f32 %v3835_v48, %v3834_v55  ;;  %v3820_v28 = vsub.f32 %v7163_v33, %v7253_v18  ;;  %v3821_v59 = vsub.f32 %v7169_v34, %v7253_v18 }
 0x377   :  { %v7263_v15 = vmul.f32 0.001953125, %v3706_v5  ;;  %3773 = vadd.xlane.f32.xlu0 %v3772_v43  ;;  %3850 = vadd.xlane.f32.xlu1 %v3849_v44  ;;  %v3756_v0 = vmul.f32 %v3740_v62, %v3740_v62  ;;  %v3757_v3 = vmul.f32 %v3741_v4, %v3741_v4 }
 0x378   :  { %v3695_v39 = vpop.xlane.xlu1 %3694  ;;  %v1866_v41 = vpop.xlane.xlu0 %1865  ;;  %v3836_v53 = vmul.f32 %v3820_v28, %v3820_v28  ;;  %v3837_v40 = vmul.f32 %v3821_v59, %v3821_v59 }
 0x379   :  { %v3707_v17 = vadd.f32 %v3695_v39, %v1863_v27  ;;  %v3775_v56 = vadd.f32 %v3757_v3, %v3756_v0  ;;  %v3742_v25 = vsub.f32 %v7177_v50, %v7263_v15  ;;  %v3743_v52 = vsub.f32 %v7179_v14, %v7263_v15 }
 0x37a   :  { %v3855_v35 = vadd.f32 %v3837_v40, %v3836_v53  ;;  %v3822_v9 = vsub.f32 %v7175_v1, %v7263_v15  ;;  %v3823_v44 = vsub.f32 %v7181_v24, %v7263_v15 }
 0x37b   :  { %v7273_v8 = vmul.f32 0.001953125, %v3707_v17  ;;  %3853 = vadd.xlane.f32.xlu0 %v3852_v46  ;;  %3776 = vadd.xlane.f32.xlu1 %v3775_v56  ;;  %v3758_v45 = vmul.f32 %v3742_v25, %v3742_v25  ;;  %v3759_v22 = vmul.f32 %v3743_v52, %v3743_v52 }
 0x37c   :  { %v3698_v42 = vpop.xlane.xlu0 %3697  ;;  %v1869_v27 = vpop.xlane.xlu1 %1868  ;;  %v3838_v55 = vmul.f32 %v3822_v9, %v3822_v9  ;;  %v3839_v48 = vmul.f32 %v3823_v44, %v3823_v44 }
 0x37d   :  { %v3708_v5 = vadd.f32 %v3698_v42, %v1866_v41  ;;  %v3778_v43 = vadd.f32 %v3759_v22, %v3758_v45  ;;  %v3744_v62 = vsub.f32 %v7189_v2, %v7273_v8  ;;  %v3745_v4 = vsub.f32 %v7191_v60, %v7273_v8 }
 0x37e   :  { %v3858_v28 = vadd.f32 %v3839_v48, %v3838_v55  ;;  %v3824_v59 = vsub.f32 %v7187_v21, %v7273_v8  ;;  %v3825_v46 = vsub.f32 %v7193_v6, %v7273_v8 }
 0x37f   :  { %v7283_v0 = vmul.f32 0.001953125, %v3708_v5  ;;  %3779 = vadd.xlane.f32.xlu0 %v3778_v43  ;;  %3856 = vadd.xlane.f32.xlu1 %v3855_v35  ;;  %v3760_v3 = vmul.f32 %v3744_v62, %v3744_v62  ;;  %v3761_v39 = vmul.f32 %v3745_v4, %v3745_v4 }
 0x380   :  { %v3701_v41 = vpop.xlane.xlu1 %3700  ;;  %v3840_v53 = vmul.f32 %v3824_v59, %v3824_v59  ;;  %v3841_v40 = vmul.f32 %v3825_v46, %v3825_v46 }
 0x381   :  { %v3709_v17 = vadd.f32 %v3701_v41, %v1869_v27  ;;  %v3781_v56 = vadd.f32 %v3761_v39, %v3760_v3  ;;  %v3746_v25 = vsub.f32 %v7201_v31, %v7283_v0  ;;  %v3747_v52 = vsub.f32 %v7203_v38, %v7283_v0 }
 0x382   :  { %v3861_v9 = vadd.f32 %v3841_v40, %v3840_v53  ;;  %v3826_v44 = vsub.f32 %v7199_v37, %v7283_v0  ;;  %v3827_v35 = vsub.f32 %v7205_v16, %v7283_v0  ;;  %v5185_v40 = vmov 0  }
 0x383   :  { %v7293_v45 = vmul.f32 0.001953125, %v3709_v17  ;;  %3859 = vadd.xlane.f32.xlu0 %v3858_v28  ;;  %3782 = vadd.xlane.f32.xlu1 %v3781_v56  ;;  %v3762_v22 = vmul.f32 %v3746_v25, %v3746_v25  ;;  %v3763_v42 = vmul.f32 %v3747_v52, %v3747_v52 }
 0x384   :  { %v3842_v27 = vmul.f32 %v3826_v44, %v3826_v44  ;;  %v3843_v55 = vmul.f32 %v3827_v35, %v3827_v35  ;;  %5116 = vset.pattern.permute.xlu0 %v5185_v40  ;;  %5117 = vset.pattern.permute.xlu1 %v5185_v40 }
 0x385   :  { %v3784_v48 = vadd.f32 %v3763_v42, %v3762_v22  ;;  %v3748_v5 = vsub.f32 %v7213_v29, %v7293_v45  ;;  %v3749_v43 = vsub.f32 %v7215_v23, %v7293_v45  ;;  %v3828_v62 = vsub.f32 %v7211_v7, %v7293_v45 }
 0x386   :  { %v3864_v4 = vadd.f32 %v3843_v55, %v3842_v27  ;;  %v3829_v59 = vsub.f32 %v7217_v26, %v7293_v45 }
 0x387   :  { %3785 = vadd.xlane.f32.xlu0 %v3784_v48  ;;  %3862 = vadd.xlane.f32.xlu1 %v3861_v9  ;;  %v3764_v28 = vmul.f32 %v3748_v5, %v3748_v5  ;;  %v3765_v46 = vmul.f32 %v3749_v43, %v3749_v43  ;;  %v3844_v3 = vmul.f32 %v3828_v62, %v3828_v62 }
 0x388   :  { %v3845_v39 = vmul.f32 %v3829_v59, %v3829_v59 }
 0x389   :  { %v3787_v41 = vadd.f32 %v3765_v46, %v3764_v28 }
 0x38a   :  { %v3867_v53 = vadd.f32 %v3845_v39, %v3844_v3  ;;  %v3886_v39 = vld [vmem:[%s7408_s2] sm:$0xff] }
 0x38b   :  { %3865 = vadd.xlane.f32.xlu0 %v3864_v4  ;;  %3788 = vadd.xlane.f32.xlu1 %v3787_v41 }
 0x38f   :  { %3868 = vadd.xlane.f32.xlu1 %v3867_v53 }
 0x3fc   :  { %v3768_v17 = vpop.xlane.xlu0 %3767 }
 0x400   :  { %v3848_v56 = vpop.xlane.xlu0 %3847  ;;  %v3771_v25 = vpop.xlane.xlu1 %3770 }
 0x401   :  { %v3870_v52 = vadd.f32 %v3848_v56, %v3768_v17 }
 0x403   :  { %v3878_v44 = vmul.f32 0.001953125, %v3870_v52  ;;  %v3887_v52 = vld [vmem:[%s7408_s2 + $0x8] sm:$0xff] }
 0x404   :  { %v3774_v35 = vpop.xlane.xlu0 %3773  ;;  %v3851_v22 = vpop.xlane.xlu1 %3850 }
 0x405   :  { %v3894_v9 = vadd.f32 0.001, %v3878_v44  ;;  %v3871_v42 = vadd.f32 %v3851_v22, %v3771_v25 }
 0x407   :  { %5118 = vrsqrt.f32 %v3894_v9  ;;  %v3879_v27 = vmul.f32 0.001953125, %v3871_v42 }
 0x408   :  { %v3854_v55 = vpop.xlane.xlu0 %3853  ;;  %v3777_v48 = vpop.xlane.xlu1 %3776 }
 0x409   :  { %v3895_v5 = vadd.f32 0.001, %v3879_v27  ;;  %v3872_v43 = vadd.f32 %v3854_v55, %v3774_v35 }
 0x40b   :  { %5120 = vrsqrt.f32 %v3895_v5  ;;  %v3880_v62 = vmul.f32 0.001953125, %v3872_v43  ;;  %v3919_v5 = vld [vmem:[%s7409_s3 + $0x8] sm:$0xff]  ;;  %v3918_v43 = vld [vmem:[%s7409_s3] sm:$0xff] }
 0x40c   :  { %v3780_v4 = vpop.xlane.xlu0 %3779  ;;  %v3857_v59 = vpop.xlane.xlu1 %3856 }
 0x40d   :  { %v3896_v28 = vadd.f32 0.001, %v3880_v62  ;;  %v3873_v46 = vadd.f32 %v3857_v59, %v3777_v48 }
 0x40f   :  { %v3881_v3 = vmul.f32 0.001953125, %v3873_v46  ;;  %5122 = vrsqrt.f32 %v3896_v28 }
 0x410   :  { %v3860_v41 = vpop.xlane.xlu0 %3859  ;;  %v3783_v53 = vpop.xlane.xlu1 %3782 }
 0x411   :  { %v5119_v40 = vpop.eup %5118  ;;  %v3897_v17 = vadd.f32 0.001, %v3881_v3  ;;  %v3874_v56 = vadd.f32 %v3860_v41, %v3780_v4 }
 0x412   :  { %v3910_v25 = vmul.f32 %v5119_v40, %v3886_v39 }
 0x413   :  { %5124 = vrsqrt.f32 %v3897_v17  ;;  %v3882_v9 = vmul.f32 0.001953125, %v3874_v56 }
 0x414   :  { %3944 = vperm.xlu0 %5116, %v3910_v25   ;;  %v3786_v44 = vpop.xlane.xlu0 %3785  ;;  %v3863_v35 = vpop.xlane.xlu1 %3862  ;;  %v3926_v55 = vmul.f32 %v3910_v25, %v7223_v58  ;;  %v3888_v58 = vld [vmem:[%s7408_s2 + $0x10] sm:$0xff] }
 0x415   :  { %v5121_v22 = vpop.eup %5120  ;;  %v3875_v42 = vadd.f32 %v3863_v35, %v3783_v53  ;;  %v3898_v59 = vadd.f32 0.001, %v3882_v9  ;;  %v3889_v53 = vld [vmem:[%s7408_s2 + $0x18] sm:$0xff] }
 0x416   :  { %v3911_v27 = vmul.f32 %v5121_v22, %v3887_v52  ;;  %v3934_v39 = vsub.f32 %v3918_v43, %v3926_v55  ;;  %v3921_v22 = vld [vmem:[%s7409_s3 + $0x18] sm:$0xff] }
 0x417   :  { %v3883_v48 = vmul.f32 0.001953125, %v3875_v42 }
 0x418   :  { %3949 = vperm.xlu1 %5117, %v3911_v27   ;;  %v3789_v62 = vpop.xlane.xlu1 %3788  ;;  %v3927_v4 = vmul.f32 %v3911_v27, %v7233_v51  ;;  %v3866_v46 = vpop.xlane.xlu0 %3865 }
 0x419   :  { %v3899_v28 = vadd.f32 0.001, %v3883_v48  ;;  %v5123_v41 = vpop.eup %5122  ;;  %v3876_v51 = vadd.f32 %v3866_v46, %v3786_v44  ;;  %v3920_v44 = vld [vmem:[%s7409_s3 + $0x10] sm:$0xff] }
 0x41a   :  { %v3935_v3 = vsub.f32 %v3919_v5, %v3927_v4  ;;  %v3912_v25 = vmul.f32 %v5123_v41, %v3888_v58  ;;  %v3891_v5 = vld [vmem:[%s7408_s2 + $0x28] sm:$0xff]  ;;  %v3893_v41 = vld [vmem:[%s7408_s2 + $0x38] sm:$0xff] }
 0x41b   :  { %5126 = vrsqrt.f32 %v3899_v28  ;;  %v3884_v42 = vmul.f32 0.001953125, %v3876_v51  ;;  %v3890_v28 = vld [vmem:[%s7408_s2 + $0x20] sm:$0xff] }
 0x41c   :  { %3989 = vperm.xlu0 %5116, %v3935_v3   ;;  %3984 = vperm.xlu1 %5117, %v3934_v39   ;;  %v3869_v40 = vpop.xlane.xlu1 %3868  ;;  %5128 = vrsqrt.f32 %v3898_v59  ;;  %v3928_v48 = vmul.f32 %v3912_v25, %v7243_v12  ;;  %v3923_v12 = vld [vmem:[%s7409_s3 + $0x28] sm:$0xff] }
 0x41d   :  { %v5125_v17 = vpop.eup %5124  ;;  %v3877_v56 = vadd.f32 %v3869_v40, %v3789_v62  ;;  %v3900_v62 = vadd.f32 0.001, %v3884_v42 }
 0x41e   :  { %v3913_v52 = vmul.f32 %v5125_v17, %v3889_v53  ;;  %v3936_v4 = vsub.f32 %v3920_v44, %v3928_v48  ;;  %v3922_v17 = vld [vmem:[%s7409_s3 + $0x20] sm:$0xff] }
 0x41f   :  { %v3885_v35 = vmul.f32 0.001953125, %v3877_v56 }
 0x420   :  { %3954 = vperm.xlu1 %5117, %v3912_v25   ;;  %v3929_v9 = vmul.f32 %v3913_v52, %v7253_v18 }
 0x421   :  { %v3901_v27 = vadd.f32 0.001, %v3885_v35  ;;  %v3892_v35 = vld [vmem:[%s7408_s2 + $0x30] sm:$0xff]  ;;  %s5186_s2 = smov [#allocation5]  }
 0x422   :  { %v3937_v55 = vsub.f32 %v3921_v22, %v3929_v9  ;;  %v3924_v9 = vld [vmem:[%s7409_s3 + $0x30] sm:$0xff] }
 0x423   :  { %5130 = vrsqrt.f32 %v3901_v27 }
 0x424   :  { %3999 = vperm.xlu0 %5116, %v3937_v55   ;;  %3959 = vperm.xlu1 %5117, %v3913_v52   ;;  %5132 = vrsqrt.f32 %v3900_v62 }
 0x425   :  { %v5127_v43 = vpop.eup %5126 }
 0x426   :  { %v3915_v18 = vmul.f32 %v5127_v43, %v3891_v5  ;;  %v5129_v59 = vpop.eup %5128 }
 0x427   :  { %v3914_v39 = vmul.f32 %v5129_v59, %v3890_v28 }
 0x428   :  { %3994 = vperm.xlu1 %5117, %v3936_v4   ;;  %v3931_v46 = vmul.f32 %v3915_v18, %v7273_v8  ;;  %v3925_v8 = vld [vmem:[%s7409_s3 + $0x38] sm:$0xff]  ;;  %s4171_s3 = sshll.u32 %s5186_s2, 4  ;;  %s4172_s3 = int_to_ptr.vmem [resolvable:$true] %s4171_s3 }
 0x429   :  { %v3930_v53 = vmul.f32 %v3914_v39, %v7263_v15  ;;  %s5156_s14 = scalar_lea.vmem %s4172_s3, 4096  ;;  %p5161_p9 = scmp.lt.s32.totalorder %s4172_s3, %s4172_s3 }
 0x42a   :  { %v3939_v3 = vsub.f32 %v3923_v12, %v3931_v46  ;;  %p5157_p8 = scmp.ne.s32.totalorder %s4172_s3, %s5156_s14  ;;  %p5162_p10 = scmp.lt.s32.totalorder %s5156_s14, %s5156_s14 }
 0x42b   :  { %v3938_v56 = vsub.f32 %v3922_v17, %v3930_v53 }
 0x42c   :  { %4009 = vperm.xlu0 %5116, %v3939_v3   ;;  %3964 = vperm.xlu1 %5117, %v3914_v39   ;;  %p5163_p11 = por %p5162_p10, %p5161_p9 }
 0x42d   :  { %v5131_v58 = vpop.eup %5130 }
 0x42e   :  { %v3917_v40 = vmul.f32 %v5131_v58, %v3893_v41  ;;  %v5133_v52 = vpop.eup %5132  ;;  %p5164_p12 = pnand %p5163_p11, %p5157_p8 }
 0x42f   :  { %v3916_v15 = vmul.f32 %v5133_v52, %v3892_v35 }
 0x430   :  { %3969 = vperm.xlu1 %5117, %v3915_v18   ;;  %v3933_v51 = vmul.f32 %v3917_v40, %v7293_v45 }
 0x431   :  { %v3932_v22 = vmul.f32 %v3916_v15, %v7283_v0 }
 0x432   :  { %v3941_v25 = vsub.f32 %v3925_v8, %v3933_v51 }
 0x433   :  { %v3940_v42 = vsub.f32 %v3924_v9, %v3932_v22 }
 0x434   :  { %4004 = vperm.xlu1 %5117, %v3938_v56   ;;  %4019 = vperm.xlu0 %5116, %v3941_v25  }
 0x438   :  { %3974 = vperm.xlu1 %5117, %v3916_v15  }
 0x43c   :  { %3979 = vperm.xlu1 %5117, %v3917_v40  }
 0x440   :  { %4014 = vperm.xlu1 %5117, %v3940_v42  }
 0x493   :  { %v3945_v45 = vpop.permute.xlu0 %3944 }
 0x494   :  { %v4022_v43 = vmul.f32 %v3945_v45, %v7127_v20  ;;  %v4023_v0 = vmul.f32 %v3945_v45, %v7131_v47  ;;  %v4102_v62 = vmul.f32 %v3945_v45, %v7129_v57  ;;  %v4103_v4 = vmul.f32 %v3945_v45, %v7133_v30 }
 0x497   :  { %v3950_v27 = vpop.permute.xlu1 %3949 }
 0x498   :  { %v4024_v55 = vmul.f32 %v3950_v27, %v7141_v19  ;;  %v4025_v48 = vmul.f32 %v3950_v27, %v7143_v54  ;;  %v4104_v44 = vmul.f32 %v3950_v27, %v7139_v32  ;;  %v4105_v5 = vmul.f32 %v3950_v27, %v7145_v13 }
 0x49b   :  { %v3990_v18 = vpop.permute.xlu0 %3989  ;;  %v3985_v59 = vpop.permute.xlu1 %3984 }
 0x49c   :  { %v4040_v12 = vadd.f32 %v4024_v55, %v3990_v18  ;;  %v4041_v28 = vadd.f32 %v4025_v48, %v3990_v18  ;;  %v4120_v46 = vadd.f32 %v4104_v44, %v3990_v18  ;;  %v4121_v19 = vadd.f32 %v4105_v5, %v3990_v18 }
 0x49d   :  { %v4038_v3 = vadd.f32 %v4022_v43, %v3985_v59  ;;  %v4039_v54 = vadd.f32 %v4023_v0, %v3985_v59  ;;  %v4118_v39 = vadd.f32 %v4102_v62, %v3985_v59  ;;  %v4119_v32 = vadd.f32 %v4103_v4, %v3985_v59 }
 0x49e   :  { %v4056_v41 = vmax.f32 %v4040_v12, 0.0  ;;  %v4057_v13 = vmax.f32 %v4041_v28, 0.0  ;;  %v4136_v58 = vmax.f32 %v4120_v46, 0.0  ;;  %v4137_v20 = vmax.f32 %v4121_v19, 0.0 }
 0x49f   :  { %v4054_v53 = vmax.f32 %v4038_v3, 0.0  ;;  %v4055_v47 = vmax.f32 %v4039_v54, 0.0  ;;  %v4134_v40 = vmax.f32 %v4118_v39, 0.0  ;;  %v4135_v57 = vmax.f32 %v4119_v32, 0.0  ;;  %v3955_v17 = vpop.permute.xlu1 %3954 }
 0x4a0   :  { %4072 = vst [vmem:[#allocation5 + $0x10] sm:$0xff] %v4056_v41  ;;  %4073 = vst [vmem:[#allocation5 + $0x18] sm:$0xff] %v4057_v13  ;;  %v4026_v42 = vmul.f32 %v3955_v17, %v7153_v63  ;;  %v4027_v45 = vmul.f32 %v3955_v17, %v7155_v10  ;;  %v4106_v27 = vmul.f32 %v3955_v17, %v7151_v49 }
 0x4a1   :  { %4152 = vst [vmem:[#allocation5 + $0x90] sm:$0xff] %v4136_v58  ;;  %4153 = vst [vmem:[#allocation5 + $0x98] sm:$0xff] %v4137_v20  ;;  %v4107_v55 = vmul.f32 %v3955_v17, %v7157_v11 }
 0x4a2   :  { %4070 = vst [vmem:[#allocation5] sm:$0xff] %v4054_v53  ;;  %4071 = vst [vmem:[#allocation5 + $0x8] sm:$0xff] %v4055_v47 }
 0x4a3   :  { %4150 = vst [vmem:[#allocation5 + $0x80] sm:$0xff] %v4134_v40  ;;  %4151 = vst [vmem:[#allocation5 + $0x88] sm:$0xff] %v4135_v57  ;;  %v3960_v30 = vpop.permute.xlu1 %3959  ;;  %v4000_v52 = vpop.permute.xlu0 %3999 }
 0x4a4   :  { %v4028_v8 = vmul.f32 %v3960_v30, %v7165_v36  ;;  %v4029_v51 = vmul.f32 %v3960_v30, %v7167_v61  ;;  %v4108_v56 = vmul.f32 %v3960_v30, %v7163_v33  ;;  %v4109_v25 = vmul.f32 %v3960_v30, %v7169_v34 }
 0x4a6   :  { %v4044_v35 = vadd.f32 %v4028_v8, %v4000_v52  ;;  %v4045_v15 = vadd.f32 %v4029_v51, %v4000_v52  ;;  %v4124_v22 = vadd.f32 %v4108_v56, %v4000_v52  ;;  %v4125_v9 = vadd.f32 %v4109_v25, %v4000_v52 }
 0x4a7   :  { %v3995_v36 = vpop.permute.xlu1 %3994 }
 0x4a8   :  { %v4060_v48 = vmax.f32 %v4044_v35, 0.0  ;;  %v4061_v61 = vmax.f32 %v4045_v15, 0.0  ;;  %v4140_v44 = vmax.f32 %v4124_v22, 0.0  ;;  %v4141_v33 = vmax.f32 %v4125_v9, 0.0 }
 0x4a9   :  { %v4042_v5 = vadd.f32 %v4026_v42, %v3995_v36  ;;  %v4043_v34 = vadd.f32 %v4027_v45, %v3995_v36  ;;  %v4122_v43 = vadd.f32 %v4106_v27, %v3995_v36  ;;  %v4123_v0 = vadd.f32 %v4107_v55, %v3995_v36 }
 0x4aa   :  { %4076 = vst [vmem:[#allocation5 + $0x30] sm:$0xff] %v4060_v48  ;;  %4077 = vst [vmem:[#allocation5 + $0x38] sm:$0xff] %v4061_v61 }
 0x4ab   :  { %4156 = vst [vmem:[#allocation5 + $0xb0] sm:$0xff] %v4140_v44  ;;  %4157 = vst [vmem:[#allocation5 + $0xb8] sm:$0xff] %v4141_v33  ;;  %v4058_v63 = vmax.f32 %v4042_v5, 0.0  ;;  %v4059_v62 = vmax.f32 %v4043_v34, 0.0  ;;  %v4138_v10 = vmax.f32 %v4122_v43, 0.0  ;;  %v4139_v4 = vmax.f32 %v4123_v0, 0.0  ;;  %v3965_v49 = vpop.permute.xlu1 %3964  ;;  %v4010_v46 = vpop.permute.xlu0 %4009 }
 0x4ac   :  { %v4030_v32 = vmul.f32 %v3965_v49, %v7177_v50  ;;  %v4031_v41 = vmul.f32 %v3965_v49, %v7179_v14  ;;  %v4110_v13 = vmul.f32 %v3965_v49, %v7175_v1  ;;  %v4111_v58 = vmul.f32 %v3965_v49, %v7181_v24 }
 0x4ad   :  { %4074 = vst [vmem:[#allocation5 + $0x20] sm:$0xff] %v4058_v63  ;;  %4075 = vst [vmem:[#allocation5 + $0x28] sm:$0xff] %v4059_v62 }
 0x4ae   :  { %4154 = vst [vmem:[#allocation5 + $0xa0] sm:$0xff] %v4138_v10  ;;  %4155 = vst [vmem:[#allocation5 + $0xa8] sm:$0xff] %v4139_v4 }
 0x4af   :  { %v3970_v11 = vpop.permute.xlu1 %3969 }
 0x4b0   :  { %v4032_v18 = vmul.f32 %v3970_v11, %v7189_v2  ;;  %v4033_v59 = vmul.f32 %v3970_v11, %v7191_v60  ;;  %v4112_v12 = vmul.f32 %v3970_v11, %v7187_v21  ;;  %v4113_v28 = vmul.f32 %v3970_v11, %v7193_v6 }
 0x4b2   :  { %v4048_v19 = vadd.f32 %v4032_v18, %v4010_v46  ;;  %v4049_v3 = vadd.f32 %v4033_v59, %v4010_v46  ;;  %v4128_v54 = vadd.f32 %v4112_v12, %v4010_v46  ;;  %v4129_v39 = vadd.f32 %v4113_v28, %v4010_v46 }
 0x4b3   :  { %v4005_v2 = vpop.permute.xlu1 %4004  ;;  %v4020_v52 = vpop.permute.xlu0 %4019 }
 0x4b4   :  { %v4064_v20 = vmax.f32 %v4048_v19, 0.0  ;;  %v4065_v60 = vmax.f32 %v4049_v3, 0.0  ;;  %v4144_v53 = vmax.f32 %v4128_v54, 0.0  ;;  %v4145_v21 = vmax.f32 %v4129_v39, 0.0 }
 0x4b5   :  { %v4046_v47 = vadd.f32 %v4030_v32, %v4005_v2  ;;  %v4047_v6 = vadd.f32 %v4031_v41, %v4005_v2  ;;  %v4126_v40 = vadd.f32 %v4110_v13, %v4005_v2  ;;  %v4127_v57 = vadd.f32 %v4111_v58, %v4005_v2 }
 0x4b6   :  { %4080 = vst [vmem:[#allocation5 + $0x50] sm:$0xff] %v4064_v20  ;;  %4081 = vst [vmem:[#allocation5 + $0x58] sm:$0xff] %v4065_v60 }
 0x4b7   :  { %4160 = vst [vmem:[#allocation5 + $0xd0] sm:$0xff] %v4144_v53  ;;  %4161 = vst [vmem:[#allocation5 + $0xd8] sm:$0xff] %v4145_v21  ;;  %v4062_v50 = vmax.f32 %v4046_v47, 0.0  ;;  %v4063_v17 = vmax.f32 %v4047_v6, 0.0  ;;  %v4142_v14 = vmax.f32 %v4126_v40, 0.0  ;;  %v4143_v30 = vmax.f32 %v4127_v57, 0.0  ;;  %v3975_v1 = vpop.permute.xlu1 %3974 }
 0x4b8   :  { %v4034_v42 = vmul.f32 %v3975_v1, %v7201_v31  ;;  %v4035_v45 = vmul.f32 %v3975_v1, %v7203_v38  ;;  %v4114_v27 = vmul.f32 %v3975_v1, %v7199_v37  ;;  %v4115_v55 = vmul.f32 %v3975_v1, %v7205_v16 }
 0x4b9   :  { %4078 = vst [vmem:[#allocation5 + $0x40] sm:$0xff] %v4062_v50  ;;  %4079 = vst [vmem:[#allocation5 + $0x48] sm:$0xff] %v4063_v17 }
 0x4ba   :  { %4158 = vst [vmem:[#allocation5 + $0xc0] sm:$0xff] %v4142_v14  ;;  %4159 = vst [vmem:[#allocation5 + $0xc8] sm:$0xff] %v4143_v30 }
 0x4bb   :  { %v3980_v24 = vpop.permute.xlu1 %3979 }
 0x4bc   :  { %v4036_v8 = vmul.f32 %v3980_v24, %v7213_v29  ;;  %v4037_v51 = vmul.f32 %v3980_v24, %v7215_v23  ;;  %v4116_v56 = vmul.f32 %v3980_v24, %v7211_v7  ;;  %v4117_v25 = vmul.f32 %v3980_v24, %v7217_v26 }
 0x4be   :  { %v4052_v35 = vadd.f32 %v4036_v8, %v4020_v52  ;;  %v4053_v15 = vadd.f32 %v4037_v51, %v4020_v52  ;;  %v4132_v22 = vadd.f32 %v4116_v56, %v4020_v52  ;;  %v4133_v9 = vadd.f32 %v4117_v25, %v4020_v52 }
 0x4bf   :  { %v4015_v29 = vpop.permute.xlu1 %4014 }
 0x4c0   :  { %v4068_v36 = vmax.f32 %v4052_v35, 0.0  ;;  %v4069_v23 = vmax.f32 %v4053_v15, 0.0  ;;  %v4148_v48 = vmax.f32 %v4132_v22, 0.0  ;;  %v4149_v7 = vmax.f32 %v4133_v9, 0.0 }
 0x4c1   :  { %v4050_v26 = vadd.f32 %v4034_v42, %v4015_v29  ;;  %v4051_v61 = vadd.f32 %v4035_v45, %v4015_v29  ;;  %v4130_v44 = vadd.f32 %v4114_v27, %v4015_v29  ;;  %v4131_v33 = vadd.f32 %v4115_v55, %v4015_v29 }
 0x4c2   :  { %4084 = vst [vmem:[#allocation5 + $0x70] sm:$0xff] %v4068_v36  ;;  %4085 = vst [vmem:[#allocation5 + $0x78] sm:$0xff] %v4069_v23 }
 0x4c3   :  { %4164 = vst [vmem:[#allocation5 + $0xf0] sm:$0xff] %v4148_v48  ;;  %4165 = vst [vmem:[#allocation5 + $0xf8] sm:$0xff] %v4149_v7  ;;  %v4066_v31 = vmax.f32 %v4050_v26, 0.0  ;;  %v4067_v38 = vmax.f32 %v4051_v61, 0.0  ;;  %v4146_v37 = vmax.f32 %v4130_v44, 0.0  ;;  %v4147_v5 = vmax.f32 %v4131_v33, 0.0 }
 0x4c5   :  { %4082 = vst [vmem:[#allocation5 + $0x60] sm:$0xff] %v4066_v31  ;;  %4083 = vst [vmem:[#allocation5 + $0x68] sm:$0xff] %v4067_v38 }
 0x4c6   :  { %4162 = vst [vmem:[#allocation5 + $0xe0] sm:$0xff] %v4146_v37  ;;  %4163 = vst [vmem:[#allocation5 + $0xe8] sm:$0xff] %v4147_v5 }
 0x4c7   :  { %5167 = shalt.err (!%p5164_p12)
}
 0x4c8   :  { %s5168_s17 = scalar_lea.hbm %s7410_s4, 4096 }
 0x4c9   :  { %p5169_p13 = scmp.ne.s32.totalorder %s7410_s4, %s5168_s17  ;;  %p5172_p0 = scmp.lt.u32.totalorder %s5168_s17, %s7410_s4 }
 0x4cb   :  { %p5174_p1 = pnand %p5172_p0, %p5169_p13 }
 0x4cd   :  { %5177 = shalt.err (!%p5174_p1)
}
 0x4ce   :  { %4177 = dma.vmem_to_hbm [thread:$0]  %s4172_s3, 4096, %s7410_s4, [#allocation4], %s5183_s25, %s5183_s25, %s5184_s26  }
 0x4cf   :  { %5180 = dma.done.wait [#allocation4], 4096  }
 0x4d0   :  { %5181 = vsyncadd [#allocation4], 4294963200 }
 0x4d1   :  { %4181 = vsyncpa [#allocation3], 1 }
 0x4d2   :  { %4182 = vsyncpa [#allocation4], 1 }

</bundles_post_ra>
